<compile_context>
chip_gen: v5e
topology: v5e:2x2
jax: 0.10.0
libtpu: 0.0.40
codegen_flags: <defaults>
</compile_context>

<pallas_src>
import math

import jax
import jax.numpy as jnp
from jax import lax
from jax.experimental import pallas as pl
from jax.experimental.pallas import tpu as pltpu


# --------------------------------------------------------------------------
# Scaled-down model config (architecture of wav2vec2-base, tiny dims)
# --------------------------------------------------------------------------
CONV_DIM = 32
CONV_KERNELS = (10, 3, 3)
CONV_STRIDES = (5, 2, 2)
HIDDEN = 32
NUM_HEADS = 4
HEAD_DIM = HIDDEN // NUM_HEADS
FFN_DIM = 64
NUM_LAYERS = 2
VOCAB = 32
VOCAB_PAD = 128            # lane-dense lm_head output (cropped in the wrapper)
POS_CONV_KERNEL = 4
POS_CONV_GROUPS = 4
LN_EPS = 1e-5
NEG_INF = -1e30

# packed parameter-vector buffer layout: rows of an (n_rows, 128) fp32 VMEM array
VEC_WIDTH = 128
(VEC_GN_G, VEC_GN_B, VEC_FP_LN_G, VEC_FP_LN_B, VEC_FP_B, VEC_POS_B,
 VEC_ENC_LN_G, VEC_ENC_LN_B, VEC_LM_B) = range(9)
VEC_LAYER_BASE = 9
VEC_PER_LAYER = 8   # bqkv, bo, ln1_g, ln1_b, b1, b2, ln2_g, ln2_b


def _gelu(x):
    # TODO(synk): tanh-approx GELU stands in for HF's erf GELU.
    return jax.nn.gelu(x, approximate=True)


# --------------------------------------------------------------------------
# The single fused kernel (one grid step == one batch element)
# --------------------------------------------------------------------------
def wav2vec_kernel(patches_ref, sel2_ref, sel3_ref, possel_ref,
                   w1_ref, w2_ref, w3_ref, vec_ref, fpw_ref, posw_ref,
                   bias_ref, wqkv_ref, wo_ref, wf1_ref, wf2_ref, lmw_ref,
                   o_ref):
    """patches_ref: (1, T1, K1) conv1 im2col patches for this batch element;
    sel2/sel3/possel: (K, T_out, T_in) 0/1 tap-selection matrices (valid-length masks folded in);
    w1/w2/w3: (K*Cin, Cout) conv weights; vec_ref: (R, 128) packed bias/LN rows;
    fpw: (D, D); posw: (K*D, D) block-diag grouped pos-conv weight;
    bias_ref: (H*Tp, H*Tp) head-block-diagonal attention mask (pad keys masked);
    wqkv: (L, D, 3D); wo: (L, D, D); wf1: (L, D, F); wf2: (L, F, D); lmw: (D, 128);
    o_ref: (Tp, 128) logits for this batch element (lane-padded)."""
    f32 = jnp.float32
    D, Dh, H, F = HIDDEN, HEAD_DIM, NUM_HEADS, FFN_DIM
    Tp = o_ref.shape[0]
    scale = 1.0 / math.sqrt(Dh)

    def vget(row, n):
        return vec_ref[row:row + 1, 0:n]                       # (1, n), static slice

    def ln(x, g_row, b_row):
        n = x.shape[-1]
        mu = jnp.mean(x, axis=-1, keepdims=True)
        var = jnp.mean(jnp.square(x - mu), axis=-1, keepdims=True)
        return (x - mu) * lax.rsqrt(var + LN_EPS) * vget(g_row, n) + vget(b_row, n)

    def tap_matmul(sel_ref, x):
        # stride / shift selection on the MXU: concat_k(Sel_k @ x) along lanes -> (T_out, K*C)
        taps = [jnp.dot(sel_ref[k], x, preferred_element_type=f32)
                for k in range(sel_ref.shape[0])]
        return jnp.concatenate(taps, axis=-1)

    # ---- feature extractor: conv1 + GroupNorm(per-channel over time) + GELU ----
    y = jnp.dot(patches_ref[0], w1_ref[...], preferred_element_type=f32)       # (T1, C)
    mu = jnp.mean(y, axis=0, keepdims=True)
    var = jnp.mean(jnp.square(y - mu), axis=0, keepdims=True)
    y = (y - mu) * lax.rsqrt(var + LN_EPS) * vget(VEC_GN_G, CONV_DIM) + vget(VEC_GN_B, CONV_DIM)
    y = _gelu(y)

    # ---- conv2 / conv3 (stride-2 im2col via selection matmuls) + GELU ----
    y = _gelu(jnp.dot(tap_matmul(sel2_ref, y), w2_ref[...],
                      preferred_element_type=f32))                              # (T2, C)
    y = _gelu(jnp.dot(tap_matmul(sel3_ref, y), w3_ref[...],
                      preferred_element_type=f32))                              # (Tp, C), pad rows 0

    # ---- feature projection: LayerNorm -> Linear ----
    h = ln(y, VEC_FP_LN_G, VEC_FP_LN_B)
    h = jnp.dot(h, fpw_ref[...], preferred_element_type=f32) + vget(VEC_FP_B, D)

    # ---- positional conv embedding (grouped conv == shift-select + block-diag matmul) ----
    pos = jnp.dot(tap_matmul(possel_ref, h), posw_ref[...],
                  preferred_element_type=f32) + vget(VEC_POS_B, D)
    h = h + _gelu(pos)

    # ---- encoder input LayerNorm ----
    h = ln(h, VEC_ENC_LN_G, VEC_ENC_LN_B)

    attn_bias = bias_ref[...]                                   # hoisted, (H*Tp, H*Tp)

    # ---- post-LN transformer layers ----
    for li in range(NUM_LAYERS):
        base = VEC_LAYER_BASE + li * VEC_PER_LAYER

        # fused QKV projection (lane-dense N = 3*D)
        qkv = jnp.dot(h, wqkv_ref[li], preferred_element_type=f32) + vget(base + 0, 3 * D)

        # pack all heads along sublanes: (H*Tp, Dh); sublane blocks are Tp-aligned
        qp = jnp.concatenate([qkv[:, hh * Dh:(hh + 1) * Dh] for hh in range(H)],
                             axis=0) * scale
        kp = jnp.concatenate([qkv[:, D + hh * Dh:D + (hh + 1) * Dh] for hh in range(H)],
                             axis=0)
        vp = jnp.concatenate([qkv[:, 2 * D + hh * Dh:2 * D + (hh + 1) * Dh]
                              for hh in range(H)], axis=0)

        # one masked score matmul + softmax + one PV matmul for all heads
        s = lax.dot_general(qp, kp, (((1,), (1,)), ((), ())),
                            preferred_element_type=f32) + attn_bias             # (H*Tp, H*Tp)
        m = jnp.max(s, axis=-1, keepdims=True)
        p = jnp.exp(s - m)
        p = p * pl.reciprocal(jnp.sum(p, axis=-1, keepdims=True), approx=True)
        pv = jnp.dot(p, vp, preferred_element_type=f32)                          # (H*Tp, Dh)

        # unpack heads back into lanes (aligned sublane slices)
        attn = jnp.concatenate([pv[hh * Tp:(hh + 1) * Tp, :] for hh in range(H)], axis=-1)
        attn = jnp.dot(attn, wo_ref[li], preferred_element_type=f32) + vget(base + 1, D)
        h = ln(h + attn, base + 2, base + 3)

        ff = _gelu(jnp.dot(h, wf1_ref[li], preferred_element_type=f32) + vget(base + 4, F))
        ff = jnp.dot(ff, wf2_ref[li], preferred_element_type=f32) + vget(base + 5, D)
        h = ln(h + ff, base + 6, base + 7)

    # ---- lm_head (lane-dense 128-wide store; cropped in the wrapper) ----
    o_ref[...] = (jnp.dot(h, lmw_ref[...], preferred_element_type=f32)
                  + vget(VEC_LM_B, VOCAB_PAD))


# --------------------------------------------------------------------------
# Thin XLA glue: im2col of the raw audio, weight repacking, packed vectors, masks
# --------------------------------------------------------------------------
def _im2col_time(x, kernel, stride):
    """x: (B, T_in, C) channels-last -> (B, T_out, kernel*C) patches, k-major features."""
    _, T_in, _ = x.shape
    T_out = (T_in - kernel) // stride + 1
    cols = [x[:, k:k + (T_out - 1) * stride + 1:stride, :] for k in range(kernel)]
    return jnp.concatenate(cols, axis=-1), T_out


def _conv_weight_mat(w):
    """torch Conv1d weight (C_out, C_in, K) -> (K*C_in, C_out) matching k-major patches."""
    C_out, C_in, K = w.shape
    return jnp.transpose(w, (2, 1, 0)).reshape(K * C_in, C_out)


def _pos_conv_blockdiag(w):
    """Grouped Conv1d weight (C, C//G, K) -> dense block-diagonal (K*C, C) matrix."""
    C, Cg, K = w.shape
    groups = C // Cg
    Wk = jnp.zeros((K, C, C), jnp.float32)
    for g in range(groups):
        blk = jnp.transpose(w[g * Cg:(g + 1) * Cg, :, :], (2, 1, 0))  # (K, Cg_in, Cg_out)
        Wk = Wk.at[:, g * Cg:(g + 1) * Cg, g * Cg:(g + 1) * Cg].set(blk)
    return Wk.reshape(K * C, C)


def _stride_select(t_out, t_in, kernel, stride, offset=0, valid_out=None, valid_in=None):
    """(kernel, t_out, t_in) 0/1 matrices: Sel[k, t, s] = [s == stride*t + k + offset]."""
    t = jnp.arange(t_out)[:, None]
    s = jnp.arange(t_in)[None, :]
    mats = []
    for k in range(kernel):
        m = (s == stride * t + k + offset)
        if valid_out is not None:
            m = m & (t < valid_out)
        if valid_in is not None:
            m = m & (s < valid_in)
        mats.append(m.astype(jnp.float32))
    return jnp.stack(mats)


def _head_block_bias(num_heads, t_pad, t_valid):
    """(H*Tp, H*Tp) additive mask: 0 within a head block for valid keys, else NEG_INF."""
    idx = jnp.arange(num_heads * t_pad)
    same_head = (idx[:, None] // t_pad) == (idx[None, :] // t_pad)
    key_valid = (idx[None, :] % t_pad) < t_valid
    return jnp.where(same_head & key_valid, 0.0, NEG_INF).astype(jnp.float32)


def _pack_param_vectors(params):
    vs = [params["gn_g"], params["gn_b"],
          params["fp_ln_g"], params["fp_ln_b"], params["fp_b"], params["pos_b"],
          params["enc_ln_g"], params["enc_ln_b"], params["lm_b"]]
    for lp in params["layers"]:
        vs += [jnp.concatenate([lp["bq"], lp["bk"], lp["bv"]]),
               lp["bo"], lp["ln1_g"], lp["ln1_b"], lp["b1"], lp["b2"],
               lp["ln2_g"], lp["ln2_b"]]
    rows = [jnp.pad(v.astype(jnp.float32), (0, VEC_WIDTH - v.shape[0])) for v in vs]
    rows += [jnp.zeros((VEC_WIDTH,), jnp.float32)] * ((-len(rows)) % 8)
    return jnp.stack(rows, axis=0)


# --------------------------------------------------------------------------
# Parameter init (deterministic, synthetic)
# --------------------------------------------------------------------------
def init_params(key):
    keys = iter(jax.random.split(key, 128))

    def nrm(shape, scale=0.02):
        return scale * jax.random.normal(next(keys), shape, jnp.float32)

    p = {}
    p["conv_w"] = []
    in_c = 1
    for k in CONV_KERNELS:
        p["conv_w"].append(nrm((CONV_DIM, in_c, k), scale=0.1))
        in_c = CONV_DIM
    p["gn_g"] = jnp.ones((CONV_DIM,), jnp.float32)
    p["gn_b"] = jnp.zeros((CONV_DIM,), jnp.float32)
    p["fp_ln_g"] = jnp.ones((CONV_DIM,), jnp.float32)
    p["fp_ln_b"] = jnp.zeros((CONV_DIM,), jnp.float32)
    p["fp_w"] = nrm((CONV_DIM, HIDDEN))
    p["fp_b"] = jnp.zeros((HIDDEN,), jnp.float32)
    p["pos_w"] = nrm((HIDDEN, HIDDEN // POS_CONV_GROUPS, POS_CONV_KERNEL), scale=0.1)
    p["pos_b"] = jnp.zeros((HIDDEN,), jnp.float32)
    p["enc_ln_g"] = jnp.ones((HIDDEN,), jnp.float32)
    p["enc_ln_b"] = jnp.zeros((HIDDEN,), jnp.float32)
    p["layers"] = []
    for _ in range(NUM_LAYERS):
        lp = {
            "wq": nrm((HIDDEN, HIDDEN)), "bq": jnp.zeros((HIDDEN,), jnp.float32),
            "wk": nrm((HIDDEN, HIDDEN)), "bk": jnp.zeros((HIDDEN,), jnp.float32),
            "wv": nrm((HIDDEN, HIDDEN)), "bv": jnp.zeros((HIDDEN,), jnp.float32),
            "wo": nrm((HIDDEN, HIDDEN)), "bo": jnp.zeros((HIDDEN,), jnp.float32),
            "ln1_g": jnp.ones((HIDDEN,), jnp.float32),
            "ln1_b": jnp.zeros((HIDDEN,), jnp.float32),
            "w1": nrm((HIDDEN, FFN_DIM)), "b1": jnp.zeros((FFN_DIM,), jnp.float32),
            "w2": nrm((FFN_DIM, HIDDEN)), "b2": jnp.zeros((HIDDEN,), jnp.float32),
            "ln2_g": jnp.ones((HIDDEN,), jnp.float32),
            "ln2_b": jnp.zeros((HIDDEN,), jnp.float32),
        }
        p["layers"].append(lp)
    p["lm_w"] = nrm((HIDDEN, VOCAB))
    p["lm_b"] = jnp.zeros((VOCAB,), jnp.float32)
    return p


# --------------------------------------------------------------------------
# Forward pass (== Wav2Vec2ForCTC(input_values, labels=None).logits)
# --------------------------------------------------------------------------
def wav2vec_forward(params, input_values):
    f32 = jnp.float32
    B, L = input_values.shape
    x = input_values.astype(f32)[:, :, None]                    # (B, L, 1) channels-last

    # conv1 im2col on the raw audio (only XLA glue in the whole forward)
    K1, S1 = CONV_KERNELS[0], CONV_STRIDES[0]
    T1 = (L - K1) // S1 + 1
    if L % S1 == 0 and K1 % S1 == 0:
        xr = x.reshape(B, L // S1, S1)
        patches1 = jnp.concatenate([xr[:, r:r + T1, :] for r in range(K1 // S1)], axis=-1)
    else:
        patches1, T1 = _im2col_time(x, K1, S1)

    T2 = (T1 - CONV_KERNELS[1]) // CONV_STRIDES[1] + 1
    T3 = (T2 - CONV_KERNELS[2]) // CONV_STRIDES[2] + 1
    T_pad = -(-T3 // 8) * 8                                      # sublane-align per-batch length

    # stride / shift selection matrices (masks for the padded tail folded in)
    sel2 = _stride_select(T2, T1, CONV_KERNELS[1], CONV_STRIDES[1])
    sel3 = _stride_select(T_pad, T2, CONV_KERNELS[2], CONV_STRIDES[2], valid_out=T3)
    possel = _stride_select(T_pad, T_pad, POS_CONV_KERNEL, 1,
                            offset=-(POS_CONV_KERNEL // 2), valid_in=T3)
    attn_bias = _head_block_bias(NUM_HEADS, T_pad, T3)

    # weight repacking
    w1m = _conv_weight_mat(params["conv_w"][0])
    w2m = _conv_weight_mat(params["conv_w"][1])
    w3m = _conv_weight_mat(params["conv_w"][2])
    vec = _pack_param_vectors(params)
    posw = _pos_conv_blockdiag(params["pos_w"])
    wqkv = jnp.stack([jnp.concatenate([lp["wq"], lp["wk"], lp["wv"]], axis=1)
                      for lp in params["layers"]])               # (L, D, 3D)
    wo = jnp.stack([lp["wo"] for lp in params["layers"]])
    wf1 = jnp.stack([lp["w1"] for lp in params["layers"]])
    wf2 = jnp.stack([lp["w2"] for lp in params["layers"]])
    lm_w = jnp.pad(params["lm_w"], ((0, 0), (0, VOCAB_PAD - VOCAB)))   # lane-dense lm_head

    def rep(shape):
        n = len(shape)
        return pl.BlockSpec(shape, lambda i, _n=n: (0,) * _n)    # resident across grid steps

    out = pl.pallas_call(
        wav2vec_kernel,
        grid=(B,),
        out_shape=jax.ShapeDtypeStruct((B * T_pad, VOCAB_PAD), f32),
        in_specs=[
            pl.BlockSpec((1, T1, patches1.shape[-1]), lambda i: (i, 0, 0)),  # per-batch patches
            rep(sel2.shape), rep(sel3.shape), rep(possel.shape),
            rep(w1m.shape), rep(w2m.shape), rep(w3m.shape),
            rep(vec.shape), rep(params["fp_w"].shape), rep(posw.shape),
            rep(attn_bias.shape),
            rep(wqkv.shape), rep(wo.shape), rep(wf1.shape), rep(wf2.shape),
            rep(lm_w.shape),
        ],
        out_specs=pl.BlockSpec((T_pad, VOCAB_PAD), lambda i: (i, 0)),
        compiler_params=pltpu.CompilerParams(dimension_semantics=("parallel",)),
    )(patches1, sel2, sel3, possel, w1m, w2m, w3m, vec, params["fp_w"], posw,
      attn_bias, wqkv, wo, wf1, wf2, lm_w)

    out = out.reshape(B, T_pad, VOCAB_PAD)
    return out[:, :T3, :VOCAB]


# --------------------------------------------------------------------------
if __name__ == "__main__":
    key = jax.random.PRNGKey(0)
    k_params, k_audio = jax.random.split(key)

    params = init_params(k_params)
    # (B=2, L=400) raw audio -> feature-extractor seq length T=19
    input_values = jax.random.normal(k_audio, (2, 400), jnp.float32)

    fwd = jax.jit(wav2vec_forward)
    logits = fwd(params, input_values)
    jax.block_until_ready(logits)

    assert logits.shape == (2, 19, VOCAB), logits.shape
    assert logits.dtype == jnp.float32
    assert bool(jnp.all(jnp.isfinite(logits)))
    print("KERNEL_OK")
</pallas_src>

<mosaic_0001>
module attributes {stable_mosaic.version = 11 : i64} {
  func.func @wav2vec_kernel(%arg0: i32, %arg1: memref<1x79x10xf32, #tpu.memory_space<vmem>>, %arg2: memref<3x39x79xf32, #tpu.memory_space<vmem>>, %arg3: memref<3x24x39xf32, #tpu.memory_space<vmem>>, %arg4: memref<4x24x24xf32, #tpu.memory_space<vmem>>, %arg5: memref<10x32xf32, #tpu.memory_space<vmem>>, %arg6: memref<96x32xf32, #tpu.memory_space<vmem>>, %arg7: memref<96x32xf32, #tpu.memory_space<vmem>>, %arg8: memref<32x128xf32, #tpu.memory_space<vmem>>, %arg9: memref<32x32xf32, #tpu.memory_space<vmem>>, %arg10: memref<128x32xf32, #tpu.memory_space<vmem>>, %arg11: memref<96x96xf32, #tpu.memory_space<vmem>>, %arg12: memref<2x32x96xf32, #tpu.memory_space<vmem>>, %arg13: memref<2x32x32xf32, #tpu.memory_space<vmem>>, %arg14: memref<2x32x64xf32, #tpu.memory_space<vmem>>, %arg15: memref<2x64x32xf32, #tpu.memory_space<vmem>>, %arg16: memref<32x128xf32, #tpu.memory_space<vmem>>, %arg17: memref<24x128xf32, #tpu.memory_space<vmem>>) attributes {dimension_semantics = [#tpu.dimension_semantics<parallel>], iteration_bounds = array<i64: 2>, scalar_prefetch = 0 : i64, scratch_operands = 0 : i64, tpu.core_type = #tpu.core_type<tc>, window_params = [{transform_indices = @transform_0, window_bounds = array<i64: 1, 79, 10>}, {pipeline_mode = #tpu.pipeline_mode<synchronous>, transform_indices = @transform_1, window_bounds = array<i64: 3, 39, 79>}, {pipeline_mode = #tpu.pipeline_mode<synchronous>, transform_indices = @transform_2, window_bounds = array<i64: 3, 24, 39>}, {pipeline_mode = #tpu.pipeline_mode<synchronous>, transform_indices = @transform_3, window_bounds = array<i64: 4, 24, 24>}, {pipeline_mode = #tpu.pipeline_mode<synchronous>, transform_indices = @transform_4, window_bounds = array<i64: 10, 32>}, {pipeline_mode = #tpu.pipeline_mode<synchronous>, transform_indices = @transform_5, window_bounds = array<i64: 96, 32>}, {pipeline_mode = #tpu.pipeline_mode<synchronous>, transform_indices = @transform_6, window_bounds = array<i64: 96, 32>}, {pipeline_mode = #tpu.pipeline_mode<synchronous>, transform_indices = @transform_7, window_bounds = array<i64: 32, 128>}, {pipeline_mode = #tpu.pipeline_mode<synchronous>, transform_indices = @transform_8, window_bounds = array<i64: 32, 32>}, {pipeline_mode = #tpu.pipeline_mode<synchronous>, transform_indices = @transform_9, window_bounds = array<i64: 128, 32>}, {pipeline_mode = #tpu.pipeline_mode<synchronous>, transform_indices = @transform_10, window_bounds = array<i64: 96, 96>}, {pipeline_mode = #tpu.pipeline_mode<synchronous>, transform_indices = @transform_11, window_bounds = array<i64: 2, 32, 96>}, {pipeline_mode = #tpu.pipeline_mode<synchronous>, transform_indices = @transform_12, window_bounds = array<i64: 2, 32, 32>}, {pipeline_mode = #tpu.pipeline_mode<synchronous>, transform_indices = @transform_13, window_bounds = array<i64: 2, 32, 64>}, {pipeline_mode = #tpu.pipeline_mode<synchronous>, transform_indices = @transform_14, window_bounds = array<i64: 2, 64, 32>}, {pipeline_mode = #tpu.pipeline_mode<synchronous>, transform_indices = @transform_15, window_bounds = array<i64: 32, 128>}, {transform_indices = @transform_16, window_bounds = array<i64: 24, 128>}]} {
    %c0 = arith.constant 0 : index
    %c0_0 = arith.constant 0 : index
    %c0_1 = arith.constant 0 : index
    %0 = vector.load %arg1[%c0, %c0_0, %c0_1] : memref<1x79x10xf32, #tpu.memory_space<vmem>>, vector<1x79x10xf32>
    %1 = vector.shape_cast %0 : vector<1x79x10xf32> to vector<79x10xf32>
    %c0_2 = arith.constant 0 : index
    %c0_3 = arith.constant 0 : index
    %2 = vector.load %arg5[%c0_2, %c0_3] : memref<10x32xf32, #tpu.memory_space<vmem>>, vector<10x32xf32>
    %cst = arith.constant dense<0.000000e+00> : vector<79x32xf32>
    %3 = tpu.matmul %1, %2, %cst {dimension_numbers = #tpu.dot_dimension_numbers<[1], [0], [0], [1], [0, 0, 1, 1], [], []>} : vector<79x10xf32>, vector<10x32xf32>, vector<79x32xf32> -> vector<79x32xf32>
    %cst_4 = arith.constant dense<0.000000e+00> : vector<32xf32>
    %4 = vector.multi_reduction <add>, %3, %cst_4 [0] : vector<79x32xf32> to vector<32xf32>
    %5 = vector.shape_cast %4 : vector<32xf32> to vector<1x32xf32>
    %cst_5 = arith.constant 7.900000e+01 : f32
    %6 = vector.broadcast %cst_5 : f32 to vector<1x32xf32>
    %7 = arith.divf %5, %6 : vector<1x32xf32>
    %8 = vector.broadcast %7 : vector<1x32xf32> to vector<79x32xf32>
    %9 = arith.subf %3, %8 : vector<79x32xf32>
    %10 = arith.mulf %9, %9 : vector<79x32xf32>
    %cst_6 = arith.constant dense<0.000000e+00> : vector<32xf32>
    %11 = vector.multi_reduction <add>, %10, %cst_6 [0] : vector<79x32xf32> to vector<32xf32>
    %12 = vector.shape_cast %11 : vector<32xf32> to vector<1x32xf32>
    %cst_7 = arith.constant 7.900000e+01 : f32
    %13 = vector.broadcast %cst_7 : f32 to vector<1x32xf32>
    %14 = arith.divf %12, %13 : vector<1x32xf32>
    %15 = vector.broadcast %7 : vector<1x32xf32> to vector<79x32xf32>
    %16 = arith.subf %3, %15 : vector<79x32xf32>
    %cst_8 = arith.constant 9.99999974E-6 : f32
    %17 = vector.broadcast %cst_8 : f32 to vector<1x32xf32>
    %18 = arith.addf %14, %17 : vector<1x32xf32>
    %19 = math.rsqrt %18 : vector<1x32xf32>
    %20 = vector.broadcast %19 : vector<1x32xf32> to vector<79x32xf32>
    %21 = arith.mulf %16, %20 : vector<79x32xf32>
    %c0_9 = arith.constant 0 : index
    %c0_10 = arith.constant 0 : index
    %22 = vector.load %arg8[%c0_9, %c0_10] : memref<32x128xf32, #tpu.memory_space<vmem>>, vector<1x32xf32>
    %23 = vector.broadcast %22 : vector<1x32xf32> to vector<79x32xf32>
    %24 = arith.mulf %21, %23 : vector<79x32xf32>
    %c1 = arith.constant 1 : index
    %c0_11 = arith.constant 0 : index
    %25 = vector.load %arg8[%c1, %c0_11] : memref<32x128xf32, #tpu.memory_space<vmem>>, vector<1x32xf32>
    %26 = vector.broadcast %25 : vector<1x32xf32> to vector<79x32xf32>
    %27 = arith.addf %24, %26 : vector<79x32xf32>
    %28 = arith.mulf %27, %27 : vector<79x32xf32>
    %29 = arith.mulf %27, %28 : vector<79x32xf32>
    %cst_12 = arith.constant 4.471500e-02 : f32
    %30 = vector.broadcast %cst_12 : f32 to vector<79x32xf32>
    %31 = arith.mulf %30, %29 : vector<79x32xf32>
    %32 = arith.addf %27, %31 : vector<79x32xf32>
    %cst_13 = arith.constant 0.797884583 : f32
    %33 = vector.broadcast %cst_13 : f32 to vector<79x32xf32>
    %34 = arith.mulf %33, %32 : vector<79x32xf32>
    %35 = math.tanh %34 : vector<79x32xf32>
    %cst_14 = arith.constant 1.000000e+00 : f32
    %36 = vector.broadcast %cst_14 : f32 to vector<79x32xf32>
    %37 = arith.addf %36, %35 : vector<79x32xf32>
    %cst_15 = arith.constant 5.000000e-01 : f32
    %38 = vector.broadcast %cst_15 : f32 to vector<79x32xf32>
    %39 = arith.mulf %38, %37 : vector<79x32xf32>
    %40 = arith.mulf %27, %39 : vector<79x32xf32>
    %c0_16 = arith.constant 0 : index
    %c0_17 = arith.constant 0 : index
    %c0_18 = arith.constant 0 : index
    %41 = vector.load %arg2[%c0_16, %c0_17, %c0_18] : memref<3x39x79xf32, #tpu.memory_space<vmem>>, vector<1x39x79xf32>
    %42 = vector.shape_cast %41 : vector<1x39x79xf32> to vector<39x79xf32>
    %cst_19 = arith.constant dense<0.000000e+00> : vector<39x32xf32>
    %43 = tpu.matmul %42, %40, %cst_19 {dimension_numbers = #tpu.dot_dimension_numbers<[1], [0], [0], [1], [0, 0, 1, 1], [], []>} : vector<39x79xf32>, vector<79x32xf32>, vector<39x32xf32> -> vector<39x32xf32>
    %c1_20 = arith.constant 1 : index
    %c0_21 = arith.constant 0 : index
    %c0_22 = arith.constant 0 : index
    %44 = vector.load %arg2[%c1_20, %c0_21, %c0_22] : memref<3x39x79xf32, #tpu.memory_space<vmem>>, vector<1x39x79xf32>
    %45 = vector.shape_cast %44 : vector<1x39x79xf32> to vector<39x79xf32>
    %cst_23 = arith.constant dense<0.000000e+00> : vector<39x32xf32>
    %46 = tpu.matmul %45, %40, %cst_23 {dimension_numbers = #tpu.dot_dimension_numbers<[1], [0], [0], [1], [0, 0, 1, 1], [], []>} : vector<39x79xf32>, vector<79x32xf32>, vector<39x32xf32> -> vector<39x32xf32>
    %c2 = arith.constant 2 : index
    %c0_24 = arith.constant 0 : index
    %c0_25 = arith.constant 0 : index
    %47 = vector.load %arg2[%c2, %c0_24, %c0_25] : memref<3x39x79xf32, #tpu.memory_space<vmem>>, vector<1x39x79xf32>
    %48 = vector.shape_cast %47 : vector<1x39x79xf32> to vector<39x79xf32>
    %cst_26 = arith.constant dense<0.000000e+00> : vector<39x32xf32>
    %49 = tpu.matmul %48, %40, %cst_26 {dimension_numbers = #tpu.dot_dimension_numbers<[1], [0], [0], [1], [0, 0, 1, 1], [], []>} : vector<39x79xf32>, vector<79x32xf32>, vector<39x32xf32> -> vector<39x32xf32>
    %50 = tpu.concatenate %43, %46, %49 in 1 : vector<39x32xf32>, vector<39x32xf32>, vector<39x32xf32> -> vector<39x96xf32>
    %c0_27 = arith.constant 0 : index
    %c0_28 = arith.constant 0 : index
    %51 = vector.load %arg6[%c0_27, %c0_28] : memref<96x32xf32, #tpu.memory_space<vmem>>, vector<96x32xf32>
    %cst_29 = arith.constant dense<0.000000e+00> : vector<39x32xf32>
    %52 = tpu.matmul %50, %51, %cst_29 {dimension_numbers = #tpu.dot_dimension_numbers<[1], [0], [0], [1], [0, 0, 1, 1], [], []>} : vector<39x96xf32>, vector<96x32xf32>, vector<39x32xf32> -> vector<39x32xf32>
    %53 = arith.mulf %52, %52 : vector<39x32xf32>
    %54 = arith.mulf %52, %53 : vector<39x32xf32>
    %cst_30 = arith.constant 4.471500e-02 : f32
    %55 = vector.broadcast %cst_30 : f32 to vector<39x32xf32>
    %56 = arith.mulf %55, %54 : vector<39x32xf32>
    %57 = arith.addf %52, %56 : vector<39x32xf32>
    %cst_31 = arith.constant 0.797884583 : f32
    %58 = vector.broadcast %cst_31 : f32 to vector<39x32xf32>
    %59 = arith.mulf %58, %57 : vector<39x32xf32>
    %60 = math.tanh %59 : vector<39x32xf32>
    %cst_32 = arith.constant 1.000000e+00 : f32
    %61 = vector.broadcast %cst_32 : f32 to vector<39x32xf32>
    %62 = arith.addf %61, %60 : vector<39x32xf32>
    %cst_33 = arith.constant 5.000000e-01 : f32
    %63 = vector.broadcast %cst_33 : f32 to vector<39x32xf32>
    %64 = arith.mulf %63, %62 : vector<39x32xf32>
    %65 = arith.mulf %52, %64 : vector<39x32xf32>
    %c0_34 = arith.constant 0 : index
    %c0_35 = arith.constant 0 : index
    %c0_36 = arith.constant 0 : index
    %66 = vector.load %arg3[%c0_34, %c0_35, %c0_36] : memref<3x24x39xf32, #tpu.memory_space<vmem>>, vector<1x24x39xf32>
    %67 = vector.shape_cast %66 : vector<1x24x39xf32> to vector<24x39xf32>
    %cst_37 = arith.constant dense<0.000000e+00> : vector<24x32xf32>
    %68 = tpu.matmul %67, %65, %cst_37 {dimension_numbers = #tpu.dot_dimension_numbers<[1], [0], [0], [1], [0, 0, 1, 1], [], []>} : vector<24x39xf32>, vector<39x32xf32>, vector<24x32xf32> -> vector<24x32xf32>
    %c1_38 = arith.constant 1 : index
    %c0_39 = arith.constant 0 : index
    %c0_40 = arith.constant 0 : index
    %69 = vector.load %arg3[%c1_38, %c0_39, %c0_40] : memref<3x24x39xf32, #tpu.memory_space<vmem>>, vector<1x24x39xf32>
    %70 = vector.shape_cast %69 : vector<1x24x39xf32> to vector<24x39xf32>
    %cst_41 = arith.constant dense<0.000000e+00> : vector<24x32xf32>
    %71 = tpu.matmul %70, %65, %cst_41 {dimension_numbers = #tpu.dot_dimension_numbers<[1], [0], [0], [1], [0, 0, 1, 1], [], []>} : vector<24x39xf32>, vector<39x32xf32>, vector<24x32xf32> -> vector<24x32xf32>
    %c2_42 = arith.constant 2 : index
    %c0_43 = arith.constant 0 : index
    %c0_44 = arith.constant 0 : index
    %72 = vector.load %arg3[%c2_42, %c0_43, %c0_44] : memref<3x24x39xf32, #tpu.memory_space<vmem>>, vector<1x24x39xf32>
    %73 = vector.shape_cast %72 : vector<1x24x39xf32> to vector<24x39xf32>
    %cst_45 = arith.constant dense<0.000000e+00> : vector<24x32xf32>
    %74 = tpu.matmul %73, %65, %cst_45 {dimension_numbers = #tpu.dot_dimension_numbers<[1], [0], [0], [1], [0, 0, 1, 1], [], []>} : vector<24x39xf32>, vector<39x32xf32>, vector<24x32xf32> -> vector<24x32xf32>
    %75 = tpu.concatenate %68, %71, %74 in 1 : vector<24x32xf32>, vector<24x32xf32>, vector<24x32xf32> -> vector<24x96xf32>
    %c0_46 = arith.constant 0 : index
    %c0_47 = arith.constant 0 : index
    %76 = vector.load %arg7[%c0_46, %c0_47] : memref<96x32xf32, #tpu.memory_space<vmem>>, vector<96x32xf32>
    %cst_48 = arith.constant dense<0.000000e+00> : vector<24x32xf32>
    %77 = tpu.matmul %75, %76, %cst_48 {dimension_numbers = #tpu.dot_dimension_numbers<[1], [0], [0], [1], [0, 0, 1, 1], [], []>} : vector<24x96xf32>, vector<96x32xf32>, vector<24x32xf32> -> vector<24x32xf32>
    %78 = arith.mulf %77, %77 : vector<24x32xf32>
    %79 = arith.mulf %77, %78 : vector<24x32xf32>
    %cst_49 = arith.constant 4.471500e-02 : f32
    %80 = vector.broadcast %cst_49 : f32 to vector<24x32xf32>
    %81 = arith.mulf %80, %79 : vector<24x32xf32>
    %82 = arith.addf %77, %81 : vector<24x32xf32>
    %cst_50 = arith.constant 0.797884583 : f32
    %83 = vector.broadcast %cst_50 : f32 to vector<24x32xf32>
    %84 = arith.mulf %83, %82 : vector<24x32xf32>
    %85 = math.tanh %84 : vector<24x32xf32>
    %cst_51 = arith.constant 1.000000e+00 : f32
    %86 = vector.broadcast %cst_51 : f32 to vector<24x32xf32>
    %87 = arith.addf %86, %85 : vector<24x32xf32>
    %cst_52 = arith.constant 5.000000e-01 : f32
    %88 = vector.broadcast %cst_52 : f32 to vector<24x32xf32>
    %89 = arith.mulf %88, %87 : vector<24x32xf32>
    %90 = arith.mulf %77, %89 : vector<24x32xf32>
    %cst_53 = arith.constant dense<0.000000e+00> : vector<24xf32>
    %91 = vector.multi_reduction <add>, %90, %cst_53 [1] : vector<24x32xf32> to vector<24xf32>
    %92 = vector.shape_cast %91 : vector<24xf32> to vector<24x1xf32>
    %cst_54 = arith.constant 3.200000e+01 : f32
    %93 = vector.broadcast %cst_54 : f32 to vector<24x1xf32>
    %94 = arith.divf %92, %93 : vector<24x1xf32>
    %95 = vector.broadcast %94 : vector<24x1xf32> to vector<24x32xf32>
    %96 = arith.subf %90, %95 : vector<24x32xf32>
    %97 = arith.mulf %96, %96 : vector<24x32xf32>
    %cst_55 = arith.constant dense<0.000000e+00> : vector<24xf32>
    %98 = vector.multi_reduction <add>, %97, %cst_55 [1] : vector<24x32xf32> to vector<24xf32>
    %99 = vector.shape_cast %98 : vector<24xf32> to vector<24x1xf32>
    %cst_56 = arith.constant 3.200000e+01 : f32
    %100 = vector.broadcast %cst_56 : f32 to vector<24x1xf32>
    %101 = arith.divf %99, %100 : vector<24x1xf32>
    %102 = vector.broadcast %94 : vector<24x1xf32> to vector<24x32xf32>
    %103 = arith.subf %90, %102 : vector<24x32xf32>
    %cst_57 = arith.constant 9.99999974E-6 : f32
    %104 = vector.broadcast %cst_57 : f32 to vector<24x1xf32>
    %105 = arith.addf %101, %104 : vector<24x1xf32>
    %106 = math.rsqrt %105 : vector<24x1xf32>
    %107 = vector.broadcast %106 : vector<24x1xf32> to vector<24x32xf32>
    %108 = arith.mulf %103, %107 : vector<24x32xf32>
    %c2_58 = arith.constant 2 : index
    %c0_59 = arith.constant 0 : index
    %109 = vector.load %arg8[%c2_58, %c0_59] : memref<32x128xf32, #tpu.memory_space<vmem>>, vector<1x32xf32>
    %110 = vector.broadcast %109 : vector<1x32xf32> to vector<24x32xf32>
    %111 = arith.mulf %108, %110 : vector<24x32xf32>
    %c3 = arith.constant 3 : index
    %c0_60 = arith.constant 0 : index
    %112 = vector.load %arg8[%c3, %c0_60] : memref<32x128xf32, #tpu.memory_space<vmem>>, vector<1x32xf32>
    %113 = vector.broadcast %112 : vector<1x32xf32> to vector<24x32xf32>
    %114 = arith.addf %111, %113 : vector<24x32xf32>
    %c0_61 = arith.constant 0 : index
    %c0_62 = arith.constant 0 : index
    %115 = vector.load %arg9[%c0_61, %c0_62] : memref<32x32xf32, #tpu.memory_space<vmem>>, vector<32x32xf32>
    %cst_63 = arith.constant dense<0.000000e+00> : vector<24x32xf32>
    %116 = tpu.matmul %114, %115, %cst_63 {dimension_numbers = #tpu.dot_dimension_numbers<[1], [0], [0], [1], [0, 0, 1, 1], [], []>} : vector<24x32xf32>, vector<32x32xf32>, vector<24x32xf32> -> vector<24x32xf32>
    %c4 = arith.constant 4 : index
    %c0_64 = arith.constant 0 : index
    %117 = vector.load %arg8[%c4, %c0_64] : memref<32x128xf32, #tpu.memory_space<vmem>>, vector<1x32xf32>
    %118 = vector.broadcast %117 : vector<1x32xf32> to vector<24x32xf32>
    %119 = arith.addf %116, %118 : vector<24x32xf32>
    %c0_65 = arith.constant 0 : index
    %c0_66 = arith.constant 0 : index
    %c0_67 = arith.constant 0 : index
    %120 = vector.load %arg4[%c0_65, %c0_66, %c0_67] : memref<4x24x24xf32, #tpu.memory_space<vmem>>, vector<1x24x24xf32>
    %121 = vector.shape_cast %120 : vector<1x24x24xf32> to vector<24x24xf32>
    %cst_68 = arith.constant dense<0.000000e+00> : vector<24x32xf32>
    %122 = tpu.matmul %121, %119, %cst_68 {dimension_numbers = #tpu.dot_dimension_numbers<[1], [0], [0], [1], [0, 0, 1, 1], [], []>} : vector<24x24xf32>, vector<24x32xf32>, vector<24x32xf32> -> vector<24x32xf32>
    %c1_69 = arith.constant 1 : index
    %c0_70 = arith.constant 0 : index
    %c0_71 = arith.constant 0 : index
    %123 = vector.load %arg4[%c1_69, %c0_70, %c0_71] : memref<4x24x24xf32, #tpu.memory_space<vmem>>, vector<1x24x24xf32>
    %124 = vector.shape_cast %123 : vector<1x24x24xf32> to vector<24x24xf32>
    %cst_72 = arith.constant dense<0.000000e+00> : vector<24x32xf32>
    %125 = tpu.matmul %124, %119, %cst_72 {dimension_numbers = #tpu.dot_dimension_numbers<[1], [0], [0], [1], [0, 0, 1, 1], [], []>} : vector<24x24xf32>, vector<24x32xf32>, vector<24x32xf32> -> vector<24x32xf32>
    %c2_73 = arith.constant 2 : index
    %c0_74 = arith.constant 0 : index
    %c0_75 = arith.constant 0 : index
    %126 = vector.load %arg4[%c2_73, %c0_74, %c0_75] : memref<4x24x24xf32, #tpu.memory_space<vmem>>, vector<1x24x24xf32>
    %127 = vector.shape_cast %126 : vector<1x24x24xf32> to vector<24x24xf32>
    %cst_76 = arith.constant dense<0.000000e+00> : vector<24x32xf32>
    %128 = tpu.matmul %127, %119, %cst_76 {dimension_numbers = #tpu.dot_dimension_numbers<[1], [0], [0], [1], [0, 0, 1, 1], [], []>} : vector<24x24xf32>, vector<24x32xf32>, vector<24x32xf32> -> vector<24x32xf32>
    %c3_77 = arith.constant 3 : index
    %c0_78 = arith.constant 0 : index
    %c0_79 = arith.constant 0 : index
    %129 = vector.load %arg4[%c3_77, %c0_78, %c0_79] : memref<4x24x24xf32, #tpu.memory_space<vmem>>, vector<1x24x24xf32>
    %130 = vector.shape_cast %129 : vector<1x24x24xf32> to vector<24x24xf32>
    %cst_80 = arith.constant dense<0.000000e+00> : vector<24x32xf32>
    %131 = tpu.matmul %130, %119, %cst_80 {dimension_numbers = #tpu.dot_dimension_numbers<[1], [0], [0], [1], [0, 0, 1, 1], [], []>} : vector<24x24xf32>, vector<24x32xf32>, vector<24x32xf32> -> vector<24x32xf32>
    %132 = tpu.concatenate %122, %125, %128, %131 in 1 : vector<24x32xf32>, vector<24x32xf32>, vector<24x32xf32>, vector<24x32xf32> -> vector<24x128xf32>
    %c0_81 = arith.constant 0 : index
    %c0_82 = arith.constant 0 : index
    %133 = vector.load %arg10[%c0_81, %c0_82] : memref<128x32xf32, #tpu.memory_space<vmem>>, vector<128x32xf32>
    %cst_83 = arith.constant dense<0.000000e+00> : vector<24x32xf32>
    %134 = tpu.matmul %132, %133, %cst_83 {dimension_numbers = #tpu.dot_dimension_numbers<[1], [0], [0], [1], [0, 0, 1, 1], [], []>} : vector<24x128xf32>, vector<128x32xf32>, vector<24x32xf32> -> vector<24x32xf32>
    %c5 = arith.constant 5 : index
    %c0_84 = arith.constant 0 : index
    %135 = vector.load %arg8[%c5, %c0_84] : memref<32x128xf32, #tpu.memory_space<vmem>>, vector<1x32xf32>
    %136 = vector.broadcast %135 : vector<1x32xf32> to vector<24x32xf32>
    %137 = arith.addf %134, %136 : vector<24x32xf32>
    %138 = arith.mulf %137, %137 : vector<24x32xf32>
    %139 = arith.mulf %137, %138 : vector<24x32xf32>
    %cst_85 = arith.constant 4.471500e-02 : f32
    %140 = vector.broadcast %cst_85 : f32 to vector<24x32xf32>
    %141 = arith.mulf %140, %139 : vector<24x32xf32>
    %142 = arith.addf %137, %141 : vector<24x32xf32>
    %cst_86 = arith.constant 0.797884583 : f32
    %143 = vector.broadcast %cst_86 : f32 to vector<24x32xf32>
    %144 = arith.mulf %143, %142 : vector<24x32xf32>
    %145 = math.tanh %144 : vector<24x32xf32>
    %cst_87 = arith.constant 1.000000e+00 : f32
    %146 = vector.broadcast %cst_87 : f32 to vector<24x32xf32>
    %147 = arith.addf %146, %145 : vector<24x32xf32>
    %cst_88 = arith.constant 5.000000e-01 : f32
    %148 = vector.broadcast %cst_88 : f32 to vector<24x32xf32>
    %149 = arith.mulf %148, %147 : vector<24x32xf32>
    %150 = arith.mulf %137, %149 : vector<24x32xf32>
    %151 = arith.addf %119, %150 : vector<24x32xf32>
    %cst_89 = arith.constant dense<0.000000e+00> : vector<24xf32>
    %152 = vector.multi_reduction <add>, %151, %cst_89 [1] : vector<24x32xf32> to vector<24xf32>
    %153 = vector.shape_cast %152 : vector<24xf32> to vector<24x1xf32>
    %cst_90 = arith.constant 3.200000e+01 : f32
    %154 = vector.broadcast %cst_90 : f32 to vector<24x1xf32>
    %155 = arith.divf %153, %154 : vector<24x1xf32>
    %156 = vector.broadcast %155 : vector<24x1xf32> to vector<24x32xf32>
    %157 = arith.subf %151, %156 : vector<24x32xf32>
    %158 = arith.mulf %157, %157 : vector<24x32xf32>
    %cst_91 = arith.constant dense<0.000000e+00> : vector<24xf32>
    %159 = vector.multi_reduction <add>, %158, %cst_91 [1] : vector<24x32xf32> to vector<24xf32>
    %160 = vector.shape_cast %159 : vector<24xf32> to vector<24x1xf32>
    %cst_92 = arith.constant 3.200000e+01 : f32
    %161 = vector.broadcast %cst_92 : f32 to vector<24x1xf32>
    %162 = arith.divf %160, %161 : vector<24x1xf32>
    %163 = vector.broadcast %155 : vector<24x1xf32> to vector<24x32xf32>
    %164 = arith.subf %151, %163 : vector<24x32xf32>
    %cst_93 = arith.constant 9.99999974E-6 : f32
    %165 = vector.broadcast %cst_93 : f32 to vector<24x1xf32>
    %166 = arith.addf %162, %165 : vector<24x1xf32>
    %167 = math.rsqrt %166 : vector<24x1xf32>
    %168 = vector.broadcast %167 : vector<24x1xf32> to vector<24x32xf32>
    %169 = arith.mulf %164, %168 : vector<24x32xf32>
    %c6 = arith.constant 6 : index
    %c0_94 = arith.constant 0 : index
    %170 = vector.load %arg8[%c6, %c0_94] : memref<32x128xf32, #tpu.memory_space<vmem>>, vector<1x32xf32>
    %171 = vector.broadcast %170 : vector<1x32xf32> to vector<24x32xf32>
    %172 = arith.mulf %169, %171 : vector<24x32xf32>
    %c7 = arith.constant 7 : index
    %c0_95 = arith.constant 0 : index
    %173 = vector.load %arg8[%c7, %c0_95] : memref<32x128xf32, #tpu.memory_space<vmem>>, vector<1x32xf32>
    %174 = vector.broadcast %173 : vector<1x32xf32> to vector<24x32xf32>
    %175 = arith.addf %172, %174 : vector<24x32xf32>
    %c0_96 = arith.constant 0 : index
    %c0_97 = arith.constant 0 : index
    %176 = vector.load %arg11[%c0_96, %c0_97] : memref<96x96xf32, #tpu.memory_space<vmem>>, vector<96x96xf32>
    %c0_98 = arith.constant 0 : index
    %c0_99 = arith.constant 0 : index
    %c0_100 = arith.constant 0 : index
    %177 = vector.load %arg12[%c0_98, %c0_99, %c0_100] : memref<2x32x96xf32, #tpu.memory_space<vmem>>, vector<1x32x96xf32>
    %178 = vector.shape_cast %177 : vector<1x32x96xf32> to vector<32x96xf32>
    %cst_101 = arith.constant dense<0.000000e+00> : vector<24x96xf32>
    %179 = tpu.matmul %175, %178, %cst_101 {dimension_numbers = #tpu.dot_dimension_numbers<[1], [0], [0], [1], [0, 0, 1, 1], [], []>} : vector<24x32xf32>, vector<32x96xf32>, vector<24x96xf32> -> vector<24x96xf32>
    %c9 = arith.constant 9 : index
    %c0_102 = arith.constant 0 : index
    %180 = vector.load %arg8[%c9, %c0_102] : memref<32x128xf32, #tpu.memory_space<vmem>>, vector<1x96xf32>
    %181 = vector.broadcast %180 : vector<1x96xf32> to vector<24x96xf32>
    %182 = arith.addf %179, %181 : vector<24x96xf32>
    %183 = vector.extract_strided_slice %182 {offsets = [0, 0], sizes = [24, 8], strides = [1, 1]} : vector<24x96xf32> to vector<24x8xf32>
    %184 = vector.extract_strided_slice %182 {offsets = [0, 8], sizes = [24, 8], strides = [1, 1]} : vector<24x96xf32> to vector<24x8xf32>
    %185 = vector.extract_strided_slice %182 {offsets = [0, 16], sizes = [24, 8], strides = [1, 1]} : vector<24x96xf32> to vector<24x8xf32>
    %186 = vector.extract_strided_slice %182 {offsets = [0, 24], sizes = [24, 8], strides = [1, 1]} : vector<24x96xf32> to vector<24x8xf32>
    %187 = tpu.concatenate %183, %184, %185, %186 in 0 : vector<24x8xf32>, vector<24x8xf32>, vector<24x8xf32>, vector<24x8xf32> -> vector<96x8xf32>
    %cst_103 = arith.constant 0.353553385 : f32
    %188 = vector.broadcast %cst_103 : f32 to vector<96x8xf32>
    %189 = arith.mulf %187, %188 : vector<96x8xf32>
    %190 = vector.extract_strided_slice %182 {offsets = [0, 32], sizes = [24, 8], strides = [1, 1]} : vector<24x96xf32> to vector<24x8xf32>
    %191 = vector.extract_strided_slice %182 {offsets = [0, 40], sizes = [24, 8], strides = [1, 1]} : vector<24x96xf32> to vector<24x8xf32>
    %192 = vector.extract_strided_slice %182 {offsets = [0, 48], sizes = [24, 8], strides = [1, 1]} : vector<24x96xf32> to vector<24x8xf32>
    %193 = vector.extract_strided_slice %182 {offsets = [0, 56], sizes = [24, 8], strides = [1, 1]} : vector<24x96xf32> to vector<24x8xf32>
    %194 = tpu.concatenate %190, %191, %192, %193 in 0 : vector<24x8xf32>, vector<24x8xf32>, vector<24x8xf32>, vector<24x8xf32> -> vector<96x8xf32>
    %195 = vector.extract_strided_slice %182 {offsets = [0, 64], sizes = [24, 8], strides = [1, 1]} : vector<24x96xf32> to vector<24x8xf32>
    %196 = vector.extract_strided_slice %182 {offsets = [0, 72], sizes = [24, 8], strides = [1, 1]} : vector<24x96xf32> to vector<24x8xf32>
    %197 = vector.extract_strided_slice %182 {offsets = [0, 80], sizes = [24, 8], strides = [1, 1]} : vector<24x96xf32> to vector<24x8xf32>
    %198 = vector.extract_strided_slice %182 {offsets = [0, 88], sizes = [24, 8], strides = [1, 1]} : vector<24x96xf32> to vector<24x8xf32>
    %199 = tpu.concatenate %195, %196, %197, %198 in 0 : vector<24x8xf32>, vector<24x8xf32>, vector<24x8xf32>, vector<24x8xf32> -> vector<96x8xf32>
    %cst_104 = arith.constant dense<0.000000e+00> : vector<96x96xf32>
    %200 = tpu.matmul %189, %194, %cst_104 {dimension_numbers = #tpu.dot_dimension_numbers<[1], [1], [0], [0], [0, 0, 1, 0], [], []>} : vector<96x8xf32>, vector<96x8xf32>, vector<96x96xf32> -> vector<96x96xf32>
    %201 = arith.addf %200, %176 : vector<96x96xf32>
    %cst_105 = arith.constant dense<0xFF800000> : vector<96xf32>
    %202 = vector.multi_reduction <maximumf>, %201, %cst_105 [1] : vector<96x96xf32> to vector<96xf32>
    %203 = vector.shape_cast %202 : vector<96xf32> to vector<96x1xf32>
    %204 = vector.broadcast %203 : vector<96x1xf32> to vector<96x96xf32>
    %205 = arith.subf %201, %204 : vector<96x96xf32>
    %206 = math.exp %205 : vector<96x96xf32>
    %cst_106 = arith.constant dense<0.000000e+00> : vector<96xf32>
    %207 = vector.multi_reduction <add>, %206, %cst_106 [1] : vector<96x96xf32> to vector<96xf32>
    %208 = vector.shape_cast %207 : vector<96xf32> to vector<96x1xf32>
    %209 = tpu.reciprocal %208 {approx = true} : vector<96x1xf32> -> vector<96x1xf32>
    %210 = vector.broadcast %209 : vector<96x1xf32> to vector<96x96xf32>
    %211 = arith.mulf %206, %210 : vector<96x96xf32>
    %cst_107 = arith.constant dense<0.000000e+00> : vector<96x8xf32>
    %212 = tpu.matmul %211, %199, %cst_107 {dimension_numbers = #tpu.dot_dimension_numbers<[1], [0], [0], [1], [0, 0, 1, 1], [], []>} : vector<96x96xf32>, vector<96x8xf32>, vector<96x8xf32> -> vector<96x8xf32>
    %213 = vector.extract_strided_slice %212 {offsets = [0, 0], sizes = [24, 8], strides = [1, 1]} : vector<96x8xf32> to vector<24x8xf32>
    %214 = vector.extract_strided_slice %212 {offsets = [24, 0], sizes = [24, 8], strides = [1, 1]} : vector<96x8xf32> to vector<24x8xf32>
    %215 = vector.extract_strided_slice %212 {offsets = [48, 0], sizes = [24, 8], strides = [1, 1]} : vector<96x8xf32> to vector<24x8xf32>
    %216 = vector.extract_strided_slice %212 {offsets = [72, 0], sizes = [24, 8], strides = [1, 1]} : vector<96x8xf32> to vector<24x8xf32>
    %217 = tpu.concatenate %213, %214, %215, %216 in 1 : vector<24x8xf32>, vector<24x8xf32>, vector<24x8xf32>, vector<24x8xf32> -> vector<24x32xf32>
    %c0_108 = arith.constant 0 : index
    %c0_109 = arith.constant 0 : index
    %c0_110 = arith.constant 0 : index
    %218 = vector.load %arg13[%c0_108, %c0_109, %c0_110] : memref<2x32x32xf32, #tpu.memory_space<vmem>>, vector<1x32x32xf32>
    %219 = vector.shape_cast %218 : vector<1x32x32xf32> to vector<32x32xf32>
    %cst_111 = arith.constant dense<0.000000e+00> : vector<24x32xf32>
    %220 = tpu.matmul %217, %219, %cst_111 {dimension_numbers = #tpu.dot_dimension_numbers<[1], [0], [0], [1], [0, 0, 1, 1], [], []>} : vector<24x32xf32>, vector<32x32xf32>, vector<24x32xf32> -> vector<24x32xf32>
    %c10 = arith.constant 10 : index
    %c0_112 = arith.constant 0 : index
    %221 = vector.load %arg8[%c10, %c0_112] : memref<32x128xf32, #tpu.memory_space<vmem>>, vector<1x32xf32>
    %222 = vector.broadcast %221 : vector<1x32xf32> to vector<24x32xf32>
    %223 = arith.addf %220, %222 : vector<24x32xf32>
    %224 = arith.addf %175, %223 : vector<24x32xf32>
    %cst_113 = arith.constant dense<0.000000e+00> : vector<24xf32>
    %225 = vector.multi_reduction <add>, %224, %cst_113 [1] : vector<24x32xf32> to vector<24xf32>
    %226 = vector.shape_cast %225 : vector<24xf32> to vector<24x1xf32>
    %cst_114 = arith.constant 3.200000e+01 : f32
    %227 = vector.broadcast %cst_114 : f32 to vector<24x1xf32>
    %228 = arith.divf %226, %227 : vector<24x1xf32>
    %229 = vector.broadcast %228 : vector<24x1xf32> to vector<24x32xf32>
    %230 = arith.subf %224, %229 : vector<24x32xf32>
    %231 = arith.mulf %230, %230 : vector<24x32xf32>
    %cst_115 = arith.constant dense<0.000000e+00> : vector<24xf32>
    %232 = vector.multi_reduction <add>, %231, %cst_115 [1] : vector<24x32xf32> to vector<24xf32>
    %233 = vector.shape_cast %232 : vector<24xf32> to vector<24x1xf32>
    %cst_116 = arith.constant 3.200000e+01 : f32
    %234 = vector.broadcast %cst_116 : f32 to vector<24x1xf32>
    %235 = arith.divf %233, %234 : vector<24x1xf32>
    %236 = vector.broadcast %228 : vector<24x1xf32> to vector<24x32xf32>
    %237 = arith.subf %224, %236 : vector<24x32xf32>
    %cst_117 = arith.constant 9.99999974E-6 : f32
    %238 = vector.broadcast %cst_117 : f32 to vector<24x1xf32>
    %239 = arith.addf %235, %238 : vector<24x1xf32>
    %240 = math.rsqrt %239 : vector<24x1xf32>
    %241 = vector.broadcast %240 : vector<24x1xf32> to vector<24x32xf32>
    %242 = arith.mulf %237, %241 : vector<24x32xf32>
    %c11 = arith.constant 11 : index
    %c0_118 = arith.constant 0 : index
    %243 = vector.load %arg8[%c11, %c0_118] : memref<32x128xf32, #tpu.memory_space<vmem>>, vector<1x32xf32>
    %244 = vector.broadcast %243 : vector<1x32xf32> to vector<24x32xf32>
    %245 = arith.mulf %242, %244 : vector<24x32xf32>
    %c12 = arith.constant 12 : index
    %c0_119 = arith.constant 0 : index
    %246 = vector.load %arg8[%c12, %c0_119] : memref<32x128xf32, #tpu.memory_space<vmem>>, vector<1x32xf32>
    %247 = vector.broadcast %246 : vector<1x32xf32> to vector<24x32xf32>
    %248 = arith.addf %245, %247 : vector<24x32xf32>
    %c0_120 = arith.constant 0 : index
    %c0_121 = arith.constant 0 : index
    %c0_122 = arith.constant 0 : index
    %249 = vector.load %arg14[%c0_120, %c0_121, %c0_122] : memref<2x32x64xf32, #tpu.memory_space<vmem>>, vector<1x32x64xf32>
    %250 = vector.shape_cast %249 : vector<1x32x64xf32> to vector<32x64xf32>
    %cst_123 = arith.constant dense<0.000000e+00> : vector<24x64xf32>
    %251 = tpu.matmul %248, %250, %cst_123 {dimension_numbers = #tpu.dot_dimension_numbers<[1], [0], [0], [1], [0, 0, 1, 1], [], []>} : vector<24x32xf32>, vector<32x64xf32>, vector<24x64xf32> -> vector<24x64xf32>
    %c13 = arith.constant 13 : index
    %c0_124 = arith.constant 0 : index
    %252 = vector.load %arg8[%c13, %c0_124] : memref<32x128xf32, #tpu.memory_space<vmem>>, vector<1x64xf32>
    %253 = vector.broadcast %252 : vector<1x64xf32> to vector<24x64xf32>
    %254 = arith.addf %251, %253 : vector<24x64xf32>
    %255 = arith.mulf %254, %254 : vector<24x64xf32>
    %256 = arith.mulf %254, %255 : vector<24x64xf32>
    %cst_125 = arith.constant 4.471500e-02 : f32
    %257 = vector.broadcast %cst_125 : f32 to vector<24x64xf32>
    %258 = arith.mulf %257, %256 : vector<24x64xf32>
    %259 = arith.addf %254, %258 : vector<24x64xf32>
    %cst_126 = arith.constant 0.797884583 : f32
    %260 = vector.broadcast %cst_126 : f32 to vector<24x64xf32>
    %261 = arith.mulf %260, %259 : vector<24x64xf32>
    %262 = math.tanh %261 : vector<24x64xf32>
    %cst_127 = arith.constant 1.000000e+00 : f32
    %263 = vector.broadcast %cst_127 : f32 to vector<24x64xf32>
    %264 = arith.addf %263, %262 : vector<24x64xf32>
    %cst_128 = arith.constant 5.000000e-01 : f32
    %265 = vector.broadcast %cst_128 : f32 to vector<24x64xf32>
    %266 = arith.mulf %265, %264 : vector<24x64xf32>
    %267 = arith.mulf %254, %266 : vector<24x64xf32>
    %c0_129 = arith.constant 0 : index
    %c0_130 = arith.constant 0 : index
    %c0_131 = arith.constant 0 : index
    %268 = vector.load %arg15[%c0_129, %c0_130, %c0_131] : memref<2x64x32xf32, #tpu.memory_space<vmem>>, vector<1x64x32xf32>
    %269 = vector.shape_cast %268 : vector<1x64x32xf32> to vector<64x32xf32>
    %cst_132 = arith.constant dense<0.000000e+00> : vector<24x32xf32>
    %270 = tpu.matmul %267, %269, %cst_132 {dimension_numbers = #tpu.dot_dimension_numbers<[1], [0], [0], [1], [0, 0, 1, 1], [], []>} : vector<24x64xf32>, vector<64x32xf32>, vector<24x32xf32> -> vector<24x32xf32>
    %c14 = arith.constant 14 : index
    %c0_133 = arith.constant 0 : index
    %271 = vector.load %arg8[%c14, %c0_133] : memref<32x128xf32, #tpu.memory_space<vmem>>, vector<1x32xf32>
    %272 = vector.broadcast %271 : vector<1x32xf32> to vector<24x32xf32>
    %273 = arith.addf %270, %272 : vector<24x32xf32>
    %274 = arith.addf %248, %273 : vector<24x32xf32>
    %cst_134 = arith.constant dense<0.000000e+00> : vector<24xf32>
    %275 = vector.multi_reduction <add>, %274, %cst_134 [1] : vector<24x32xf32> to vector<24xf32>
    %276 = vector.shape_cast %275 : vector<24xf32> to vector<24x1xf32>
    %cst_135 = arith.constant 3.200000e+01 : f32
    %277 = vector.broadcast %cst_135 : f32 to vector<24x1xf32>
    %278 = arith.divf %276, %277 : vector<24x1xf32>
    %279 = vector.broadcast %278 : vector<24x1xf32> to vector<24x32xf32>
    %280 = arith.subf %274, %279 : vector<24x32xf32>
    %281 = arith.mulf %280, %280 : vector<24x32xf32>
    %cst_136 = arith.constant dense<0.000000e+00> : vector<24xf32>
    %282 = vector.multi_reduction <add>, %281, %cst_136 [1] : vector<24x32xf32> to vector<24xf32>
    %283 = vector.shape_cast %282 : vector<24xf32> to vector<24x1xf32>
    %cst_137 = arith.constant 3.200000e+01 : f32
    %284 = vector.broadcast %cst_137 : f32 to vector<24x1xf32>
    %285 = arith.divf %283, %284 : vector<24x1xf32>
    %286 = vector.broadcast %278 : vector<24x1xf32> to vector<24x32xf32>
    %287 = arith.subf %274, %286 : vector<24x32xf32>
    %cst_138 = arith.constant 9.99999974E-6 : f32
    %288 = vector.broadcast %cst_138 : f32 to vector<24x1xf32>
    %289 = arith.addf %285, %288 : vector<24x1xf32>
    %290 = math.rsqrt %289 : vector<24x1xf32>
    %291 = vector.broadcast %290 : vector<24x1xf32> to vector<24x32xf32>
    %292 = arith.mulf %287, %291 : vector<24x32xf32>
    %c15 = arith.constant 15 : index
    %c0_139 = arith.constant 0 : index
    %293 = vector.load %arg8[%c15, %c0_139] : memref<32x128xf32, #tpu.memory_space<vmem>>, vector<1x32xf32>
    %294 = vector.broadcast %293 : vector<1x32xf32> to vector<24x32xf32>
    %295 = arith.mulf %292, %294 : vector<24x32xf32>
    %c16 = arith.constant 16 : index
    %c0_140 = arith.constant 0 : index
    %296 = vector.load %arg8[%c16, %c0_140] : memref<32x128xf32, #tpu.memory_space<vmem>>, vector<1x32xf32>
    %297 = vector.broadcast %296 : vector<1x32xf32> to vector<24x32xf32>
    %298 = arith.addf %295, %297 : vector<24x32xf32>
    %c1_141 = arith.constant 1 : index
    %c0_142 = arith.constant 0 : index
    %c0_143 = arith.constant 0 : index
    %299 = vector.load %arg12[%c1_141, %c0_142, %c0_143] : memref<2x32x96xf32, #tpu.memory_space<vmem>>, vector<1x32x96xf32>
    %300 = vector.shape_cast %299 : vector<1x32x96xf32> to vector<32x96xf32>
    %cst_144 = arith.constant dense<0.000000e+00> : vector<24x96xf32>
    %301 = tpu.matmul %298, %300, %cst_144 {dimension_numbers = #tpu.dot_dimension_numbers<[1], [0], [0], [1], [0, 0, 1, 1], [], []>} : vector<24x32xf32>, vector<32x96xf32>, vector<24x96xf32> -> vector<24x96xf32>
    %c17 = arith.constant 17 : index
    %c0_145 = arith.constant 0 : index
    %302 = vector.load %arg8[%c17, %c0_145] : memref<32x128xf32, #tpu.memory_space<vmem>>, vector<1x96xf32>
    %303 = vector.broadcast %302 : vector<1x96xf32> to vector<24x96xf32>
    %304 = arith.addf %301, %303 : vector<24x96xf32>
    %305 = vector.extract_strided_slice %304 {offsets = [0, 0], sizes = [24, 8], strides = [1, 1]} : vector<24x96xf32> to vector<24x8xf32>
    %306 = vector.extract_strided_slice %304 {offsets = [0, 8], sizes = [24, 8], strides = [1, 1]} : vector<24x96xf32> to vector<24x8xf32>
    %307 = vector.extract_strided_slice %304 {offsets = [0, 16], sizes = [24, 8], strides = [1, 1]} : vector<24x96xf32> to vector<24x8xf32>
    %308 = vector.extract_strided_slice %304 {offsets = [0, 24], sizes = [24, 8], strides = [1, 1]} : vector<24x96xf32> to vector<24x8xf32>
    %309 = tpu.concatenate %305, %306, %307, %308 in 0 : vector<24x8xf32>, vector<24x8xf32>, vector<24x8xf32>, vector<24x8xf32> -> vector<96x8xf32>
    %cst_146 = arith.constant 0.353553385 : f32
    %310 = vector.broadcast %cst_146 : f32 to vector<96x8xf32>
    %311 = arith.mulf %309, %310 : vector<96x8xf32>
    %312 = vector.extract_strided_slice %304 {offsets = [0, 32], sizes = [24, 8], strides = [1, 1]} : vector<24x96xf32> to vector<24x8xf32>
    %313 = vector.extract_strided_slice %304 {offsets = [0, 40], sizes = [24, 8], strides = [1, 1]} : vector<24x96xf32> to vector<24x8xf32>
    %314 = vector.extract_strided_slice %304 {offsets = [0, 48], sizes = [24, 8], strides = [1, 1]} : vector<24x96xf32> to vector<24x8xf32>
    %315 = vector.extract_strided_slice %304 {offsets = [0, 56], sizes = [24, 8], strides = [1, 1]} : vector<24x96xf32> to vector<24x8xf32>
    %316 = tpu.concatenate %312, %313, %314, %315 in 0 : vector<24x8xf32>, vector<24x8xf32>, vector<24x8xf32>, vector<24x8xf32> -> vector<96x8xf32>
    %317 = vector.extract_strided_slice %304 {offsets = [0, 64], sizes = [24, 8], strides = [1, 1]} : vector<24x96xf32> to vector<24x8xf32>
    %318 = vector.extract_strided_slice %304 {offsets = [0, 72], sizes = [24, 8], strides = [1, 1]} : vector<24x96xf32> to vector<24x8xf32>
    %319 = vector.extract_strided_slice %304 {offsets = [0, 80], sizes = [24, 8], strides = [1, 1]} : vector<24x96xf32> to vector<24x8xf32>
    %320 = vector.extract_strided_slice %304 {offsets = [0, 88], sizes = [24, 8], strides = [1, 1]} : vector<24x96xf32> to vector<24x8xf32>
    %321 = tpu.concatenate %317, %318, %319, %320 in 0 : vector<24x8xf32>, vector<24x8xf32>, vector<24x8xf32>, vector<24x8xf32> -> vector<96x8xf32>
    %cst_147 = arith.constant dense<0.000000e+00> : vector<96x96xf32>
    %322 = tpu.matmul %311, %316, %cst_147 {dimension_numbers = #tpu.dot_dimension_numbers<[1], [1], [0], [0], [0, 0, 1, 0], [], []>} : vector<96x8xf32>, vector<96x8xf32>, vector<96x96xf32> -> vector<96x96xf32>
    %323 = arith.addf %322, %176 : vector<96x96xf32>
    %cst_148 = arith.constant dense<0xFF800000> : vector<96xf32>
    %324 = vector.multi_reduction <maximumf>, %323, %cst_148 [1] : vector<96x96xf32> to vector<96xf32>
    %325 = vector.shape_cast %324 : vector<96xf32> to vector<96x1xf32>
    %326 = vector.broadcast %325 : vector<96x1xf32> to vector<96x96xf32>
    %327 = arith.subf %323, %326 : vector<96x96xf32>
    %328 = math.exp %327 : vector<96x96xf32>
    %cst_149 = arith.constant dense<0.000000e+00> : vector<96xf32>
    %329 = vector.multi_reduction <add>, %328, %cst_149 [1] : vector<96x96xf32> to vector<96xf32>
    %330 = vector.shape_cast %329 : vector<96xf32> to vector<96x1xf32>
    %331 = tpu.reciprocal %330 {approx = true} : vector<96x1xf32> -> vector<96x1xf32>
    %332 = vector.broadcast %331 : vector<96x1xf32> to vector<96x96xf32>
    %333 = arith.mulf %328, %332 : vector<96x96xf32>
    %cst_150 = arith.constant dense<0.000000e+00> : vector<96x8xf32>
    %334 = tpu.matmul %333, %321, %cst_150 {dimension_numbers = #tpu.dot_dimension_numbers<[1], [0], [0], [1], [0, 0, 1, 1], [], []>} : vector<96x96xf32>, vector<96x8xf32>, vector<96x8xf32> -> vector<96x8xf32>
    %335 = vector.extract_strided_slice %334 {offsets = [0, 0], sizes = [24, 8], strides = [1, 1]} : vector<96x8xf32> to vector<24x8xf32>
    %336 = vector.extract_strided_slice %334 {offsets = [24, 0], sizes = [24, 8], strides = [1, 1]} : vector<96x8xf32> to vector<24x8xf32>
    %337 = vector.extract_strided_slice %334 {offsets = [48, 0], sizes = [24, 8], strides = [1, 1]} : vector<96x8xf32> to vector<24x8xf32>
    %338 = vector.extract_strided_slice %334 {offsets = [72, 0], sizes = [24, 8], strides = [1, 1]} : vector<96x8xf32> to vector<24x8xf32>
    %339 = tpu.concatenate %335, %336, %337, %338 in 1 : vector<24x8xf32>, vector<24x8xf32>, vector<24x8xf32>, vector<24x8xf32> -> vector<24x32xf32>
    %c1_151 = arith.constant 1 : index
    %c0_152 = arith.constant 0 : index
    %c0_153 = arith.constant 0 : index
    %340 = vector.load %arg13[%c1_151, %c0_152, %c0_153] : memref<2x32x32xf32, #tpu.memory_space<vmem>>, vector<1x32x32xf32>
    %341 = vector.shape_cast %340 : vector<1x32x32xf32> to vector<32x32xf32>
    %cst_154 = arith.constant dense<0.000000e+00> : vector<24x32xf32>
    %342 = tpu.matmul %339, %341, %cst_154 {dimension_numbers = #tpu.dot_dimension_numbers<[1], [0], [0], [1], [0, 0, 1, 1], [], []>} : vector<24x32xf32>, vector<32x32xf32>, vector<24x32xf32> -> vector<24x32xf32>
    %c18 = arith.constant 18 : index
    %c0_155 = arith.constant 0 : index
    %343 = vector.load %arg8[%c18, %c0_155] : memref<32x128xf32, #tpu.memory_space<vmem>>, vector<1x32xf32>
    %344 = vector.broadcast %343 : vector<1x32xf32> to vector<24x32xf32>
    %345 = arith.addf %342, %344 : vector<24x32xf32>
    %346 = arith.addf %298, %345 : vector<24x32xf32>
    %cst_156 = arith.constant dense<0.000000e+00> : vector<24xf32>
    %347 = vector.multi_reduction <add>, %346, %cst_156 [1] : vector<24x32xf32> to vector<24xf32>
    %348 = vector.shape_cast %347 : vector<24xf32> to vector<24x1xf32>
    %cst_157 = arith.constant 3.200000e+01 : f32
    %349 = vector.broadcast %cst_157 : f32 to vector<24x1xf32>
    %350 = arith.divf %348, %349 : vector<24x1xf32>
    %351 = vector.broadcast %350 : vector<24x1xf32> to vector<24x32xf32>
    %352 = arith.subf %346, %351 : vector<24x32xf32>
    %353 = arith.mulf %352, %352 : vector<24x32xf32>
    %cst_158 = arith.constant dense<0.000000e+00> : vector<24xf32>
    %354 = vector.multi_reduction <add>, %353, %cst_158 [1] : vector<24x32xf32> to vector<24xf32>
    %355 = vector.shape_cast %354 : vector<24xf32> to vector<24x1xf32>
    %cst_159 = arith.constant 3.200000e+01 : f32
    %356 = vector.broadcast %cst_159 : f32 to vector<24x1xf32>
    %357 = arith.divf %355, %356 : vector<24x1xf32>
    %358 = vector.broadcast %350 : vector<24x1xf32> to vector<24x32xf32>
    %359 = arith.subf %346, %358 : vector<24x32xf32>
    %cst_160 = arith.constant 9.99999974E-6 : f32
    %360 = vector.broadcast %cst_160 : f32 to vector<24x1xf32>
    %361 = arith.addf %357, %360 : vector<24x1xf32>
    %362 = math.rsqrt %361 : vector<24x1xf32>
    %363 = vector.broadcast %362 : vector<24x1xf32> to vector<24x32xf32>
    %364 = arith.mulf %359, %363 : vector<24x32xf32>
    %c19 = arith.constant 19 : index
    %c0_161 = arith.constant 0 : index
    %365 = vector.load %arg8[%c19, %c0_161] : memref<32x128xf32, #tpu.memory_space<vmem>>, vector<1x32xf32>
    %366 = vector.broadcast %365 : vector<1x32xf32> to vector<24x32xf32>
    %367 = arith.mulf %364, %366 : vector<24x32xf32>
    %c20 = arith.constant 20 : index
    %c0_162 = arith.constant 0 : index
    %368 = vector.load %arg8[%c20, %c0_162] : memref<32x128xf32, #tpu.memory_space<vmem>>, vector<1x32xf32>
    %369 = vector.broadcast %368 : vector<1x32xf32> to vector<24x32xf32>
    %370 = arith.addf %367, %369 : vector<24x32xf32>
    %c1_163 = arith.constant 1 : index
    %c0_164 = arith.constant 0 : index
    %c0_165 = arith.constant 0 : index
    %371 = vector.load %arg14[%c1_163, %c0_164, %c0_165] : memref<2x32x64xf32, #tpu.memory_space<vmem>>, vector<1x32x64xf32>
    %372 = vector.shape_cast %371 : vector<1x32x64xf32> to vector<32x64xf32>
    %cst_166 = arith.constant dense<0.000000e+00> : vector<24x64xf32>
    %373 = tpu.matmul %370, %372, %cst_166 {dimension_numbers = #tpu.dot_dimension_numbers<[1], [0], [0], [1], [0, 0, 1, 1], [], []>} : vector<24x32xf32>, vector<32x64xf32>, vector<24x64xf32> -> vector<24x64xf32>
    %c21 = arith.constant 21 : index
    %c0_167 = arith.constant 0 : index
    %374 = vector.load %arg8[%c21, %c0_167] : memref<32x128xf32, #tpu.memory_space<vmem>>, vector<1x64xf32>
    %375 = vector.broadcast %374 : vector<1x64xf32> to vector<24x64xf32>
    %376 = arith.addf %373, %375 : vector<24x64xf32>
    %377 = arith.mulf %376, %376 : vector<24x64xf32>
    %378 = arith.mulf %376, %377 : vector<24x64xf32>
    %cst_168 = arith.constant 4.471500e-02 : f32
    %379 = vector.broadcast %cst_168 : f32 to vector<24x64xf32>
    %380 = arith.mulf %379, %378 : vector<24x64xf32>
    %381 = arith.addf %376, %380 : vector<24x64xf32>
    %cst_169 = arith.constant 0.797884583 : f32
    %382 = vector.broadcast %cst_169 : f32 to vector<24x64xf32>
    %383 = arith.mulf %382, %381 : vector<24x64xf32>
    %384 = math.tanh %383 : vector<24x64xf32>
    %cst_170 = arith.constant 1.000000e+00 : f32
    %385 = vector.broadcast %cst_170 : f32 to vector<24x64xf32>
    %386 = arith.addf %385, %384 : vector<24x64xf32>
    %cst_171 = arith.constant 5.000000e-01 : f32
    %387 = vector.broadcast %cst_171 : f32 to vector<24x64xf32>
    %388 = arith.mulf %387, %386 : vector<24x64xf32>
    %389 = arith.mulf %376, %388 : vector<24x64xf32>
    %c1_172 = arith.constant 1 : index
    %c0_173 = arith.constant 0 : index
    %c0_174 = arith.constant 0 : index
    %390 = vector.load %arg15[%c1_172, %c0_173, %c0_174] : memref<2x64x32xf32, #tpu.memory_space<vmem>>, vector<1x64x32xf32>
    %391 = vector.shape_cast %390 : vector<1x64x32xf32> to vector<64x32xf32>
    %cst_175 = arith.constant dense<0.000000e+00> : vector<24x32xf32>
    %392 = tpu.matmul %389, %391, %cst_175 {dimension_numbers = #tpu.dot_dimension_numbers<[1], [0], [0], [1], [0, 0, 1, 1], [], []>} : vector<24x64xf32>, vector<64x32xf32>, vector<24x32xf32> -> vector<24x32xf32>
    %c22 = arith.constant 22 : index
    %c0_176 = arith.constant 0 : index
    %393 = vector.load %arg8[%c22, %c0_176] : memref<32x128xf32, #tpu.memory_space<vmem>>, vector<1x32xf32>
    %394 = vector.broadcast %393 : vector<1x32xf32> to vector<24x32xf32>
    %395 = arith.addf %392, %394 : vector<24x32xf32>
    %396 = arith.addf %370, %395 : vector<24x32xf32>
    %cst_177 = arith.constant dense<0.000000e+00> : vector<24xf32>
    %397 = vector.multi_reduction <add>, %396, %cst_177 [1] : vector<24x32xf32> to vector<24xf32>
    %398 = vector.shape_cast %397 : vector<24xf32> to vector<24x1xf32>
    %cst_178 = arith.constant 3.200000e+01 : f32
    %399 = vector.broadcast %cst_178 : f32 to vector<24x1xf32>
    %400 = arith.divf %398, %399 : vector<24x1xf32>
    %401 = vector.broadcast %400 : vector<24x1xf32> to vector<24x32xf32>
    %402 = arith.subf %396, %401 : vector<24x32xf32>
    %403 = arith.mulf %402, %402 : vector<24x32xf32>
    %cst_179 = arith.constant dense<0.000000e+00> : vector<24xf32>
    %404 = vector.multi_reduction <add>, %403, %cst_179 [1] : vector<24x32xf32> to vector<24xf32>
    %405 = vector.shape_cast %404 : vector<24xf32> to vector<24x1xf32>
    %cst_180 = arith.constant 3.200000e+01 : f32
    %406 = vector.broadcast %cst_180 : f32 to vector<24x1xf32>
    %407 = arith.divf %405, %406 : vector<24x1xf32>
    %408 = vector.broadcast %400 : vector<24x1xf32> to vector<24x32xf32>
    %409 = arith.subf %396, %408 : vector<24x32xf32>
    %cst_181 = arith.constant 9.99999974E-6 : f32
    %410 = vector.broadcast %cst_181 : f32 to vector<24x1xf32>
    %411 = arith.addf %407, %410 : vector<24x1xf32>
    %412 = math.rsqrt %411 : vector<24x1xf32>
    %413 = vector.broadcast %412 : vector<24x1xf32> to vector<24x32xf32>
    %414 = arith.mulf %409, %413 : vector<24x32xf32>
    %c23 = arith.constant 23 : index
    %c0_182 = arith.constant 0 : index
    %415 = vector.load %arg8[%c23, %c0_182] : memref<32x128xf32, #tpu.memory_space<vmem>>, vector<1x32xf32>
    %416 = vector.broadcast %415 : vector<1x32xf32> to vector<24x32xf32>
    %417 = arith.mulf %414, %416 : vector<24x32xf32>
    %c24 = arith.constant 24 : index
    %c0_183 = arith.constant 0 : index
    %418 = vector.load %arg8[%c24, %c0_183] : memref<32x128xf32, #tpu.memory_space<vmem>>, vector<1x32xf32>
    %419 = vector.broadcast %418 : vector<1x32xf32> to vector<24x32xf32>
    %420 = arith.addf %417, %419 : vector<24x32xf32>
    %c0_184 = arith.constant 0 : index
    %c0_185 = arith.constant 0 : index
    %421 = vector.load %arg16[%c0_184, %c0_185] : memref<32x128xf32, #tpu.memory_space<vmem>>, vector<32x128xf32>
    %cst_186 = arith.constant dense<0.000000e+00> : vector<24x128xf32>
    %422 = tpu.matmul %420, %421, %cst_186 {dimension_numbers = #tpu.dot_dimension_numbers<[1], [0], [0], [1], [0, 0, 1, 1], [], []>} : vector<24x32xf32>, vector<32x128xf32>, vector<24x128xf32> -> vector<24x128xf32>
    %c8 = arith.constant 8 : index
    %c0_187 = arith.constant 0 : index
    %423 = vector.load %arg8[%c8, %c0_187] : memref<32x128xf32, #tpu.memory_space<vmem>>, vector<1x128xf32>
    %424 = vector.broadcast %423 : vector<1x128xf32> to vector<24x128xf32>
    %425 = arith.addf %422, %424 : vector<24x128xf32>
    %c0_188 = arith.constant 0 : index
    %c0_189 = arith.constant 0 : index
    %426 = vector.load %arg17[%c0_188, %c0_189] : memref<24x128xf32, #tpu.memory_space<vmem>>, vector<24x128xf32>
    tpu.vector_store %arg17[%c0_188, %c0_189], %425 {strides = array<i32>} : memref<24x128xf32, #tpu.memory_space<vmem>>, vector<24x128xf32>,
    return
  }
  func.func @transform_0(%arg0: i32) -> (i32, i32, i32) {
    %c0_i32 = arith.constant 0 : i32
    %c0_i32_0 = arith.constant 0 : i32
    %c0_i32_1 = arith.constant 0 : i32
    return %arg0, %c0_i32, %c0_i32_0 : i32, i32, i32
  }
  func.func @transform_1(%arg0: i32) -> (i32, i32, i32) {
    %c0_i32 = arith.constant 0 : i32
    %c0_i32_0 = arith.constant 0 : i32
    %c0_i32_1 = arith.constant 0 : i32
    %c0_i32_2 = arith.constant 0 : i32
    return %c0_i32, %c0_i32_0, %c0_i32_1 : i32, i32, i32
  }
  func.func @transform_2(%arg0: i32) -> (i32, i32, i32) {
    %c0_i32 = arith.constant 0 : i32
    %c0_i32_0 = arith.constant 0 : i32
    %c0_i32_1 = arith.constant 0 : i32
    %c0_i32_2 = arith.constant 0 : i32
    return %c0_i32, %c0_i32_0, %c0_i32_1 : i32, i32, i32
  }
  func.func @transform_3(%arg0: i32) -> (i32, i32, i32) {
    %c0_i32 = arith.constant 0 : i32
    %c0_i32_0 = arith.constant 0 : i32
    %c0_i32_1 = arith.constant 0 : i32
    %c0_i32_2 = arith.constant 0 : i32
    return %c0_i32, %c0_i32_0, %c0_i32_1 : i32, i32, i32
  }
  func.func @transform_4(%arg0: i32) -> (i32, i32) {
    %c0_i32 = arith.constant 0 : i32
    %c0_i32_0 = arith.constant 0 : i32
    %c0_i32_1 = arith.constant 0 : i32
    return %c0_i32, %c0_i32_0 : i32, i32
  }
  func.func @transform_5(%arg0: i32) -> (i32, i32) {
    %c0_i32 = arith.constant 0 : i32
    %c0_i32_0 = arith.constant 0 : i32
    %c0_i32_1 = arith.constant 0 : i32
    return %c0_i32, %c0_i32_0 : i32, i32
  }
  func.func @transform_6(%arg0: i32) -> (i32, i32) {
    %c0_i32 = arith.constant 0 : i32
    %c0_i32_0 = arith.constant 0 : i32
    %c0_i32_1 = arith.constant 0 : i32
    return %c0_i32, %c0_i32_0 : i32, i32
  }
  func.func @transform_7(%arg0: i32) -> (i32, i32) {
    %c0_i32 = arith.constant 0 : i32
    %c0_i32_0 = arith.constant 0 : i32
    %c0_i32_1 = arith.constant 0 : i32
    return %c0_i32, %c0_i32_0 : i32, i32
  }
  func.func @transform_8(%arg0: i32) -> (i32, i32) {
    %c0_i32 = arith.constant 0 : i32
    %c0_i32_0 = arith.constant 0 : i32
    %c0_i32_1 = arith.constant 0 : i32
    return %c0_i32, %c0_i32_0 : i32, i32
  }
  func.func @transform_9(%arg0: i32) -> (i32, i32) {
    %c0_i32 = arith.constant 0 : i32
    %c0_i32_0 = arith.constant 0 : i32
    %c0_i32_1 = arith.constant 0 : i32
    return %c0_i32, %c0_i32_0 : i32, i32
  }
  func.func @transform_10(%arg0: i32) -> (i32, i32) {
    %c0_i32 = arith.constant 0 : i32
    %c0_i32_0 = arith.constant 0 : i32
    %c0_i32_1 = arith.constant 0 : i32
    return %c0_i32, %c0_i32_0 : i32, i32
  }
  func.func @transform_11(%arg0: i32) -> (i32, i32, i32) {
    %c0_i32 = arith.constant 0 : i32
    %c0_i32_0 = arith.constant 0 : i32
    %c0_i32_1 = arith.constant 0 : i32
    %c0_i32_2 = arith.constant 0 : i32
    return %c0_i32, %c0_i32_0, %c0_i32_1 : i32, i32, i32
  }
  func.func @transform_12(%arg0: i32) -> (i32, i32, i32) {
    %c0_i32 = arith.constant 0 : i32
    %c0_i32_0 = arith.constant 0 : i32
    %c0_i32_1 = arith.constant 0 : i32
    %c0_i32_2 = arith.constant 0 : i32
    return %c0_i32, %c0_i32_0, %c0_i32_1 : i32, i32, i32
  }
  func.func @transform_13(%arg0: i32) -> (i32, i32, i32) {
    %c0_i32 = arith.constant 0 : i32
    %c0_i32_0 = arith.constant 0 : i32
    %c0_i32_1 = arith.constant 0 : i32
    %c0_i32_2 = arith.constant 0 : i32
    return %c0_i32, %c0_i32_0, %c0_i32_1 : i32, i32, i32
  }
  func.func @transform_14(%arg0: i32) -> (i32, i32, i32) {
    %c0_i32 = arith.constant 0 : i32
    %c0_i32_0 = arith.constant 0 : i32
    %c0_i32_1 = arith.constant 0 : i32
    %c0_i32_2 = arith.constant 0 : i32
    return %c0_i32, %c0_i32_0, %c0_i32_1 : i32, i32, i32
  }
  func.func @transform_15(%arg0: i32) -> (i32, i32) {
    %c0_i32 = arith.constant 0 : i32
    %c0_i32_0 = arith.constant 0 : i32
    %c0_i32_1 = arith.constant 0 : i32
    return %c0_i32, %c0_i32_0 : i32, i32
  }
  func.func @transform_16(%arg0: i32) -> (i32, i32) {
    %c0_i32 = arith.constant 0 : i32
    %c0_i32_0 = arith.constant 0 : i32
    return %arg0, %c0_i32 : i32, i32
  }
}

</mosaic_0001>

<bundles_post_ra>
// kernel: wav2vec_forward.1
= control target key start
LH: loop header
LB: loop body
LE: loop exit
PB: predicated region body
PF: predicated region fallthrough
CT: control target
= control target key end

     0   :  { %s4273_s21 = smov 0   ;;  %s5755_s0 = inlined_call_operand.vmem [shape: f32[2,79,10], index: 0, kind: input, shape index: {}]   ;;  %s5756_s1 = inlined_call_operand.vmem [shape: f32[3,39,79], index: 1, kind: input, shape index: {}]   ;;  %s5757_s2 = inlined_call_operand.vmem [shape: f32[3,24,39], index: 2, kind: input, shape index: {}]   ;;  %s5758_s3 = inlined_call_operand.vmem [shape: f32[4,24,24], index: 3, kind: input, shape index: {}]   ;;  %s5759_s4 = inlined_call_operand.vmem [shape: f32[10,32], index: 4, kind: input, shape index: {}]   ;;  %s5760_s5 = inlined_call_operand.vmem [shape: f32[96,32], index: 5, kind: input, shape index: {}]   ;;  %s5761_s6 = inlined_call_operand.vmem [shape: f32[96,32], index: 6, kind: input, shape index: {}]   ;;  %s5762_s7 = inlined_call_operand.vmem [shape: f32[32,128], index: 7, kind: input, shape index: {}]   ;;  %s5763_s8 = inlined_call_operand.vmem [shape: f32[32,32], index: 8, kind: input, shape index: {}]   ;;  %s5764_s9 = inlined_call_operand.vmem [shape: f32[128,32], index: 9, kind: input, shape index: {}]   ;;  %s5765_s10 = inlined_call_operand.vmem [shape: f32[96,96], index: 10, kind: input, shape index: {}]   ;;  %s5766_s11 = inlined_call_operand.vmem [shape: f32[2,32,96], index: 11, kind: input, shape index: {}]   ;;  %s5767_s12 = inlined_call_operand.vmem [shape: f32[2,32,32], index: 12, kind: input, shape index: {}]   ;;  %s5768_s13 = inlined_call_operand.vmem [shape: f32[2,32,64], index: 13, kind: input, shape index: {}]   ;;  %s5769_s14 = inlined_call_operand.vmem [shape: f32[2,64,32], index: 14, kind: input, shape index: {}]   ;;  %s5770_s15 = inlined_call_operand.vmem [shape: f32[32,128], index: 15, kind: input, shape index: {}]   ;;  %s5771_s16 = inlined_call_operand.vmem [shape: f32[48,128], index: 16, kind: output, shape index: {}]  }
   0x1   :  { %5782 = sst [smem:[#allocation2_spill]] %s5755_s0 }
   0x2 LB: > { %s4279_s22 = sadd.s32 4294967295, %s4175_s21   ;;  %p3641_p0 = scmp.ge.s32.totalorder %s4175_s21, 1  ;;  %s4175_s21 = sphi %s4273_s21, %s26_s21  }
   0x3   : > { %p462_p1 = scmp.lt.s32.totalorder %s4175_s21, 3 }
   0x5   : > { %p463_p2 = pnand %p3641_p0, %p462_p1 }
   0x6   : > { %p512_p3 = scmp.lt.s32.totalorder (!%p463_p2), %s4279_s22, 1  ;;  %s5783_s0 = sld [smem:[#allocation2_spill]] (!%p463_p2) }
   0x7   : > { %466 = sbr.rel (%p463_p2) target bundleno = 6712 (0x1a38), region = 84  ;;  %s5778_s20 = smov (!%p463_p2), 64  }
   0x8   : > { %s5780_s30 = smov (!%p463_p2), 96   ;;  %s4183_s29 = smov (!%p463_p2), 112  }
   0x9   : > { %s5776_s18 = smov (!%p463_p2), 24   ;;  %s5788_s24 = smov (!%p463_p2), 24  }
   0xc   : > { %v534_v0 = vld [vmem:[%s5759_s4 + $0x8] sm:$0x3]  ;;  %vm566_vm0 = vcmask 1041408   ;;  %v533_v1 = vld [vmem:[%s5759_s4] sm:$0xff]  ;;  %s513_s27 = scalar_select %p512_p3, %s4279_s22, 1  ;;  %vm535_vm1 = vcmask 80896  }
   0xd   : > { %3644 = vmatpush.msk.msra.mxu0 %vm566_vm0, %v534_v0  ;;  %3854 = vmatpush.msk.msra.mxu3 %vm566_vm0, %v534_v0  ;;  %vm617_vm2 = vcmask 261120   ;;  %v4177_v26 = vmov 79.0   ;;  %vm635_vm3 = vcmask 260096   ;;  %vm854_vm8 = vcmask 1046528  }
   0xe   : > { %s3860_s28 = smul.u32 80, %s513_s27  ;;  %3965 = vrcp.f32 %v4177_v26  ;;  %vm838_vm9 = vcmask 646144   ;;  %vm1059_vm10 = vcmask 785408   ;;  %vm1041_vm11 = vcmask 523264   ;;  %s4182_s27 = smov 104  }
   0xf   : > { %585 = vmatpush.msra.mxu0 %v533_v1  ;;  %3855 = vmatpush.msra.mxu3 %v533_v1  ;;  %vm1155_vm12 = vcmask 318464  }
  0x10   : > { %s516_s17 = scalar_lea.vmem %s5783_s0, %s3860_s28  ;;  %s4178_s28 = smov 32  }
  0x11   : > { %v523_v2 = vld [vmem:[%s516_s17] sm:$0xff]  ;;  %v530_v3 = vld [vmem:[%s516_s17 + $0x38] sm:$0xff]  ;;  %v524_v4 = vld [vmem:[%s516_s17 + $0x8] sm:$0xff]  ;;  %s5774_s0 = smov 8  }
  0x12   : > { %3645 = vmatmul.msk.f32.vlgmr.msra.gmra.mxu0 %vm535_vm1, %v523_v2  ;;  %3652 = vmatmul.msk.f32.vlgmr.msra.gmra.mxu3 %vm535_vm1, %v530_v3  ;;  %v531_v5 = vld [vmem:[%s516_s17 + $0x40] sm:$0xff]  ;;  %v525_v6 = vld [vmem:[%s516_s17 + $0x10] sm:$0xff]  ;;  %v532_v7 = vld [vmem:[%s516_s17 + $0x48] sm:$0x7f] }
  0x13   : > { %v526_v8 = vld [vmem:[%s516_s17 + $0x18] sm:$0xff]  ;;  %v527_v9 = vld [vmem:[%s516_s17 + $0x20] sm:$0xff]  ;;  %v528_v10 = vld [vmem:[%s516_s17 + $0x28] sm:$0xff] }
  0x14   : > { %v529_v11 = vld [vmem:[%s516_s17 + $0x30] sm:$0xff]  ;;  %v3966_v31 = vpop.eup %3965  ;;  %s5772_s17 = smov 16  }
  0x15   : > { %v645_v38 = vmul.f32 79.0, %v3966_v31  ;;  %vm649_vm4 = vweird.f32 %v3966_v31 }
  0x17   : > { %v646_v43 = vsub.f32 1.0, %v645_v38 }
  0x19   : > { %v647_v46 = vmul.f32 %v3966_v31, %v646_v43 }
  0x1a   : > { %3646 = vmatmul.msk.f32.gmra.mxu0 %vm535_vm1, %v524_v4  ;;  %3653 = vmatmul.msk.f32.gmra.mxu3 %vm535_vm1, %v531_v5 }
  0x1b   : > { %v648_v49 = vadd.f32 %v3966_v31, %v647_v46 }
  0x1d   : > { %v650_v52 = vsel %vm649_vm4, %v3966_v31, %v648_v49 }
  0x22   : > { %3647 = vmatmul.msk.f32.gmra.mxu0 %vm535_vm1, %v525_v6  ;;  %3654 = vmatmul.msk.f32.gmra.mxu3 %vm535_vm1, %v532_v7 }
  0x2a   : > { %3648 = vmatmul.msk.f32.gmra.mxu0 %vm535_vm1, %v526_v8 }
  0x32   : > { %3649 = vmatmul.msk.f32.gmra.mxu0 %vm535_vm1, %v527_v9 }
  0x3a   : > { %3650 = vmatmul.msk.f32.gmra.mxu0 %vm535_vm1, %v528_v10 }
  0x42   : > { %3651 = vmatmul.msk.f32.gmra.mxu0 %vm535_vm1, %v529_v11 }
  0x8f   : > { %v587_v12 = vpop.f32.mrf.mxu0 }
  0x90   : > { %v618_v19 = vsel %vm617_vm2, %v587_v12, 0.0 }
  0x95   : > { %v608_v16 = vpop.f32.mrf.mxu3 }
  0x96   : > { %v631_v37 = vsel %vm617_vm2, %v608_v16, 0.0 }
  0x97   : > { %v590_v13 = vpop.f32.mrf.mxu0 }
  0x98   : > { %v619_v18 = vsel %vm617_vm2, %v590_v13, 0.0 }
  0x99   : > { %v620_v21 = vadd.f32 %v619_v18, %v618_v19 }
  0x9d   : > { %v611_v23 = vpop.f32.mrf.mxu3 }
  0x9e   : > { %v633_v40 = vsel %vm617_vm2, %v611_v23, 0.0 }
  0x9f   : > { %v593_v14 = vpop.f32.mrf.mxu0 }
  0xa0   : > { %v621_v20 = vsel %vm617_vm2, %v593_v14, 0.0 }
  0xa1   : > { %v622_v25 = vadd.f32 %v621_v20, %v620_v21 }
  0xa5   : > { %v614_v36 = vpop.f32.mrf.mxu3 }
  0xa6   : > { %v636_v41 = vsel %vm635_vm3, %v614_v36, 0.0 }
  0xa7   : > { %v596_v15 = vpop.f32.mrf.mxu0 }
  0xa8   : > { %v623_v24 = vsel %vm617_vm2, %v596_v15, 0.0 }
  0xa9   : > { %v624_v28 = vadd.f32 %v623_v24, %v622_v25 }
  0xaf   : > { %v599_v17 = vpop.f32.mrf.mxu0 }
  0xb0   : > { %v625_v27 = vsel %vm617_vm2, %v599_v17, 0.0 }
  0xb1   : > { %v626_v30 = vadd.f32 %v625_v27, %v624_v28 }
  0xb7   : > { %v602_v22 = vpop.f32.mrf.mxu0 }
  0xb8   : > { %v627_v29 = vsel %vm617_vm2, %v602_v22, 0.0 }
  0xb9   : > { %v628_v32 = vadd.f32 %v627_v29, %v626_v30 }
  0xbf   : > { %v605_v33 = vpop.f32.mrf.mxu0 }
  0xc0   : > { %v629_v34 = vsel %vm617_vm2, %v605_v33, 0.0 }
  0xc1   : > { %v630_v35 = vadd.f32 %v629_v34, %v628_v32 }
  0xc3   : > { %v632_v39 = vadd.f32 %v631_v37, %v630_v35 }
  0xc5   : > { %v634_v42 = vadd.f32 %v633_v40, %v632_v39 }
  0xc7   : > { %v637_v44 = vadd.f32 %v636_v41, %v634_v42 }
  0xc9   : > { %v638_v45 = vrot.slane %v637_v44, 4 }
  0xcb   : > { %v639_v47 = vadd.f32 %v638_v45, %v637_v44  ;;  %v4343_v44 = vld [vmem:[%s5762_s7] ss:$0 sm:$0xff] }
  0xcd   : > { %v640_v48 = vrot.slane %v639_v47, 2 }
  0xcf   : > { %v641_v50 = vadd.f32 %v640_v48, %v639_v47  ;;  %v4348_v48 = vld [vmem:[%s5762_s7 + $0x1] ss:$0 sm:$0xff] }
  0xd1   : > { %v642_v51 = vrot.slane %v641_v50, 1 }
  0xd3   : > { %v643_v53 = vadd.f32 %v642_v51, %v641_v50 }
  0xd5   : > { %v651_v54 = vmul.f32 %v650_v52, %v643_v53 }
  0xd7   : > { %v4314_v55 = vsub.f32 %v587_v12, %v651_v54  ;;  %v4316_v56 = vsub.f32 %v590_v13, %v651_v54  ;;  %v4318_v57 = vsub.f32 %v593_v14, %v651_v54  ;;  %v4320_v58 = vsub.f32 %v596_v15, %v651_v54 }
  0xd8   : > { %v656_v61 = vsub.f32 %v599_v17, %v651_v54  ;;  %v657_v63 = vsub.f32 %v602_v22, %v651_v54  ;;  %v658_v4 = vsub.f32 %v605_v33, %v651_v54  ;;  %v659_v8 = vsub.f32 %v608_v16, %v651_v54 }
  0xd9   : > { %v662_v59 = vmul.f32 %v4314_v55, %v4314_v55  ;;  %v663_v60 = vmul.f32 %v4316_v56, %v4316_v56  ;;  %v664_v62 = vmul.f32 %v4318_v57, %v4318_v57  ;;  %v665_v0 = vmul.f32 %v4320_v58, %v4320_v58 }
  0xda   : > { %v666_v5 = vmul.f32 %v656_v61, %v656_v61  ;;  %v667_v9 = vmul.f32 %v657_v63, %v657_v63  ;;  %v660_v12 = vsub.f32 %v611_v23, %v651_v54  ;;  %v668_v13 = vmul.f32 %v658_v4, %v658_v4 }
  0xdb   : > { %v672_v1 = vsel %vm617_vm2, %v662_v59, 0.0  ;;  %v673_v2 = vsel %vm617_vm2, %v663_v60, 0.0  ;;  %v675_v6 = vsel %vm617_vm2, %v664_v62, 0.0  ;;  %v677_v10 = vsel %vm617_vm2, %v665_v0, 0.0 }
  0xdc   : > { %v674_v3 = vadd.f32 %v673_v2, %v672_v1  ;;  %v679_v14 = vsel %vm617_vm2, %v666_v5, 0.0  ;;  %v661_v17 = vsub.f32 %v614_v36, %v651_v54  ;;  %v669_v18 = vmul.f32 %v659_v8, %v659_v8 }
  0xdd   : > { %v681_v19 = vsel %vm617_vm2, %v667_v9, 0.0  ;;  %v670_v21 = vmul.f32 %v660_v12, %v660_v12  ;;  %v683_v22 = vsel %vm617_vm2, %v668_v13, 0.0 }
  0xde   : > { %v676_v7 = vadd.f32 %v675_v6, %v674_v3  ;;  %v671_v25 = vmul.f32 %v661_v17, %v661_v17  ;;  %v685_v16 = vsel %vm617_vm2, %v669_v18, 0.0 }
  0xdf   : > { %v687_v27 = vsel %vm617_vm2, %v670_v21, 0.0 }
  0xe0   : > { %v678_v11 = vadd.f32 %v677_v10, %v676_v7  ;;  %v689_v28 = vsel %vm635_vm3, %v671_v25, 0.0 }
  0xe2   : > { %v680_v15 = vadd.f32 %v679_v14, %v678_v11 }
  0xe4   : > { %v682_v20 = vadd.f32 %v681_v19, %v680_v15 }
  0xe6   : > { %v684_v24 = vadd.f32 %v683_v22, %v682_v20 }
  0xe8   : > { %v686_v26 = vadd.f32 %v685_v16, %v684_v24 }
  0xea   : > { %v688_v23 = vadd.f32 %v687_v27, %v686_v26 }
  0xec   : > { %v690_v29 = vadd.f32 %v689_v28, %v688_v23 }
  0xee   : > { %v691_v30 = vrot.slane %v690_v29, 4 }
  0xf0   : > { %v692_v31 = vadd.f32 %v691_v30, %v690_v29 }
  0xf2   : > { %v693_v32 = vrot.slane %v692_v31, 2 }
  0xf4   : > { %v694_v33 = vadd.f32 %v693_v32, %v692_v31 }
  0xf6   : > { %v695_v34 = vrot.slane %v694_v33, 1 }
  0xf8   : > { %v696_v35 = vadd.f32 %v695_v34, %v694_v33 }
  0xfa   : > { %v697_v36 = vmul.f32 %v696_v35, %v650_v52 }
  0xfc   : > { %v698_v37 = vadd.f32 1e-05, %v697_v36 }
  0xfe   : > { %3967 = vrsqrt.f32 %v698_v37  ;;  %vm705_vm6 = vweird.f32 %v698_v37 }
 0x104   : > { %v3968_v38 = vpop.eup %3967 }
 0x105   : > { %v700_v39 = vmul.f32 %v3968_v38, %v698_v37  ;;  %vm706_vm5 = vweird.f32 %v3968_v38 }
 0x106   : > { %vm707_vm7 = vmor %vm705_vm6, %vm706_vm5 }
 0x107   : > { %v701_v40 = vmul.f32 %v3968_v38, %v700_v39 }
 0x109   : > { %v702_v41 = vmul.f32 0.5, %v701_v40 }
 0x10b   : > { %v703_v42 = vsub.f32 1.5, %v702_v41 }
 0x10d   : > { %v704_v43 = vmul.f32 %v3968_v38, %v703_v42 }
 0x10f   : > { %v708_v45 = vsel %vm707_vm7, %v3968_v38, %v704_v43 }
 0x110   : > { %v717_v46 = vmul.f32 %v708_v45, %v660_v12  ;;  %v718_v47 = vmul.f32 %v708_v45, %v661_v17  ;;  %v716_v49 = vmul.f32 %v708_v45, %v659_v8  ;;  %v715_v50 = vmul.f32 %v708_v45, %v658_v4 }
 0x111   : > { %v714_v51 = vmul.f32 %v708_v45, %v657_v63  ;;  %v713_v52 = vmul.f32 %v708_v45, %v656_v61  ;;  %v712_v53 = vmul.f32 %v708_v45, %v4320_v58  ;;  %v711_v54 = vmul.f32 %v708_v45, %v4318_v57 }
 0x112   : > { %v730_v59 = vmul.f32 %v4343_v44, %v718_v47  ;;  %v729_v60 = vmul.f32 %v4343_v44, %v717_v46  ;;  %v728_v62 = vmul.f32 %v4343_v44, %v716_v49  ;;  %v727_v0 = vmul.f32 %v4343_v44, %v715_v50 }
 0x113   : > { %v726_v1 = vmul.f32 %v4343_v44, %v714_v51  ;;  %v725_v2 = vmul.f32 %v4343_v44, %v713_v52  ;;  %v724_v3 = vmul.f32 %v4343_v44, %v712_v53  ;;  %v723_v61 = vmul.f32 %v4343_v44, %v711_v54 }
 0x114   : > { %v4361_v58 = vadd.f32 %v4348_v48, %v730_v59  ;;  %v4364_v57 = vadd.f32 %v4348_v48, %v729_v60  ;;  %v4367_v63 = vadd.f32 %v4348_v48, %v728_v62  ;;  %v4370_v4 = vadd.f32 %v4348_v48, %v727_v0 }
 0x115   : > { %v4373_v5 = vadd.f32 %v4348_v48, %v726_v1  ;;  %v4376_v6 = vadd.f32 %v4348_v48, %v725_v2  ;;  %v4379_v7 = vadd.f32 %v4348_v48, %v724_v3  ;;  %v4382_v8 = vadd.f32 %v4348_v48, %v723_v61 }
 0x116   : > { %v752_v9 = vmul.f32 %v4361_v58, %v4361_v58  ;;  %v751_v10 = vmul.f32 %v4364_v57, %v4364_v57  ;;  %v750_v11 = vmul.f32 %v4367_v63, %v4367_v63  ;;  %v749_v12 = vmul.f32 %v4370_v4, %v4370_v4 }
 0x117   : > { %v748_v13 = vmul.f32 %v4373_v5, %v4373_v5  ;;  %v747_v14 = vmul.f32 %v4376_v6, %v4376_v6  ;;  %v746_v15 = vmul.f32 %v4379_v7, %v4379_v7  ;;  %v745_v17 = vmul.f32 %v4382_v8, %v4382_v8 }
 0x118   : > { %v762_v18 = vmul.f32 %v752_v9, %v4361_v58  ;;  %v761_v19 = vmul.f32 %v751_v10, %v4364_v57  ;;  %v760_v20 = vmul.f32 %v750_v11, %v4367_v63  ;;  %v759_v21 = vmul.f32 %v749_v12, %v4370_v4 }
 0x119   : > { %v758_v22 = vmul.f32 %v748_v13, %v4373_v5  ;;  %v757_v24 = vmul.f32 %v747_v14, %v4376_v6  ;;  %v756_v25 = vmul.f32 %v746_v15, %v4379_v7  ;;  %v755_v16 = vmul.f32 %v745_v17, %v4382_v8 }
 0x11a   : > { %v772_v26 = vmul.f32 0.044715, %v762_v18  ;;  %v771_v27 = vmul.f32 0.044715, %v761_v19  ;;  %v770_v23 = vmul.f32 0.044715, %v760_v20  ;;  %v710_v28 = vmul.f32 %v708_v45, %v4316_v56 }
 0x11b   : > { %v769_v29 = vmul.f32 0.044715, %v759_v21  ;;  %v768_v30 = vmul.f32 0.044715, %v758_v22  ;;  %v767_v31 = vmul.f32 0.044715, %v757_v24  ;;  %v709_v32 = vmul.f32 %v708_v45, %v4314_v55 }
 0x11c   : > { %v782_v33 = vadd.f32 %v772_v26, %v4361_v58  ;;  %v781_v34 = vadd.f32 %v771_v27, %v4364_v57  ;;  %v780_v35 = vadd.f32 %v770_v23, %v4367_v63  ;;  %v766_v36 = vmul.f32 0.044715, %v756_v25 }
 0x11d   : > { %v779_v37 = vadd.f32 %v769_v29, %v4370_v4  ;;  %v778_v38 = vadd.f32 %v768_v30, %v4373_v5  ;;  %v777_v39 = vadd.f32 %v767_v31, %v4376_v6  ;;  %v765_v40 = vmul.f32 0.044715, %v755_v16 }
 0x11e   : > { %v792_v56 = vmul.f32 0.7978846, %v782_v33  ;;  %v791_v41 = vmul.f32 0.7978846, %v781_v34  ;;  %v790_v42 = vmul.f32 0.7978846, %v780_v35  ;;  %v776_v43 = vadd.f32 %v766_v36, %v4379_v7 }
 0x11f   : > { %v789_v55 = vmul.f32 0.7978846, %v779_v37  ;;  %v788_v45 = vmul.f32 0.7978846, %v778_v38  ;;  %v775_v46 = vadd.f32 %v765_v40, %v4382_v8  ;;  %v722_v47 = vmul.f32 %v4343_v44, %v710_v28 }
 0x120   : > { %3969 = vtanh.f32 %v792_v56  ;;  %v721_v49 = vmul.f32 %v4343_v44, %v709_v32  ;;  %v787_v50 = vmul.f32 0.7978846, %v777_v39  ;;  %v786_v51 = vmul.f32 0.7978846, %v776_v43  ;;  %v3662_v43 = vld [vmem:[%s5756_s1 + $0x30] sm:$0xff] }
 0x121   : > { %3971 = vtanh.f32 %v791_v41  ;;  %v4421_v52 = vadd.f32 %v4348_v48, %v722_v47  ;;  %v785_v54 = vmul.f32 0.7978846, %v775_v46  ;;  %v3663_v46 = vld [vmem:[%s5756_s1 + $0x38] sm:$0xff]  ;;  %v3674_v47 = vld [vmem:[%s5756_s1 + $0x60] sm:$0xff] }
 0x122   : > { %3973 = vtanh.f32 %v790_v42  ;;  %v4424_v53 = vadd.f32 %v4348_v48, %v721_v49  ;;  %v833_v42 = vld [vmem:[%s5756_s1] sm:$0xff]  ;;  %v835_v49 = vld [vmem:[%s5756_s1 + $0x10] sm:$0xff] }
 0x123   : > { %3975 = vtanh.f32 %v789_v55  ;;  %v744_v59 = vmul.f32 %v4421_v52, %v4421_v52  ;;  %v3673_v55 = vld [vmem:[%s5756_s1 + $0x58] sm:$0xff] }
 0x124   : > { %3977 = vtanh.f32 %v788_v45  ;;  %v743_v60 = vmul.f32 %v4424_v53, %v4424_v53  ;;  %v834_v45 = vld [vmem:[%s5756_s1 + $0x8] sm:$0xff] }
 0x125   : > { %3979 = vtanh.f32 %v787_v50  ;;  %v754_v62 = vmul.f32 %v744_v59, %v4421_v52  ;;  %v3664_v50 = vld [vmem:[%s5756_s1 + $0x40] sm:$0xff] }
 0x126   : > { %v3970_v44 = vpop.eup %3969  ;;  %3981 = vtanh.f32 %v786_v51  ;;  %v753_v0 = vmul.f32 %v743_v60, %v4424_v53  ;;  %v3675_v51 = vld [vmem:[%s5756_s1 + $0x68] sm:$0xff]  ;;  %v837_v59 = vld [vmem:[%s5756_s1 + $0x20] sm:$0x7f] }
 0x127   : > { %v3972_v1 = vpop.eup %3971  ;;  %v812_v2 = vadd.f32 1.0, %v3970_v44  ;;  %3983 = vtanh.f32 %v785_v54  ;;  %v764_v61 = vmul.f32 0.044715, %v754_v62  ;;  %v836_v54 = vld [vmem:[%s5756_s1 + $0x18] sm:$0xff] }
 0x128   : > { %v3974_v48 = vpop.eup %3973  ;;  %v811_v3 = vadd.f32 1.0, %v3972_v1  ;;  %v763_v9 = vmul.f32 0.044715, %v753_v0  ;;  %v1058_v62 = vld [vmem:[%s5760_s5 + $0x58] sm:$0xff]  ;;  %v1057_v0 = vld [vmem:[%s5760_s5 + $0x50] sm:$0xff]  ;;  %v1056_v1 = vld [vmem:[%s5760_s5 + $0x48] sm:$0xff] }
 0x129   : > { %v3976_v10 = vpop.eup %3975  ;;  %v822_v11 = vmul.f32 0.5, %v812_v2  ;;  %v810_v12 = vadd.f32 1.0, %v3974_v48  ;;  %v774_v17 = vadd.f32 %v764_v61, %v4421_v52 }
 0x12a   : > { %v3978_v13 = vpop.eup %3977  ;;  %v821_v14 = vmul.f32 0.5, %v811_v3  ;;  %v809_v15 = vadd.f32 1.0, %v3976_v10  ;;  %v773_v18 = vadd.f32 %v763_v9, %v4424_v53 }
 0x12b   : > { %v3980_v19 = vpop.eup %3979  ;;  %v832_v20 = vmul.f32 %v822_v11, %v4361_v58  ;;  %v820_v21 = vmul.f32 0.5, %v810_v12  ;;  %v808_v22 = vadd.f32 1.0, %v3978_v13  ;;  %v784_v25 = vmul.f32 0.7978846, %v774_v17  ;;  %v1055_v13 = vld [vmem:[%s5760_s5 + $0x40] sm:$0xff]  ;;  %v1052_v17 = vld [vmem:[%s5760_s5 + $0x28] sm:$0xff] }
 0x12c   : > { %v3982_v24 = vpop.eup %3981  ;;  %v831_v16 = vmul.f32 %v821_v14, %v4364_v57  ;;  %v819_v26 = vmul.f32 0.5, %v809_v15  ;;  %v807_v27 = vadd.f32 1.0, %v3980_v19  ;;  %v783_v23 = vmul.f32 0.7978846, %v773_v18  ;;  %v1054_v14 = vld [vmem:[%s5760_s5 + $0x38] sm:$0xff]  ;;  %v1053_v15 = vld [vmem:[%s5760_s5 + $0x30] sm:$0xff] }
 0x12d   : > { %3655 = vmatpush.msk.msra.mxu1 %vm854_vm8, %v832_v20  ;;  %3666 = vmatpush.msk.msra.mxu2 %vm854_vm8, %v832_v20  ;;  %v3984_v28 = vpop.eup %3983  ;;  %3985 = vtanh.f32 %v784_v25  ;;  %v830_v58 = vmul.f32 %v820_v21, %v4367_v63  ;;  %v818_v29 = vmul.f32 0.5, %v808_v22  ;;  %v806_v30 = vadd.f32 1.0, %v3982_v24  ;;  %v1051_v18 = vld [vmem:[%s5760_s5 + $0x20] sm:$0xff]  ;;  %v1050_v19 = vld [vmem:[%s5760_s5 + $0x18] sm:$0xff]  ;;  %v1048_v21 = vld [vmem:[%s5760_s5 + $0x8] sm:$0xff] }
 0x12e   : > { %3677 = vmatpush.msk.msrb.mxu3 %vm854_vm8, %v832_v20  ;;  %3987 = vtanh.f32 %v783_v23  ;;  %v829_v31 = vmul.f32 %v819_v26, %v4370_v4  ;;  %v817_v57 = vmul.f32 0.5, %v807_v27  ;;  %v805_v32 = vadd.f32 1.0, %v3984_v28  ;;  %v1049_v20 = vld [vmem:[%s5760_s5 + $0x10] sm:$0xff]  ;;  %v1047_v22 = vld [vmem:[%s5760_s5] sm:$0xff] }
 0x12f   : > { %865 = vmatpush.msra.mxu1 %v831_v16  ;;  %918 = vmatpush.msra.mxu2 %v831_v16  ;;  %v828_v33 = vmul.f32 %v818_v29, %v4373_v5  ;;  %v816_v34 = vmul.f32 0.5, %v806_v30 }
 0x130   : > { %971 = vmatpush.msrb.mxu3 %v831_v16  ;;  %v827_v63 = vmul.f32 %v817_v57, %v4376_v6  ;;  %v815_v37 = vmul.f32 0.5, %v805_v32 }
 0x131   : > { %866 = vmatpush.msra.mxu1 %v830_v58  ;;  %919 = vmatpush.msra.mxu2 %v830_v58  ;;  %v826_v4 = vmul.f32 %v816_v34, %v4379_v7  ;;  %v3661_v7 = vld [vmem:[%s5756_s1 + $0x28] sm:$0xff] }
 0x132   : > { %972 = vmatpush.msrb.mxu3 %v830_v58  ;;  %v825_v5 = vmul.f32 %v815_v37, %v4382_v8  ;;  %v3672_v8 = vld [vmem:[%s5756_s1 + $0x50] sm:$0xff] }
 0x133   : > { %867 = vmatpush.msra.mxu1 %v829_v31  ;;  %920 = vmatpush.msra.mxu2 %v829_v31  ;;  %v3986_v35 = vpop.eup %3985 }
 0x134   : > { %973 = vmatpush.msrb.mxu3 %v829_v31  ;;  %v3988_v36 = vpop.eup %3987  ;;  %v804_v38 = vadd.f32 1.0, %v3986_v35 }
 0x135   : > { %868 = vmatpush.msra.mxu1 %v828_v33  ;;  %921 = vmatpush.msra.mxu2 %v828_v33  ;;  %v803_v39 = vadd.f32 1.0, %v3988_v36 }
 0x136   : > { %974 = vmatpush.msrb.mxu3 %v828_v33  ;;  %v814_v40 = vmul.f32 0.5, %v804_v38 }
 0x137   : > { %869 = vmatpush.msra.mxu1 %v827_v63  ;;  %922 = vmatpush.msra.mxu2 %v827_v63  ;;  %v813_v56 = vmul.f32 0.5, %v803_v39 }
 0x138   : > { %975 = vmatpush.msrb.mxu3 %v827_v63  ;;  %v824_v6 = vmul.f32 %v814_v40, %v4421_v52  ;;  %v3665_v52 = vld [vmem:[%s5756_s1 + $0x48] sm:$0x7f] }
 0x139   : > { %870 = vmatpush.msra.mxu1 %v826_v4  ;;  %923 = vmatpush.msra.mxu2 %v826_v4  ;;  %v823_v41 = vmul.f32 %v813_v56, %v4424_v53  ;;  %v3676_v53 = vld [vmem:[%s5756_s1 + $0x70] sm:$0x7f] }
 0x13a   : > { %976 = vmatpush.msrb.mxu3 %v826_v4 }
 0x13b   : > { %871 = vmatpush.msra.mxu1 %v825_v5  ;;  %924 = vmatpush.msra.mxu2 %v825_v5 }
 0x13c   : > { %977 = vmatpush.msrb.mxu3 %v825_v5 }
 0x13d   : > { %872 = vmatpush.msra.mxu1 %v824_v6  ;;  %925 = vmatpush.msra.mxu2 %v824_v6 }
 0x13e   : > { %978 = vmatpush.msrb.mxu3 %v824_v6 }
 0x13f   : > { %873 = vmatpush.msra.mxu1 %v823_v41  ;;  %926 = vmatpush.msra.mxu2 %v823_v41 }
 0x140   : > { %979 = vmatpush.msrb.mxu3 %v823_v41  ;;  %3667 = vmatmul.msk.f32.vlgmr.msra.gmra.mxu2 %vm838_vm9, %v3661_v7 }
 0x141   : > { %3678 = vmatmul.msk.f32.vlgmr.msrb.gmra.mxu3 %vm838_vm9, %v3672_v8  ;;  %3656 = vmatmul.msk.f32.vlgmr.msra.gmra.mxu1 %vm838_vm9, %v833_v42 }
 0x142   : > { %1079 = vmatpush.msrb.mxu1 %v1058_v62 }
 0x144   : > { %1080 = vmatpush.msrb.mxu1 %v1057_v0 }
 0x146   : > { %1081 = vmatpush.msrb.mxu1 %v1056_v1 }
 0x148   : > { %3668 = vmatmul.msk.f32.gmra.mxu2 %vm838_vm9, %v3662_v43  ;;  %1082 = vmatpush.msrb.mxu1 %v1055_v13 }
 0x149   : > { %3679 = vmatmul.msk.f32.gmra.mxu3 %vm838_vm9, %v3673_v55  ;;  %3657 = vmatmul.msk.f32.gmra.mxu1 %vm838_vm9, %v834_v45 }
 0x14a   : > { %1083 = vmatpush.msrb.mxu1 %v1054_v14 }
 0x14c   : > { %1084 = vmatpush.msrb.mxu1 %v1053_v15 }
 0x14e   : > { %1085 = vmatpush.msrb.mxu1 %v1052_v17 }
 0x150   : > { %3669 = vmatmul.msk.f32.gmra.mxu2 %vm838_vm9, %v3663_v46  ;;  %1086 = vmatpush.msrb.mxu1 %v1051_v18 }
 0x151   : > { %3680 = vmatmul.msk.f32.gmra.mxu3 %vm838_vm9, %v3674_v47  ;;  %3658 = vmatmul.msk.f32.gmra.mxu1 %vm838_vm9, %v835_v49 }
 0x152   : > { %1087 = vmatpush.msrb.mxu1 %v1050_v19 }
 0x154   : > { %1088 = vmatpush.msrb.mxu1 %v1049_v20 }
 0x156   : > { %1089 = vmatpush.msrb.mxu1 %v1048_v21 }
 0x158   : > { %3670 = vmatmul.msk.f32.gmra.mxu2 %vm838_vm9, %v3664_v50  ;;  %1090 = vmatpush.msrb.mxu1 %v1047_v22 }
 0x159   : > { %3681 = vmatmul.msk.f32.gmra.mxu3 %vm838_vm9, %v3675_v51  ;;  %3659 = vmatmul.msk.f32.gmra.mxu1 %vm838_vm9, %v836_v54 }
 0x160   : > { %3671 = vmatmul.msk.f32.gmra.mxu2 %vm838_vm9, %v3665_v52 }
 0x161   : > { %3682 = vmatmul.msk.f32.gmra.mxu3 %vm838_vm9, %v3676_v53  ;;  %3660 = vmatmul.msk.f32.gmra.mxu1 %vm838_vm9, %v837_v59 }
 0x1be   : > { %v875_v24 = vpop.f32.mrf.mxu1 }
 0x1c3   : > { %v928_v60 = vpop.f32.mrf.mxu2 }
 0x1c4   : > { %1001 = vrot.lane.b32.xlu0 %v928_v60, %s4178_s28  ;;  %v981_v44 = vpop.f32.mrf.mxu3 }
 0x1c6   : > { %v878_v16 = vpop.f32.mrf.mxu1 }
 0x1cb   : > { %v931_v2 = vpop.f32.mrf.mxu2 }
 0x1cc   : > { %1021 = vrot.lane.b32.xlu0 %v981_v44, %s5778_s20  ;;  %1003 = vrot.lane.b32.xlu1 %v931_v2, %s4178_s28  ;;  %v984_v48 = vpop.f32.mrf.mxu3 }
 0x1ce   : > { %v881_v29 = vpop.f32.mrf.mxu1 }
 0x1d3   : > { %v934_v3 = vpop.f32.mrf.mxu2 }
 0x1d4   : > { %1023 = vrot.lane.b32.xlu1 %v984_v48, %s5778_s20  ;;  %1005 = vrot.lane.b32.xlu2 %v934_v3, %s4178_s28  ;;  %v987_v61 = vpop.f32.mrf.mxu3 }
 0x1d6   : > { %v884_v34 = vpop.f32.mrf.mxu1 }
 0x1db   : > { %v937_v9 = vpop.f32.mrf.mxu2 }
 0x1dc   : > { %1025 = vrot.lane.b32.xlu2 %v987_v61, %s5778_s20  ;;  %v990_v10 = vpop.f32.mrf.mxu3  ;;  %1007 = vrot.lane.b32.xlu0 %v937_v9, %s4178_s28 }
 0x1dd   : > { %1027 = vrot.lane.b32.xlu1 %v990_v10, %s5778_s20 }
 0x1de   : > { %v887_v4 = vpop.f32.mrf.mxu1 }
 0x1e3   : > { %v940_v11 = vpop.f32.mrf.mxu2 }
 0x1e4   : > { %v993_v12 = vpop.f32.mrf.mxu3  ;;  %1009 = vrot.lane.b32.xlu2 %v940_v11, %s4178_s28 }
 0x1e5   : > { %1029 = vrot.lane.b32.xlu0 %v993_v12, %s5778_s20 }
 0x22e   : > { %v1006_v58 = vpop.permute.xlu2 %1005 }
 0x22f   : > { %v1038_v32 = vsel %vm617_vm2, %v881_v29, %v1006_v58 }
 0x236   : > { %v1002_v25 = vpop.permute.xlu0 %1001  ;;  %v1026_v33 = vpop.permute.xlu2 %1025 }
 0x237   : > { %v1036_v26 = vsel %vm617_vm2, %v875_v24, %v1002_v25  ;;  %v1044_v35 = vsel %vm1041_vm11, %v1038_v32, %v1026_v33  ;;  %v3699_v32 = vld [vmem:[%s5757_s2 + $0x30] sm:$0xff]  ;;  %v1152_v33 = vld [vmem:[%s5757_s2] sm:$0xff] }
 0x23e   : > { %v1022_v27 = vpop.permute.xlu0 %1021  ;;  %v1004_v23 = vpop.permute.xlu1 %1003 }
 0x23f   : > { %v1042_v28 = vsel %vm1041_vm11, %v1036_v26, %v1022_v27  ;;  %v1037_v30 = vsel %vm617_vm2, %v878_v16, %v1004_v23  ;;  %v1010_v39 = vpop.permute.xlu2 %1009 }
 0x240   : > { %3683 = vmatmul.msk.f32.vlgmr.msrb.gmra.mxu1 %vm1059_vm10, %v1042_v28  ;;  %v1040_v40 = vsel %vm617_vm2, %v887_v4, %v1010_v39  ;;  %v1313_v39 = vld [vmem:[%s5761_s6 + $0x58] sm:$0xff]  ;;  %v1312_v4 = vld [vmem:[%s5761_s6 + $0x50] sm:$0xff] }
 0x246   : > { %v1024_v31 = vpop.permute.xlu1 %1023 }
 0x247   : > { %v1043_v57 = vsel %vm1041_vm11, %v1037_v30, %v1024_v31 }
 0x248   : > { %3684 = vmatmul.msk.f32.gmra.mxu1 %vm1059_vm10, %v1043_v57  ;;  %v3692_v57 = vld [vmem:[%s5757_s2 + $0x18] sm:$0xff] }
 0x24e   : > { %v1008_v36 = vpop.permute.xlu0 %1007 }
 0x24f   : > { %v1039_v63 = vsel %vm617_vm2, %v884_v34, %v1008_v36  ;;  %v1028_v37 = vpop.permute.xlu1 %1027  ;;  %v3693_v34 = vld [vmem:[%s5757_s2 + $0x20] sm:$0xff]  ;;  %v1153_v36 = vld [vmem:[%s5757_s2 + $0x8] sm:$0xff] }
 0x250   : > { %3685 = vmatmul.msk.f32.gmra.mxu1 %vm1059_vm10, %v1044_v35  ;;  %v1045_v38 = vsel %vm1041_vm11, %v1039_v63, %v1028_v37  ;;  %v3700_v35 = vld [vmem:[%s5757_s2 + $0x38] sm:$0xff]  ;;  %v3694_v63 = vld [vmem:[%s5757_s2 + $0x28] sm:$0xff]  ;;  %v3701_v37 = vld [vmem:[%s5757_s2 + $0x40] sm:$0xff] }
 0x257   : > { %v1030_v5 = vpop.permute.xlu0 %1029 }
 0x258   : > { %3686 = vmatmul.msk.f32.gmra.mxu1 %vm1059_vm10, %v1045_v38  ;;  %v1046_v56 = vsel %vm1041_vm11, %v1040_v40, %v1030_v5  ;;  %v1154_v38 = vld [vmem:[%s5757_s2 + $0x10] sm:$0xff]  ;;  %v1311_v40 = vld [vmem:[%s5761_s6 + $0x48] sm:$0xff]  ;;  %v1310_v5 = vld [vmem:[%s5761_s6 + $0x40] sm:$0xff] }
 0x260   : > { %3687 = vmatmul.msk.f32.gmra.mxu1 %vm1059_vm10, %v1046_v56  ;;  %v1309_v56 = vld [vmem:[%s5761_s6 + $0x38] sm:$0xff] }
 0x2bd   : > { %v4568_v6 = vpop.f32.mrf.mxu1 }
 0x2be   : > { %v1107_v55 = vmul.f32 %v4568_v6, %v4568_v6 }
 0x2c0   : > { %v1112_v50 = vmul.f32 %v1107_v55, %v4568_v6 }
 0x2c2   : > { %v1117_v60 = vmul.f32 0.044715, %v1112_v50  ;;  %v1303_v50 = vld [vmem:[%s5761_s6 + $0x8] sm:$0xff] }
 0x2c4   : > { %v1122_v48 = vadd.f32 %v1117_v60, %v4568_v6 }
 0x2c5   : > { %v1095_v41 = vpop.f32.mrf.mxu1 }
 0x2c6   : > { %v1108_v42 = vmul.f32 %v1095_v41, %v1095_v41  ;;  %v1127_v12 = vmul.f32 0.7978846, %v1122_v48 }
 0x2c8   : > { %v1113_v47 = vmul.f32 %v1108_v42, %v1095_v41  ;;  %v1305_v42 = vld [vmem:[%s5761_s6 + $0x18] sm:$0xff] }
 0x2ca   : > { %v1118_v53 = vmul.f32 0.044715, %v1113_v47 }
 0x2cc   : > { %v1123_v0 = vadd.f32 %v1118_v53, %v1095_v41 }
 0x2cd   : > { %v1098_v7 = vpop.f32.mrf.mxu1 }
 0x2ce   : > { %v1109_v8 = vmul.f32 %v1098_v7, %v1098_v7  ;;  %v1128_v9 = vmul.f32 0.7978846, %v1123_v0 }
 0x2d0   : > { %v1114_v45 = vmul.f32 %v1109_v8, %v1098_v7  ;;  %v1306_v8 = vld [vmem:[%s5761_s6 + $0x20] sm:$0xff] }
 0x2d2   : > { %v1119_v51 = vmul.f32 0.044715, %v1114_v45 }
 0x2d4   : > { %v1124_v44 = vadd.f32 %v1119_v51, %v1098_v7  ;;  %v1302_v51 = vld [vmem:[%s5761_s6] sm:$0xff] }
 0x2d5   : > { %v1101_v43 = vpop.f32.mrf.mxu1 }
 0x2d6   : > { %v1110_v46 = vmul.f32 %v1101_v43, %v1101_v43  ;;  %v1129_v61 = vmul.f32 0.7978846, %v1124_v44 }
 0x2d8   : > { %v1115_v49 = vmul.f32 %v1110_v46, %v1101_v43 }
 0x2da   : > { %v1120_v52 = vmul.f32 0.044715, %v1115_v49  ;;  %v1304_v49 = vld [vmem:[%s5761_s6 + $0x10] sm:$0xff] }
 0x2dc   : > { %v1125_v54 = vadd.f32 %v1120_v52, %v1101_v43 }
 0x2dd   : > { %v1104_v59 = vpop.f32.mrf.mxu1 }
 0x2de   : > { %v1111_v62 = vmul.f32 %v1104_v59, %v1104_v59  ;;  %v1130_v2 = vmul.f32 0.7978846, %v1125_v54 }
 0x2e0   : > { %v1116_v1 = vmul.f32 %v1111_v62, %v1104_v59  ;;  %3989 = vtanh.f32 %v1130_v2 }
 0x2e1   : > { %3991 = vtanh.f32 %v1129_v61 }
 0x2e2   : > { %v1121_v3 = vmul.f32 0.044715, %v1116_v1  ;;  %3993 = vtanh.f32 %v1128_v9 }
 0x2e4   : > { %v1126_v10 = vadd.f32 %v1121_v3, %v1104_v59 }
 0x2e6   : > { %v1131_v11 = vmul.f32 0.7978846, %v1126_v10  ;;  %v3990_v13 = vpop.eup %3989 }
 0x2e7   : > { %v3992_v14 = vpop.eup %3991  ;;  %v1140_v17 = vadd.f32 1.0, %v3990_v13 }
 0x2e8   : > { %3995 = vtanh.f32 %v1131_v11  ;;  %v3994_v15 = vpop.eup %3993  ;;  %v1139_v20 = vadd.f32 1.0, %v3992_v14 }
 0x2e9   : > { %3997 = vtanh.f32 %v1127_v12  ;;  %v1145_v24 = vmul.f32 0.5, %v1140_v17  ;;  %v1138_v25 = vadd.f32 1.0, %v3994_v15 }
 0x2ea   : > { %v1144_v26 = vmul.f32 0.5, %v1139_v20 }
 0x2eb   : > { %v1150_v23 = vmul.f32 %v1145_v24, %v1101_v43  ;;  %v1143_v28 = vmul.f32 0.5, %v1138_v25 }
 0x2ec   : > { %v1149_v58 = vmul.f32 %v1144_v26, %v1098_v7  ;;  %v1307_v7 = vld [vmem:[%s5761_s6 + $0x28] sm:$0xff] }
 0x2ed   : > { %v1148_v30 = vmul.f32 %v1143_v28, %v1095_v41 }
 0x2ee   : > { %v3996_v18 = vpop.eup %3995 }
 0x2ef   : > { %v1141_v19 = vadd.f32 1.0, %v3996_v18  ;;  %v3998_v21 = vpop.eup %3997 }
 0x2f0   : > { %v1137_v27 = vadd.f32 1.0, %v3998_v21 }
 0x2f1   : > { %v1146_v22 = vmul.f32 0.5, %v1141_v19 }
 0x2f2   : > { %v1142_v29 = vmul.f32 0.5, %v1137_v27 }
 0x2f3   : > { %v1151_v16 = vmul.f32 %v1146_v22, %v1104_v59 }
 0x2f4   : > { %v1147_v31 = vmul.f32 %v1142_v29, %v4568_v6  ;;  %v1308_v6 = vld [vmem:[%s5761_s6 + $0x30] sm:$0xff] }
 0x2f5   : > { %3688 = vmatpush.msk.msrb.mxu2 %vm854_vm8, %v1151_v16  ;;  %3695 = vmatpush.msk.msra.mxu3 %vm854_vm8, %v1151_v16 }
 0x2f6   : > { %3702 = vmatpush.msk.msrb.mxu0 %vm854_vm8, %v1151_v16  ;;  %vm1503_vm8 = vcmask 195584  }
 0x2f7   : > { %1180 = vmatpush.msrb.mxu2 %v1150_v23  ;;  %1219 = vmatpush.msra.mxu3 %v1150_v23 }
 0x2f8   : > { %1258 = vmatpush.msrb.mxu0 %v1150_v23 }
 0x2f9   : > { %1181 = vmatpush.msrb.mxu2 %v1149_v58  ;;  %1220 = vmatpush.msra.mxu3 %v1149_v58 }
 0x2fa   : > { %1259 = vmatpush.msrb.mxu0 %v1149_v58 }
 0x2fb   : > { %1182 = vmatpush.msrb.mxu2 %v1148_v30  ;;  %1221 = vmatpush.msra.mxu3 %v1148_v30 }
 0x2fc   : > { %1260 = vmatpush.msrb.mxu0 %v1148_v30 }
 0x2fd   : > { %1183 = vmatpush.msrb.mxu2 %v1147_v31  ;;  %1222 = vmatpush.msra.mxu3 %v1147_v31 }
 0x2fe   : > { %1261 = vmatpush.msrb.mxu0 %v1147_v31  ;;  %3696 = vmatmul.msk.f32.vlgmr.msra.gmra.mxu3 %vm1155_vm12, %v3692_v57 }
 0x2ff   : > { %3703 = vmatmul.msk.f32.vlgmr.msrb.gmra.mxu0 %vm1155_vm12, %v3699_v32  ;;  %3689 = vmatmul.msk.f32.vlgmr.msrb.gmra.mxu2 %vm1155_vm12, %v1152_v33 }
 0x300   : > { %1327 = vmatpush.msra.mxu2 %v1313_v39 }
 0x302   : > { %1328 = vmatpush.msra.mxu2 %v1312_v4 }
 0x304   : > { %1329 = vmatpush.msra.mxu2 %v1311_v40  ;;  %v4180_v40 = vmov 32.0  }
 0x306   : > { %3697 = vmatmul.msk.f32.gmra.mxu3 %vm1155_vm12, %v3693_v34  ;;  %1330 = vmatpush.msra.mxu2 %v1310_v5 }
 0x307   : > { %3704 = vmatmul.msk.f32.gmra.mxu0 %vm1155_vm12, %v3700_v35  ;;  %3690 = vmatmul.msk.f32.gmra.mxu2 %vm1155_vm12, %v1153_v36 }
 0x308   : > { %1331 = vmatpush.msra.mxu2 %v1309_v56 }
 0x30a   : > { %1332 = vmatpush.msra.mxu2 %v1308_v6 }
 0x30c   : > { %1333 = vmatpush.msra.mxu2 %v1307_v7 }
 0x30e   : > { %3698 = vmatmul.msk.f32.gmra.mxu3 %vm1155_vm12, %v3694_v63  ;;  %1334 = vmatpush.msra.mxu2 %v1306_v8 }
 0x30f   : > { %3705 = vmatmul.msk.f32.gmra.mxu0 %vm1155_vm12, %v3701_v37  ;;  %3691 = vmatmul.msk.f32.gmra.mxu2 %vm1155_vm12, %v1154_v38 }
 0x310   : > { %1335 = vmatpush.msra.mxu2 %v1305_v42 }
 0x312   : > { %1336 = vmatpush.msra.mxu2 %v1304_v49 }
 0x314   : > { %1337 = vmatpush.msra.mxu2 %v1303_v50 }
 0x316   : > { %1338 = vmatpush.msra.mxu2 %v1302_v51 }
 0x37c   : > { %v1263_v41 = vpop.f32.mrf.mxu0 }
 0x37d   : > { %1287 = vrot.lane.b32.xlu2 %v1263_v41, %s5778_s20 }
 0x381   : > { %v1224_v43 = vpop.f32.mrf.mxu3 }
 0x382   : > { %1275 = vrot.lane.b32.xlu1 %v1224_v43, %s4178_s28  ;;  %v1185_v52 = vpop.f32.mrf.mxu2 }
 0x384   : > { %v1266_v55 = vpop.f32.mrf.mxu0 }
 0x389   : > { %v1227_v45 = vpop.f32.mrf.mxu3 }
 0x38a   : > { %1277 = vrot.lane.b32.xlu0 %v1227_v45, %s4178_s28  ;;  %1289 = vrot.lane.b32.xlu1 %v1266_v55, %s5778_s20  ;;  %v1188_v60 = vpop.f32.mrf.mxu2 }
 0x38c   : > { %v1269_v46 = vpop.f32.mrf.mxu0 }
 0x391   : > { %v1230_v47 = vpop.f32.mrf.mxu3 }
 0x392   : > { %1291 = vrot.lane.b32.xlu0 %v1269_v46, %s5778_s20  ;;  %1279 = vrot.lane.b32.xlu2 %v1230_v47, %s4178_s28  ;;  %v1191_v3 = vpop.f32.mrf.mxu2 }
 0x3d7   : > { %v1288_v54 = vpop.permute.xlu2 %1287 }
 0x3ec   : > { %v1280_v48 = vpop.permute.xlu2 %1279 }
 0x3ed   : > { %v1298_v61 = vsel %vm617_vm2, %v1191_v3, %v1280_v48  ;;  %v1461_v48 = vld [vmem:[%s5763_s8 + $0x10] sm:$0xff]  ;;  %v1460_v3 = vld [vmem:[%s5763_s8 + $0x8] sm:$0xff] }
 0x3f4   : > { %v1276_v53 = vpop.permute.xlu1 %1275 }
 0x3f5   : > { %v1296_v59 = vsel %vm617_vm2, %v1185_v52, %v1276_v53 }
 0x3f6   : > { %v1299_v44 = vsel %vm1041_vm11, %v1296_v59, %v1288_v54 }
 0x3f7   : > { %3706 = vmatmul.msk.f32.vlgmr.msra.gmra.mxu2 %vm1059_vm10, %v1299_v44 }
 0x3fc   : > { %v1278_v62 = vpop.permute.xlu0 %1277  ;;  %v1290_v0 = vpop.permute.xlu1 %1289 }
 0x3fd   : > { %v1297_v1 = vsel %vm617_vm2, %v1188_v60, %v1278_v62 }
 0x3fe   : > { %v1300_v2 = vsel %vm1041_vm11, %v1297_v1, %v1290_v0 }
 0x3ff   : > { %3707 = vmatmul.msk.f32.gmra.mxu2 %vm1059_vm10, %v1300_v2  ;;  %v1462_v2 = vld [vmem:[%s5763_s8 + $0x18] sm:$0xff] }
 0x400   : > { %1486 = vmatpush.msrb.mxu3 %v1462_v2  ;;  %v1714_v2 = vld [vmem:[%s5764_s9 + $0x68] sm:$0xff] }
 0x402   : > { %1487 = vmatpush.msrb.mxu3 %v1461_v48  ;;  %v1713_v48 = vld [vmem:[%s5764_s9 + $0x60] sm:$0xff] }
 0x404   : > { %v1292_v9 = vpop.permute.xlu0 %1291  ;;  %1488 = vmatpush.msrb.mxu3 %v1460_v3  ;;  %v1712_v3 = vld [vmem:[%s5764_s9 + $0x58] sm:$0xff] }
 0x405   : > { %v1301_v10 = vsel %vm1041_vm11, %v1298_v61, %v1292_v9  ;;  %v1459_v9 = vld [vmem:[%s5763_s8] sm:$0xff] }
 0x406   : > { %1489 = vmatpush.msrb.mxu3 %v1459_v9  ;;  %v1711_v9 = vld [vmem:[%s5764_s9 + $0x50] sm:$0xff] }
 0x407   : > { %3708 = vmatmul.msk.f32.gmra.mxu2 %vm1059_vm10, %v1301_v10 }
 0x47a   : > { %v1340_v11 = vpop.f32.mrf.mxu2 }
 0x47b   : > { %v1349_v12 = vmul.f32 %v1340_v11, %v1340_v11 }
 0x47d   : > { %v1352_v13 = vmul.f32 %v1349_v12, %v1340_v11 }
 0x47f   : > { %v1355_v14 = vmul.f32 0.044715, %v1352_v13 }
 0x481   : > { %v1358_v15 = vadd.f32 %v1355_v14, %v1340_v11 }
 0x482   : > { %v1343_v17 = vpop.f32.mrf.mxu2 }
 0x483   : > { %v1361_v18 = vmul.f32 0.7978846, %v1358_v15  ;;  %v1350_v19 = vmul.f32 %v1343_v17, %v1343_v17 }
 0x485   : > { %v1353_v20 = vmul.f32 %v1350_v19, %v1343_v17  ;;  %3999 = vtanh.f32 %v1361_v18 }
 0x487   : > { %v1356_v21 = vmul.f32 0.044715, %v1353_v20 }
 0x489   : > { %v1359_v22 = vadd.f32 %v1356_v21, %v1343_v17 }
 0x48a   : > { %v1346_v24 = vpop.f32.mrf.mxu2 }
 0x48b   : > { %v4000_v25 = vpop.eup %3999  ;;  %v1362_v16 = vmul.f32 0.7978846, %v1359_v22  ;;  %v1351_v26 = vmul.f32 %v1346_v24, %v1346_v24 }
 0x48c   : > { %v1367_v27 = vadd.f32 1.0, %v4000_v25  ;;  %v3942_v25 = vld [vmem:[%s5762_s7 + $0x2] ss:$0 sm:$0xff] }
 0x48d   : > { %v1354_v23 = vmul.f32 %v1351_v26, %v1346_v24  ;;  %4001 = vtanh.f32 %v1362_v16 }
 0x48e   : > { %v1370_v28 = vmul.f32 0.5, %v1367_v27 }
 0x48f   : > { %v1357_v58 = vmul.f32 0.044715, %v1354_v23  ;;  %v3943_v23 = vld [vmem:[%s5762_s7 + $0x3] ss:$0 sm:$0xff] }
 0x490   : > { %v1373_v29 = vmul.f32 %v1370_v28, %v1340_v11 }
 0x491   : > { %v1360_v30 = vadd.f32 %v1357_v58, %v1346_v24 }
 0x492   : > { %v1376_v31 = vsel %vm617_vm2, %v1373_v29, 0.0 }
 0x493   : > { %v4002_v57 = vpop.eup %4001  ;;  %v1363_v32 = vmul.f32 0.7978846, %v1360_v30  ;;  %1377 = vadd.xlane.f32.xlu1 %v1376_v31 }
 0x494   : > { %v1368_v33 = vadd.f32 1.0, %v4002_v57 }
 0x495   : > { %4003 = vtanh.f32 %v1363_v32 }
 0x496   : > { %v1371_v34 = vmul.f32 0.5, %v1368_v33  ;;  %4005 = vrcp.f32 %v4180_v40 }
 0x498   : > { %v1374_v35 = vmul.f32 %v1371_v34, %v1343_v17 }
 0x49a   : > { %v1379_v36 = vsel %vm617_vm2, %v1374_v35, 0.0 }
 0x49b   : > { %v4004_v63 = vpop.eup %4003  ;;  %1380 = vadd.xlane.f32.xlu2 %v1379_v36 }
 0x49c   : > { %v1369_v37 = vadd.f32 1.0, %v4004_v63  ;;  %v4006_v5 = vpop.eup %4005 }
 0x49d   : > { %v1386_v56 = vmul.f32 32.0, %v4006_v5  ;;  %vm1390_vm13 = vweird.f32 %v4006_v5 }
 0x49e   : > { %v1372_v38 = vmul.f32 0.5, %v1369_v37 }
 0x49f   : > { %v1387_v6 = vsub.f32 1.0, %v1386_v56 }
 0x4a0   : > { %v1375_v39 = vmul.f32 %v1372_v38, %v1346_v24 }
 0x4a1   : > { %v1388_v41 = vmul.f32 %v4006_v5, %v1387_v6 }
 0x4a2   : > { %v1382_v4 = vsel %vm617_vm2, %v1375_v39, 0.0 }
 0x4a3   : > { %1383 = vadd.xlane.f32.xlu0 %v1382_v4  ;;  %v1389_v7 = vadd.f32 %v4006_v5, %v1388_v41 }
 0x4a5   : > { %v4668_v8 = vsel %vm1390_vm13, %v4006_v5, %v1389_v7  ;;  %v3944_v7 = vld [vmem:[%s5762_s7 + $0x4] ss:$0 sm:$0xff] }
 0x506   : > { %v1378_v42 = vpop.xlane.xlu1 %1377 }
 0x507   : > { %v1392_v43 = vmul.f32 %v4668_v8, %v1378_v42 }
 0x509   : > { %v1395_v55 = vsub.f32 %v1373_v29, %v1392_v43 }
 0x50b   : > { %v1398_v45 = vmul.f32 %v1395_v55, %v1395_v55 }
 0x50d   : > { %v1401_v46 = vsel %vm617_vm2, %v1398_v45, 0.0 }
 0x50e   : > { %1402 = vadd.xlane.f32.xlu2 %v1401_v46  ;;  %v1381_v47 = vpop.xlane.xlu2 %1380  ;;  %v3715_v46 = vld [vmem:[%s5758_s3 + $0x18] sm:$0xff] }
 0x50f   : > { %v1393_v49 = vmul.f32 %v4668_v8, %v1381_v47  ;;  %v3721_v47 = vld [vmem:[%s5758_s3 + $0x30] sm:$0xff] }
 0x511   : > { %v1396_v50 = vsub.f32 %v1374_v35, %v1393_v49  ;;  %v3727_v49 = vld [vmem:[%s5758_s3 + $0x48] sm:$0xff] }
 0x513   : > { %v1399_v51 = vmul.f32 %v1396_v50, %v1396_v50 }
 0x515   : > { %v1404_v52 = vsel %vm617_vm2, %v1399_v51, 0.0  ;;  %v3716_v51 = vld [vmem:[%s5758_s3 + $0x20] sm:$0xff] }
 0x516   : > { %1405 = vadd.xlane.f32.xlu1 %v1404_v52  ;;  %v1384_v53 = vpop.xlane.xlu0 %1383  ;;  %v3722_v52 = vld [vmem:[%s5758_s3 + $0x38] sm:$0xff] }
 0x517   : > { %v1394_v54 = vmul.f32 %v4668_v8, %v1384_v53  ;;  %v3728_v53 = vld [vmem:[%s5758_s3 + $0x50] sm:$0xff] }
 0x519   : > { %v4675_v59 = vsub.f32 %v1375_v39, %v1394_v54  ;;  %v3723_v54 = vld [vmem:[%s5758_s3 + $0x40] sm:$0xff] }
 0x51b   : > { %v1400_v60 = vmul.f32 %v4675_v59, %v4675_v59 }
 0x51d   : > { %v1407_v44 = vsel %vm617_vm2, %v1400_v60, 0.0  ;;  %v3729_v60 = vld [vmem:[%s5758_s3 + $0x58] sm:$0xff] }
 0x51e   : > { %1408 = vadd.xlane.f32.xlu2 %v1407_v44  ;;  %v1501_v44 = vld [vmem:[%s5758_s3 + $0x8] sm:$0xff] }
 0x581   : > { %v1403_v62 = vpop.xlane.xlu2 %1402 }
 0x582   : > { %v1410_v0 = vmul.f32 %v1403_v62, %v4668_v8  ;;  %v1502_v62 = vld [vmem:[%s5758_s3 + $0x10] sm:$0xff] }
 0x584   : > { %v1413_v1 = vadd.f32 1e-05, %v1410_v0  ;;  %v1716_v0 = vld [vmem:[%s5764_s9 + $0x78] sm:$0xff] }
 0x586   : > { %4007 = vrsqrt.f32 %v1413_v1  ;;  %vm1422_vm15 = vweird.f32 %v1413_v1 }
 0x589   : > { %v1406_v61 = vpop.xlane.xlu1 %1405 }
 0x58a   : > { %v1411_v10 = vmul.f32 %v1406_v61, %v4668_v8 }
 0x58c   : > { %v4008_v11 = vpop.eup %4007  ;;  %v1414_v12 = vadd.f32 1e-05, %v1411_v10  ;;  %v1710_v10 = vld [vmem:[%s5764_s9 + $0x48] sm:$0xff] }
 0x58d   : > { %v1417_v13 = vmul.f32 %v4008_v11, %v1413_v1  ;;  %vm1423_vm14 = vweird.f32 %v4008_v11  ;;  %v1715_v1 = vld [vmem:[%s5764_s9 + $0x70] sm:$0xff] }
 0x58e   : > { %4009 = vrsqrt.f32 %v1414_v12  ;;  %vm1424_vm0 = vmor %vm1422_vm15, %vm1423_vm14  ;;  %vm1432_vm3 = vweird.f32 %v1414_v12 }
 0x58f   : > { %v1418_v14 = vmul.f32 %v4008_v11, %v1417_v13 }
 0x591   : > { %v1419_v15 = vmul.f32 0.5, %v1418_v14  ;;  %v1409_v17 = vpop.xlane.xlu2 %1408  ;;  %v1708_v14 = vld [vmem:[%s5764_s9 + $0x38] sm:$0xff] }
 0x592   : > { %v1412_v18 = vmul.f32 %v1409_v17, %v4668_v8  ;;  %v1707_v17 = vld [vmem:[%s5764_s9 + $0x30] sm:$0xff] }
 0x593   : > { %v1420_v19 = vsub.f32 1.5, %v1419_v15 }
 0x594   : > { %v4010_v20 = vpop.eup %4009  ;;  %v1415_v21 = vadd.f32 1e-05, %v1412_v18  ;;  %v1706_v18 = vld [vmem:[%s5764_s9 + $0x28] sm:$0xff] }
 0x595   : > { %v1421_v22 = vmul.f32 %v4008_v11, %v1420_v19  ;;  %v1427_v24 = vmul.f32 %v4010_v20, %v1414_v12  ;;  %vm1433_vm1 = vweird.f32 %v4010_v20 }
 0x596   : > { %4011 = vrsqrt.f32 %v1415_v21  ;;  %vm1434_vm4 = vmor %vm1432_vm3, %vm1433_vm1  ;;  %vm1442_vm6 = vweird.f32 %v1415_v21 }
 0x597   : > { %v1425_v16 = vsel %vm1424_vm0, %v4008_v11, %v1421_v22  ;;  %v1428_v26 = vmul.f32 %v4010_v20, %v1427_v24  ;;  %v1709_v11 = vld [vmem:[%s5764_s9 + $0x40] sm:$0xff] }
 0x598   : > { %v1446_v27 = vmul.f32 %v1425_v16, %v1395_v55  ;;  %v1704_v16 = vld [vmem:[%s5764_s9 + $0x18] sm:$0xff] }
 0x599   : > { %v1429_v28 = vmul.f32 0.5, %v1428_v26  ;;  %v1703_v26 = vld [vmem:[%s5764_s9 + $0x10] sm:$0xff] }
 0x59a   : > { %v1451_v58 = vmul.f32 %v3942_v25, %v1446_v27  ;;  %v1702_v27 = vld [vmem:[%s5764_s9 + $0x8] sm:$0xff] }
 0x59b   : > { %v1430_v29 = vsub.f32 1.5, %v1429_v28 }
 0x59c   : > { %v4012_v30 = vpop.eup %4011  ;;  %v1456_v31 = vadd.f32 %v3943_v23, %v1451_v58 }
 0x59d   : > { %v1431_v57 = vmul.f32 %v4010_v20, %v1430_v29  ;;  %v1437_v32 = vmul.f32 %v4012_v30, %v1415_v21  ;;  %vm1443_vm5 = vweird.f32 %v4012_v30 }
 0x59e   : > { %3709 = vmatmul.msk.f32.vlgmr.msrb.gmra.mxu3 %vm617_vm2, %v1456_v31  ;;  %vm1444_vm7 = vmor %vm1442_vm6, %vm1443_vm5  ;;  %vm1970_vm5 = vcmask 64512   ;;  %vm2380_vm6 = vcmask 130048  }
 0x59f   : > { %v1438_v33 = vmul.f32 %v4012_v30, %v1437_v32  ;;  %v1435_v34 = vsel %vm1434_vm4, %v4010_v20, %v1431_v57 }
 0x5a0   : > { %v1447_v35 = vmul.f32 %v1435_v34, %v1396_v50  ;;  %v1500_v50 = vld [vmem:[%s5758_s3] sm:$0xff] }
 0x5a1   : > { %v1439_v36 = vmul.f32 0.5, %v1438_v33 }
 0x5a2   : > { %v1452_v63 = vmul.f32 %v3942_v25, %v1447_v35 }
 0x5a3   : > { %v1440_v37 = vsub.f32 1.5, %v1439_v36 }
 0x5a4   : > { %v1457_v38 = vadd.f32 %v3943_v23, %v1452_v63 }
 0x5a5   : > { %v1441_v39 = vmul.f32 %v4012_v30, %v1440_v37 }
 0x5a6   : > { %3710 = vmatmul.msk.f32.gmra.mxu3 %vm617_vm2, %v1457_v38 }
 0x5a7   : > { %v1445_v4 = vsel %vm1444_vm7, %v4012_v30, %v1441_v39 }
 0x5a8   : > { %v1448_v40 = vmul.f32 %v1445_v4, %v4675_v59  ;;  %v3717_v59 = vld [vmem:[%s5758_s3 + $0x28] sm:$0xff] }
 0x5aa   : > { %v1453_v5 = vmul.f32 %v3942_v25, %v1448_v40  ;;  %v1705_v25 = vld [vmem:[%s5764_s9 + $0x20] sm:$0xff] }
 0x5ac   : > { %v1458_v56 = vadd.f32 %v3943_v23, %v1453_v5  ;;  %v1701_v23 = vld [vmem:[%s5764_s9] sm:$0xff] }
 0x5ae   : > { %3711 = vmatmul.msk.f32.gmra.mxu3 %vm617_vm2, %v1458_v56 }
 0x621   : > { %v1491_v6 = vpop.f32.mrf.mxu3 }
 0x622   : > { %v4716_v45 = vadd.f32 %v3944_v7, %v1491_v6 }
 0x629   : > { %v1494_v41 = vpop.f32.mrf.mxu3 }
 0x62a   : > { %v4710_v55 = vadd.f32 %v3944_v7, %v1494_v41 }
 0x631   : > { %v1497_v42 = vpop.f32.mrf.mxu3 }
 0x632   : > { %v4708_v43 = vadd.f32 %v3944_v7, %v1497_v42  ;;  %v3945_v7 = vld [vmem:[%s5762_s7 + $0x5] ss:$0 sm:$0xff] }
 0x634   : > { %1526 = vmatpush.msra.mxu1 %v4708_v43  ;;  %1565 = vmatpush.msra.mxu0 %v4708_v43 }
 0x635   : > { %1604 = vmatpush.msrb.mxu2 %v4708_v43  ;;  %1643 = vmatpush.msra.mxu3 %v4708_v43 }
 0x636   : > { %1527 = vmatpush.msra.mxu1 %v4710_v55  ;;  %1566 = vmatpush.msra.mxu0 %v4710_v55 }
 0x637   : > { %1605 = vmatpush.msrb.mxu2 %v4710_v55  ;;  %1644 = vmatpush.msra.mxu3 %v4710_v55 }
 0x638   : > { %1528 = vmatpush.msra.mxu1 %v4716_v45  ;;  %1567 = vmatpush.msra.mxu0 %v4716_v45 }
 0x639   : > { %1606 = vmatpush.msrb.mxu2 %v4716_v45  ;;  %1645 = vmatpush.msra.mxu3 %v4716_v45 }
 0x63a   : > { %3718 = vmatmul.msk.f32.vlgmr.msra.gmra.mxu0 %vm1503_vm8, %v3715_v46  ;;  %3724 = vmatmul.msk.f32.vlgmr.msrb.gmra.mxu2 %vm1503_vm8, %v3721_v47 }
 0x63b   : > { %3730 = vmatmul.msk.f32.vlgmr.msra.gmra.mxu3 %vm1503_vm8, %v3727_v49  ;;  %3712 = vmatmul.msk.f32.vlgmr.msra.gmra.mxu1 %vm1503_vm8, %v1500_v50 }
 0x63c   : > { %1719 = vmatpush.msrb.mxu1 %v1716_v0 }
 0x63e   : > { %1720 = vmatpush.msrb.mxu1 %v1715_v1 }
 0x640   : > { %1721 = vmatpush.msrb.mxu1 %v1714_v2 }
 0x642   : > { %3719 = vmatmul.msk.f32.gmra.mxu0 %vm1503_vm8, %v3716_v51  ;;  %3725 = vmatmul.msk.f32.gmra.mxu2 %vm1503_vm8, %v3722_v52 }
 0x643   : > { %3731 = vmatmul.msk.f32.gmra.mxu3 %vm1503_vm8, %v3728_v53  ;;  %3713 = vmatmul.msk.f32.gmra.mxu1 %vm1503_vm8, %v1501_v44 }
 0x644   : > { %1722 = vmatpush.msrb.mxu1 %v1713_v48 }
 0x646   : > { %1723 = vmatpush.msrb.mxu1 %v1712_v3 }
 0x648   : > { %1724 = vmatpush.msrb.mxu1 %v1711_v9 }
 0x64a   : > { %3726 = vmatmul.msk.f32.gmra.mxu2 %vm1503_vm8, %v3723_v54  ;;  %3720 = vmatmul.msk.f32.gmra.mxu0 %vm1503_vm8, %v3717_v59 }
 0x64b   : > { %3732 = vmatmul.msk.f32.gmra.mxu3 %vm1503_vm8, %v3729_v60  ;;  %3714 = vmatmul.msk.f32.gmra.mxu1 %vm1503_vm8, %v1502_v62 }
 0x64c   : > { %1725 = vmatpush.msrb.mxu1 %v1710_v10 }
 0x64e   : > { %1726 = vmatpush.msrb.mxu1 %v1709_v11 }
 0x650   : > { %1727 = vmatpush.msrb.mxu1 %v1708_v14 }
 0x652   : > { %1728 = vmatpush.msrb.mxu1 %v1707_v17 }
 0x654   : > { %1729 = vmatpush.msrb.mxu1 %v1706_v18 }
 0x656   : > { %1730 = vmatpush.msrb.mxu1 %v1705_v25 }
 0x658   : > { %1731 = vmatpush.msrb.mxu1 %v1704_v16 }
 0x65a   : > { %1732 = vmatpush.msrb.mxu1 %v1703_v26 }
 0x65c   : > { %1733 = vmatpush.msrb.mxu1 %v1702_v27 }
 0x65e   : > { %1734 = vmatpush.msrb.mxu1 %v1701_v23 }
 0x6b7   : > { %v1569_v61 = vpop.f32.mrf.mxu0 }
 0x6b8   : > { %1659 = vrot.lane.b32.xlu0 %v1569_v61, %s4178_s28  ;;  %v1530_v28 = vpop.f32.mrf.mxu1 }
 0x6bd   : > { %v1608_v12 = vpop.f32.mrf.mxu2 }
 0x6be   : > { %1671 = vrot.lane.b32.xlu1 %v1608_v12, %s5778_s20  ;;  %v1647_v13 = vpop.f32.mrf.mxu3 }
 0x6bf   : > { %v1572_v15 = vpop.f32.mrf.mxu0  ;;  %1683 = vrot.lane.b32.xlu2 %v1647_v13, %s5780_s30 }
 0x6c0   : > { %1661 = vrot.lane.b32.xlu0 %v1572_v15, %s4178_s28  ;;  %v1533_v34 = vpop.f32.mrf.mxu1 }
 0x6c5   : > { %v1611_v19 = vpop.f32.mrf.mxu2 }
 0x6c6   : > { %v1650_v20 = vpop.f32.mrf.mxu3  ;;  %1673 = vrot.lane.b32.xlu1 %v1611_v19, %s5778_s20 }
 0x6c7   : > { %v1575_v21 = vpop.f32.mrf.mxu0 }
 0x6c8   : > { %1685 = vrot.lane.b32.xlu0 %v1650_v20, %s5780_s30  ;;  %1663 = vrot.lane.b32.xlu2 %v1575_v21, %s4178_s28  ;;  %v1536_v4 = vpop.f32.mrf.mxu1  ;;  %s4184_s28 = smov 120  }
 0x6cd   : > { %v1614_v22 = vpop.f32.mrf.mxu2 }
 0x6ce   : > { %v1653_v24 = vpop.f32.mrf.mxu3  ;;  %1675 = vrot.lane.b32.xlu1 %v1614_v22, %s5778_s20 }
 0x6d0   : > { %1687 = vrot.lane.b32.xlu0 %v1653_v24, %s5780_s30 }
 0x719   : > { %v1684_v57 = vpop.permute.xlu2 %1683 }
 0x722   : > { %v1664_v39 = vpop.permute.xlu2 %1663 }
 0x723   : > { %v1694_v40 = vsel %vm617_vm2, %v1536_v4, %v1664_v39 }
 0x72a   : > { %v1660_v58 = vpop.permute.xlu0 %1659 }
 0x72b   : > { %v1692_v29 = vsel %vm617_vm2, %v1530_v28, %v1660_v58 }
 0x730   : > { %v1672_v30 = vpop.permute.xlu1 %1671 }
 0x731   : > { %v1695_v31 = vsel %vm1041_vm11, %v1692_v29, %v1672_v30 }
 0x732   : > { %v1698_v32 = vsel %vm1059_vm10, %v1695_v31, %v1684_v57  ;;  %v1662_v33 = vpop.permute.xlu0 %1661 }
 0x733   : > { %1735 = vmatmul.f32.vlgmr.msrb.gmra.mxu1 %v1698_v32  ;;  %v1693_v35 = vsel %vm617_vm2, %v1533_v34, %v1662_v33 }
 0x738   : > { %v1674_v36 = vpop.permute.xlu1 %1673 }
 0x739   : > { %v1696_v63 = vsel %vm1041_vm11, %v1693_v35, %v1674_v36 }
 0x73a   : > { %v1686_v37 = vpop.permute.xlu0 %1685 }
 0x73b   : > { %v1699_v38 = vsel %vm1059_vm10, %v1696_v63, %v1686_v37 }
 0x73c   : > { %1738 = vmatmul.f32.gmra.mxu1 %v1699_v38 }
 0x740   : > { %v1676_v5 = vpop.permute.xlu1 %1675 }
 0x741   : > { %v1697_v56 = vsel %vm1041_vm11, %v1694_v40, %v1676_v5  ;;  %v1866_v40 = vld [vmem:[%s5766_s11 + $0x18] sm:$0xff]  ;;  %v1865_v5 = vld [vmem:[%s5766_s11 + $0x10] sm:$0xff] }
 0x742   : > { %v1688_v6 = vpop.permute.xlu0 %1687  ;;  %1890 = vmatpush.msrb.mxu0 %v1866_v40 }
 0x743   : > { %v1700_v41 = vsel %vm1059_vm10, %v1697_v56, %v1688_v6  ;;  %v1864_v56 = vld [vmem:[%s5766_s11 + $0x8] sm:$0xff]  ;;  %v1863_v6 = vld [vmem:[%s5766_s11] sm:$0xff] }
 0x744   : > { %1741 = vmatmul.f32.gmra.mxu1 %v1700_v41  ;;  %1891 = vmatpush.msrb.mxu0 %v1865_v5 }
 0x746   : > { %1892 = vmatpush.msrb.mxu0 %v1864_v56 }
 0x748   : > { %1893 = vmatpush.msrb.mxu0 %v1863_v6 }
 0x7b0   : > { %v1736_v42 = vpop.f32.mrf.mxu1 }
 0x7b1   : > { %v1737_v46 = vadd.f32 %v3945_v7, %v1736_v42 }
 0x7b3   : > { %v1745_v47 = vmul.f32 %v1737_v46, %v1737_v46 }
 0x7b5   : > { %v1748_v49 = vmul.f32 %v1745_v47, %v1737_v46 }
 0x7b7   : > { %v1751_v50 = vmul.f32 0.044715, %v1748_v49 }
 0x7b9   : > { %v1754_v51 = vadd.f32 %v1751_v50, %v1737_v46  ;;  %v1739_v52 = vpop.f32.mrf.mxu1 }
 0x7ba   : > { %v1740_v53 = vadd.f32 %v3945_v7, %v1739_v52 }
 0x7bb   : > { %v1757_v54 = vmul.f32 0.7978846, %v1754_v51 }
 0x7bc   : > { %v1746_v59 = vmul.f32 %v1740_v53, %v1740_v53 }
 0x7bd   : > { %4013 = vtanh.f32 %v1757_v54 }
 0x7be   : > { %v1749_v60 = vmul.f32 %v1746_v59, %v1740_v53 }
 0x7c0   : > { %v1752_v44 = vmul.f32 0.044715, %v1749_v60 }
 0x7c1   : > { %v1742_v62 = vpop.f32.mrf.mxu1 }
 0x7c2   : > { %v1755_v0 = vadd.f32 %v1752_v44, %v1740_v53  ;;  %v1743_v1 = vadd.f32 %v3945_v7, %v1742_v62  ;;  %v3946_v44 = vld [vmem:[%s5762_s7 + $0x6] ss:$0 sm:$0xff] }
 0x7c3   : > { %v4014_v2 = vpop.eup %4013 }
 0x7c4   : > { %v1758_v48 = vmul.f32 0.7978846, %v1755_v0  ;;  %v1747_v3 = vmul.f32 %v1743_v1, %v1743_v1  ;;  %v1763_v61 = vadd.f32 1.0, %v4014_v2 }
 0x7c6   : > { %v1750_v9 = vmul.f32 %v1747_v3, %v1743_v1  ;;  %v1766_v10 = vmul.f32 0.5, %v1763_v61  ;;  %4015 = vtanh.f32 %v1758_v48  ;;  %v3947_v48 = vld [vmem:[%s5762_s7 + $0x7] ss:$0 sm:$0xff] }
 0x7c8   : > { %v1753_v11 = vmul.f32 0.044715, %v1750_v9  ;;  %v1769_v12 = vmul.f32 %v1766_v10, %v1737_v46 }
 0x7ca   : > { %v1756_v13 = vadd.f32 %v1753_v11, %v1743_v1  ;;  %v1772_v14 = vadd.f32 %v1769_v12, %v4716_v45 }
 0x7cc   : > { %v4016_v15 = vpop.eup %4015  ;;  %v1759_v17 = vmul.f32 0.7978846, %v1756_v13  ;;  %v1775_v18 = vsel %vm617_vm2, %v1772_v14, 0.0 }
 0x7cd   : > { %1776 = vadd.xlane.f32.xlu2 %v1775_v18  ;;  %v1764_v19 = vadd.f32 1.0, %v4016_v15 }
 0x7ce   : > { %4017 = vtanh.f32 %v1759_v17 }
 0x7cf   : > { %v1767_v20 = vmul.f32 0.5, %v1764_v19 }
 0x7d1   : > { %v1770_v21 = vmul.f32 %v1767_v20, %v1740_v53 }
 0x7d3   : > { %v1773_v22 = vadd.f32 %v1770_v21, %v4710_v55 }
 0x7d4   : > { %v4018_v24 = vpop.eup %4017 }
 0x7d5   : > { %v1778_v25 = vsel %vm617_vm2, %v1773_v22, 0.0  ;;  %v1765_v16 = vadd.f32 1.0, %v4018_v24 }
 0x7d6   : > { %1779 = vadd.xlane.f32.xlu1 %v1778_v25 }
 0x7d7   : > { %v1768_v26 = vmul.f32 0.5, %v1765_v16 }
 0x7d9   : > { %v1771_v27 = vmul.f32 %v1768_v26, %v1743_v1 }
 0x7db   : > { %v1774_v45 = vadd.f32 %v1771_v27, %v4708_v43  ;;  %v3948_v27 = vld [vmem:[%s5762_s7 + $0x9] ss:$0 sm:$0xff] }
 0x7dd   : > { %v1781_v23 = vsel %vm617_vm2, %v1774_v45, 0.0 }
 0x7de   : > { %1782 = vadd.xlane.f32.xlu0 %v1781_v23 }
 0x840   : > { %v1777_v28 = vpop.xlane.xlu2 %1776 }
 0x841   : > { %v1784_v58 = vmul.f32 %v1777_v28, %v4668_v8 }
 0x843   : > { %v1787_v29 = vsub.f32 %v1772_v14, %v1784_v58 }
 0x845   : > { %v1790_v30 = vmul.f32 %v1787_v29, %v1787_v29 }
 0x847   : > { %v1793_v31 = vsel %vm617_vm2, %v1790_v30, 0.0 }
 0x848   : > { %1794 = vadd.xlane.f32.xlu2 %v1793_v31 }
 0x849   : > { %v1780_v55 = vpop.xlane.xlu1 %1779 }
 0x84a   : > { %v1785_v57 = vmul.f32 %v1780_v55, %v4668_v8 }
 0x84c   : > { %v1788_v32 = vsub.f32 %v1773_v22, %v1785_v57 }
 0x84e   : > { %v1791_v33 = vmul.f32 %v1788_v32, %v1788_v32 }
 0x850   : > { %v1796_v34 = vsel %vm617_vm2, %v1791_v33, 0.0 }
 0x851   : > { %1797 = vadd.xlane.f32.xlu1 %v1796_v34  ;;  %v1783_v43 = vpop.xlane.xlu0 %1782 }
 0x852   : > { %v1786_v35 = vmul.f32 %v1783_v43, %v4668_v8 }
 0x854   : > { %v4854_v36 = vsub.f32 %v1774_v45, %v1786_v35 }
 0x856   : > { %v1792_v63 = vmul.f32 %v4854_v36, %v4854_v36 }
 0x858   : > { %v1799_v37 = vsel %vm617_vm2, %v1792_v63, 0.0 }
 0x859   : > { %1800 = vadd.xlane.f32.xlu0 %v1799_v37 }
 0x8bb   : > { %v1795_v38 = vpop.xlane.xlu2 %1794 }
 0x8bc   : > { %v1802_v39 = vmul.f32 %v1795_v38, %v4668_v8 }
 0x8be   : > { %v1805_v4 = vadd.f32 1e-05, %v1802_v39 }
 0x8c0   : > { %4019 = vrsqrt.f32 %v1805_v4  ;;  %vm1814_vm12 = vweird.f32 %v1805_v4 }
 0x8c4   : > { %v1798_v41 = vpop.xlane.xlu1 %1797 }
 0x8c5   : > { %v1803_v7 = vmul.f32 %v1798_v41, %v4668_v8 }
 0x8c6   : > { %v4020_v42 = vpop.eup %4019 }
 0x8c7   : > { %v1809_v46 = vmul.f32 %v4020_v42, %v1805_v4  ;;  %v1806_v47 = vadd.f32 1e-05, %v1803_v7  ;;  %vm1815_vm9 = vweird.f32 %v4020_v42 }
 0x8c8   : > { %vm1816_vm13 = vmor %vm1814_vm12, %vm1815_vm9 }
 0x8c9   : > { %v1810_v49 = vmul.f32 %v4020_v42, %v1809_v46  ;;  %4021 = vrsqrt.f32 %v1806_v47  ;;  %vm1824_vm15 = vweird.f32 %v1806_v47 }
 0x8cb   : > { %v1811_v50 = vmul.f32 0.5, %v1810_v49 }
 0x8cc   : > { %v1801_v51 = vpop.xlane.xlu0 %1800 }
 0x8cd   : > { %v1812_v52 = vsub.f32 1.5, %v1811_v50  ;;  %v1804_v53 = vmul.f32 %v1801_v51, %v4668_v8 }
 0x8cf   : > { %v4022_v54 = vpop.eup %4021  ;;  %v1813_v59 = vmul.f32 %v4020_v42, %v1812_v52  ;;  %v1807_v60 = vadd.f32 1e-05, %v1804_v53 }
 0x8d0   : > { %v1819_v62 = vmul.f32 %v4022_v54, %v1806_v47  ;;  %vm1825_vm14 = vweird.f32 %v4022_v54 }
 0x8d1   : > { %v1817_v0 = vsel %vm1816_vm13, %v4020_v42, %v1813_v59  ;;  %4023 = vrsqrt.f32 %v1807_v60  ;;  %vm1826_vm0 = vmor %vm1824_vm15, %vm1825_vm14  ;;  %vm1834_vm3 = vweird.f32 %v1807_v60 }
 0x8d2   : > { %v1838_v1 = vmul.f32 %v1817_v0, %v1787_v29  ;;  %v1820_v2 = vmul.f32 %v4022_v54, %v1819_v62 }
 0x8d4   : > { %v1843_v3 = vmul.f32 %v3946_v44, %v1838_v1  ;;  %v1821_v61 = vmul.f32 0.5, %v1820_v2 }
 0x8d6   : > { %v1822_v9 = vsub.f32 1.5, %v1821_v61  ;;  %v4880_v10 = vadd.f32 %v3947_v48, %v1843_v3 }
 0x8d7   : > { %v4024_v11 = vpop.eup %4023 }
 0x8d8   : > { %v1823_v12 = vmul.f32 %v4022_v54, %v1822_v9  ;;  %v1829_v13 = vmul.f32 %v4024_v11, %v1807_v60  ;;  %3733 = vmatmul.msk.f32.vlgmr.msrb.gmra.mxu0 %vm617_vm2, %v4880_v10  ;;  %vm1835_vm1 = vweird.f32 %v4024_v11 }
 0x8d9   : > { %vm1836_vm4 = vmor %vm1834_vm3, %vm1835_vm1 }
 0x8da   : > { %v1827_v14 = vsel %vm1826_vm0, %v4022_v54, %v1823_v12  ;;  %v1830_v15 = vmul.f32 %v4024_v11, %v1829_v13 }
 0x8db   : > { %v1839_v17 = vmul.f32 %v1827_v14, %v1788_v32 }
 0x8dc   : > { %v1831_v18 = vmul.f32 0.5, %v1830_v15 }
 0x8dd   : > { %v1844_v19 = vmul.f32 %v3946_v44, %v1839_v17  ;;  %v1851_v17 = vld [vmem:[%s5765_s10] sm:$0xff] }
 0x8de   : > { %v1832_v20 = vsub.f32 1.5, %v1831_v18 }
 0x8df   : > { %v4884_v21 = vadd.f32 %v3947_v48, %v1844_v19 }
 0x8e0   : > { %v1833_v22 = vmul.f32 %v4024_v11, %v1832_v20 }
 0x8e1   : > { %3734 = vmatmul.msk.f32.gmra.mxu0 %vm617_vm2, %v4884_v21 }
 0x8e2   : > { %v1837_v24 = vsel %vm1836_vm4, %v4024_v11, %v1833_v22  ;;  %v1852_v22 = vld [vmem:[%s5765_s10 + $0x8] sm:$0xff] }
 0x8e3   : > { %v1840_v25 = vmul.f32 %v1837_v24, %v4854_v36 }
 0x8e5   : > { %v1845_v16 = vmul.f32 %v3946_v44, %v1840_v25 }
 0x8e7   : > { %v4889_v26 = vadd.f32 %v3947_v48, %v1845_v16 }
 0x8e9   : > { %3735 = vmatmul.msk.f32.gmra.mxu0 %vm617_vm2, %v4889_v26 }
 0x955   : > { %v1895_v45 = vpop.f32.mrf.mxu0 }
 0x956   : > { %v4896_v23 = vadd.f32 %v3948_v27, %v1895_v45 }
 0x958   : > { %1925 = vrot.lane.b32.xlu0 %v4896_v23, %s4182_s27  ;;  %v1934_v62 = vmul.f32 0.35355338, %v4896_v23 }
 0x95e   : > { %v1898_v28 = vpop.f32.mrf.mxu0 }
 0x95f   : > { %v4900_v58 = vadd.f32 %v3948_v27, %v1898_v28 }
 0x961   : > { %1927 = vrot.lane.b32.xlu1 %v4900_v58, %s4182_s27  ;;  %1918 = vrot.lane.b32.xlu0 %v4900_v58, %s4183_s29  ;;  %v1935_v1 = vmul.f32 0.35355338, %v4900_v58 }
 0x966   : > { %v1901_v29 = vpop.f32.mrf.mxu0 }
 0x967   : > { %v4906_v30 = vadd.f32 %v3948_v27, %v1901_v29  ;;  %v1853_v27 = vld [vmem:[%s5765_s10 + $0x10] sm:$0xff] }
 0x969   : > { %1916 = vrot.lane.b32.xlu1 %v4896_v23, %s4183_s29  ;;  %1909 = vrot.lane.b32.xlu0 %v4900_v58, %s4184_s28  ;;  %v1936_v2 = vmul.f32 0.35355338, %v4906_v30 }
 0x96a   : > { %1929 = vrot.lane.b32.xlu2 %v4906_v30, %s4182_s27 }
 0x971   : > { %1907 = vrot.lane.b32.xlu1 %v4896_v23, %s4184_s28 }
 0x972   : > { %1920 = vrot.lane.b32.xlu2 %v4906_v30, %s4183_s29 }
 0x97a   : > { %1911 = vrot.lane.b32.xlu2 %v4906_v30, %s4184_s28 }
 0x9c4   : > { %v4920_v31 = vpop.permute.xlu2 %1929 }
 0x9c5   : > { %1968 = vrot.lane.b32.xlu2 %v4920_v31, %s5780_s30  ;;  %v1945_v15 = vmul.f32 0.35355338, %v4920_v31 }
 0x9ca   : > { %v4924_v55 = vpop.permute.xlu0 %1925 }
 0x9cb   : > { %1964 = vrot.lane.b32.xlu1 %v4924_v55, %s5780_s30  ;;  %v1943_v13 = vmul.f32 0.35355338, %v4924_v55 }
 0x9cc   : > { %v4928_v57 = vpop.permute.xlu2 %1920 }
 0x9cd   : > { %1962 = vrot.lane.b32.xlu2 %v4928_v57, %s5780_s30  ;;  %v3890_v38 = vpack.i.bf16 %v4928_v57, %v4924_v55  ;;  %v1942_v12 = vmul.f32 0.35355338, %v4928_v57 }
 0x9d3   : > { %v4932_v32 = vpop.permute.xlu1 %1927  ;;  %v4940_v34 = vpop.permute.xlu0 %1918 }
 0x9d4   : > { %v4934_v33 = vpop.permute.xlu2 %1911  ;;  %1966 = vrot.lane.b32.xlu0 %v4932_v32, %s5780_s30  ;;  %v3885_v37 = vpack.i.bf16 %v4932_v32, %v4920_v31  ;;  %v1941_v11 = vmul.f32 0.35355338, %v4940_v34  ;;  %v1944_v14 = vmul.f32 0.35355338, %v4932_v32  ;;  %v1854_v31 = vld [vmem:[%s5765_s10 + $0x18] sm:$0xff] }
 0x9d5   : > { %1956 = vrot.lane.b32.xlu2 %v4934_v33, %s5780_s30  ;;  %v1939_v61 = vmul.f32 0.35355338, %v4934_v33 }
 0x9db   : > { %v4942_v43 = vpop.permute.xlu1 %1916  ;;  %v4952_v36 = vpop.permute.xlu0 %1909 }
 0x9dc   : > { %1958 = vrot.lane.b32.xlu1 %v4942_v43, %s5780_s30  ;;  %1960 = vrot.lane.b32.xlu0 %v4940_v34, %s5780_s30  ;;  %v3880_v35 = vpack.i.bf16 %v4942_v43, %v4940_v34  ;;  %v1938_v3 = vmul.f32 0.35355338, %v4952_v36  ;;  %v1940_v9 = vmul.f32 0.35355338, %v4942_v43  ;;  %v1855_v34 = vld [vmem:[%s5765_s10 + $0x20] sm:$0xff] }
 0x9dd   : > { %1950 = vrot.lane.b32.xlu2 %v4906_v30, %s5780_s30 }
 0x9e3   : > { %v4954_v63 = vpop.permute.xlu1 %1907 }
 0x9e4   : > { %1952 = vrot.lane.b32.xlu1 %v4954_v63, %s5780_s30  ;;  %1954 = vrot.lane.b32.xlu0 %v4952_v36, %s5780_s30  ;;  %v1937_v48 = vmul.f32 0.35355338, %v4954_v63 }
 0x9e5   : > { %3881 = vrot.lane.b32.xlu2 %v3880_v35, %s5778_s20 }
 0x9ec   : > { %1946 = vrot.lane.b32.xlu1 %v4896_v23, %s5780_s30  ;;  %1948 = vrot.lane.b32.xlu0 %v4900_v58, %s5780_s30  ;;  %s517_s30 = smul.u32 3, %s4279_s22 }
 0x9ee   : > { %p518_p4 = scmp.lt.s32.totalorder %s517_s30, 5 }
 0x9f0   : > { %s5790_s30 = smov (!%p518_p4, %s517_s30), 5 }
 0x9f1   : > { %s3643_s23 = sshll.u32 %s5790_s30, 3 }
 0x9f4   : > { %3886 = vrot.lane.b32.xlu1 %v3885_v37, %s5778_s20  ;;  %3891 = vrot.lane.b32.xlu0 %v3890_v38, %s5778_s20  ;;  %v1856_v38 = vld [vmem:[%s5765_s10 + $0x28] sm:$0xff] }
 0xa1f   : > { %v1969_v39 = vpop.permute.xlu2 %1968 }
 0xa20   : > { %3736 = vmatpush.xpose.msk.msra.mxu2 %vm1970_vm5, %v1969_v39 }
 0xa27   : > { %v1963_v5 = vpop.permute.xlu2 %1962 }
 0xa2f   : > { %v1957_v42 = vpop.permute.xlu2 %1956 }
 0xa37   : > { %v1951_v49 = vpop.permute.xlu2 %1950 }
 0xa3d   : > { %v1965_v4 = vpop.permute.xlu1 %1964 }
 0xa3f   : > { %v3882_v59 = vpop.permute.xlu2 %3881 }
 0xa40   : > { %v3883_v44 = vunpack.i.l.bf16 %v3882_v59  ;;  %v3884_v0 = vunpack.i.h.bf16 %v3882_v59 }
 0xa46   : > { %v1967_v40 = vpop.permute.xlu0 %1966 }
 0xa47   : > { %3737 = vmatpush.xpose.msk.msra.mxu2 %vm1970_vm5, %v1967_v40 }
 0xa4b   : > { %3738 = vmatpush.xpose.msk.msra.mxu2 %vm1970_vm5, %v1965_v4 }
 0xa4e   : > { %v1959_v56 = vpop.permute.xlu1 %1958  ;;  %v1961_v6 = vpop.permute.xlu0 %1960 }
 0xa4f   : > { %3739 = vmatpush.xpose.msk.msra.mxu2 %vm1970_vm5, %v1963_v5  ;;  %v1857_v5 = vld [vmem:[%s5765_s10 + $0x30] sm:$0xff] }
 0xa53   : > { %3740 = vmatpush.xpose.msk.msra.mxu2 %vm1970_vm5, %v1961_v6 }
 0xa56   : > { %v1953_v41 = vpop.permute.xlu1 %1952  ;;  %v1955_v7 = vpop.permute.xlu0 %1954 }
 0xa57   : > { %3741 = vmatpush.xpose.msk.msra.mxu2 %vm1970_vm5, %v1959_v56 }
 0xa5b   : > { %3742 = vmatpush.xpose.msk.msra.mxu2 %vm1970_vm5, %v1957_v42  ;;  %v3900_v42 = vpack.i.bf16 %v4906_v30, %v4954_v63 }
 0xa5e   : > { %v1947_v46 = vpop.permute.xlu1 %1946  ;;  %v1949_v47 = vpop.permute.xlu0 %1948 }
 0xa5f   : > { %3743 = vmatpush.xpose.msk.msra.mxu2 %vm1970_vm5, %v1955_v7  ;;  %v3895_v7 = vpack.i.bf16 %v4952_v36, %v4934_v33 }
 0xa63   : > { %3744 = vmatpush.xpose.msk.msra.mxu2 %vm1970_vm5, %v1953_v41 }
 0xa66   : > { %v3887_v50 = vpop.permute.xlu1 %3886  ;;  %v3892_v52 = vpop.permute.xlu0 %3891 }
 0xa67   : > { %v3888_v51 = vunpack.i.l.bf16 %v3887_v50  ;;  %3745 = vmatpush.xpose.msk.msra.mxu2 %vm1970_vm5, %v1951_v49  ;;  %v3889_v53 = vunpack.i.h.bf16 %v3887_v50  ;;  %v3893_v54 = vunpack.i.l.bf16 %v3892_v52  ;;  %v3894_v60 = vunpack.i.h.bf16 %v3892_v52 }
 0xa69   : > { %2292 = vmatpush.msrb.mxu3 %v3888_v51 }
 0xa6b   : > { %3746 = vmatpush.xpose.msk.msra.mxu2 %vm1970_vm5, %v1949_v47  ;;  %2293 = vmatpush.msrb.mxu3 %v3889_v53  ;;  %v1858_v47 = vld [vmem:[%s5765_s10 + $0x38] sm:$0xff] }
 0xa6d   : > { %2294 = vmatpush.msrb.mxu3 %v3893_v54 }
 0xa6f   : > { %3747 = vmatpush.xpose.msk.msra.mxu2 %vm1970_vm5, %v1947_v46  ;;  %2295 = vmatpush.msrb.mxu3 %v3894_v60  ;;  %v3905_v46 = vpack.i.bf16 %v4896_v23, %v4900_v58 }
 0xa71   : > { %2296 = vmatpush.msrb.mxu3 %v3883_v44 }
 0xa72   : > { %3748 = vmatmul.msk.f32.vlgmr.msra.gmra.mxu2 %vm1970_vm5, %v1934_v62 }
 0xa73   : > { %2297 = vmatpush.msrb.mxu3 %v3884_v0 }
 0xa7a   : > { %3749 = vmatmul.msk.f32.gmra.mxu2 %vm1970_vm5, %v1935_v1 }
 0xa82   : > { %3750 = vmatmul.msk.f32.gmra.mxu2 %vm1970_vm5, %v1936_v2  ;;  %v1859_v2 = vld [vmem:[%s5765_s10 + $0x40] sm:$0xff] }
 0xa8a   : > { %3751 = vmatmul.msk.f32.gmra.mxu2 %vm1970_vm5, %v1937_v48 }
 0xa92   : > { %3752 = vmatmul.msk.f32.gmra.mxu2 %vm1970_vm5, %v1938_v3 }
 0xa9a   : > { %3753 = vmatmul.msk.f32.gmra.mxu2 %vm1970_vm5, %v1939_v61 }
 0xaa2   : > { %3754 = vmatmul.msk.f32.gmra.mxu2 %vm1970_vm5, %v1940_v9 }
 0xaaa   : > { %3755 = vmatmul.msk.f32.gmra.mxu2 %vm1970_vm5, %v1941_v11 }
 0xab2   : > { %3756 = vmatmul.msk.f32.gmra.mxu2 %vm1970_vm5, %v1942_v12 }
 0xaba   : > { %3757 = vmatmul.msk.f32.gmra.mxu2 %vm1970_vm5, %v1943_v13 }
 0xac2   : > { %3758 = vmatmul.msk.f32.gmra.mxu2 %vm1970_vm5, %v1944_v14 }
 0xaca   : > { %3759 = vmatmul.msk.f32.gmra.mxu2 %vm1970_vm5, %v1945_v15  ;;  %v1861_v15 = vld [vmem:[%s5765_s10 + $0x50] sm:$0xff] }
 0xaf5   : > { %v2048_v18 = vpop.f32.mrf.mxu2 }
 0xaf6   : > { %v2049_v19 = vadd.f32 %v2048_v18, %v1851_v17  ;;  %v1860_v17 = vld [vmem:[%s5765_s10 + $0x48] sm:$0xff] }
 0xaf8   : > { %v2084_v20 = vsel %vm1059_vm10, %v2049_v19, -inf }
 0xaf9   : > { %2085 = vmax.xlane.f32.xlu2 %v2084_v20 }
 0xafd   : > { %v2051_v24 = vpop.f32.mrf.mxu2 }
 0xafe   : > { %v2052_v25 = vadd.f32 %v2051_v24, %v1852_v22 }
 0xb00   : > { %v2087_v16 = vsel %vm1059_vm10, %v2052_v25, -inf }
 0xb01   : > { %2088 = vmax.xlane.f32.xlu0 %v2087_v16 }
 0xb05   : > { %v2054_v45 = vpop.f32.mrf.mxu2 }
 0xb06   : > { %v2055_v28 = vadd.f32 %v2054_v45, %v1853_v27  ;;  %v1862_v45 = vld [vmem:[%s5765_s10 + $0x58] sm:$0xff] }
 0xb08   : > { %v2090_v29 = vsel %vm1059_vm10, %v2055_v28, -inf }
 0xb09   : > { %2091 = vmax.xlane.f32.xlu1 %v2090_v29 }
 0xb0d   : > { %v2057_v55 = vpop.f32.mrf.mxu2 }
 0xb0e   : > { %v2058_v57 = vadd.f32 %v2057_v55, %v1854_v31 }
 0xb10   : > { %v2093_v32 = vsel %vm1059_vm10, %v2058_v57, -inf }
 0xb11   : > { %2094 = vmax.xlane.f32.xlu2 %v2093_v32 }
 0xb15   : > { %v2060_v43 = vpop.f32.mrf.mxu2 }
 0xb16   : > { %v5026_v35 = vadd.f32 %v2060_v43, %v1855_v34 }
 0xb18   : > { %v2096_v37 = vsel %vm1059_vm10, %v5026_v35, -inf }
 0xb19   : > { %2097 = vmax.xlane.f32.xlu0 %v2096_v37 }
 0xb1d   : > { %v2063_v39 = vpop.f32.mrf.mxu2 }
 0xb1e   : > { %v5033_v4 = vadd.f32 %v2063_v39, %v1856_v38 }
 0xb20   : > { %v2099_v40 = vsel %vm1059_vm10, %v5033_v4, -inf }
 0xb21   : > { %2100 = vmax.xlane.f32.xlu2 %v2099_v40 }
 0xb25   : > { %v2066_v56 = vpop.f32.mrf.mxu2 }
 0xb26   : > { %v5040_v6 = vadd.f32 %v2066_v56, %v1857_v5 }
 0xb28   : > { %v2102_v41 = vsel %vm1059_vm10, %v5040_v6, -inf }
 0xb29   : > { %2103 = vmax.xlane.f32.xlu1 %v2102_v41 }
 0xb2d   : > { %3896 = vrot.lane.b32.xlu0 %v3895_v7, %s5778_s20  ;;  %v2069_v49 = vpop.f32.mrf.mxu2 }
 0xb2e   : > { %v5056_v50 = vadd.f32 %v2069_v49, %v1858_v47 }
 0xb30   : > { %v2105_v33 = vsel %vm1059_vm10, %v5056_v50, -inf }
 0xb35   : > { %v2072_v51 = vpop.f32.mrf.mxu2 }
 0xb36   : > { %v5071_v48 = vadd.f32 %v2072_v51, %v1859_v2 }
 0xb38   : > { %v2108_v14 = vsel %vm1059_vm10, %v5071_v48, -inf }
 0xb39   : > { %3901 = vrot.lane.b32.xlu2 %v3900_v42, %s5778_s20 }
 0xb3d   : > { %v2075_v60 = vpop.f32.mrf.mxu2 }
 0xb3e   : > { %v5087_v20 = vadd.f32 %v2075_v60, %v1860_v17 }
 0xb40   : > { %v2111_v29 = vsel %vm1059_vm10, %v5087_v20, -inf }
 0xb42   : > { %3906 = vrot.lane.b32.xlu1 %v3905_v46, %s5778_s20 }
 0xb45   : > { %v2078_v11 = vpop.f32.mrf.mxu2 }
 0xb46   : > { %v5085_v18 = vadd.f32 %v2078_v11, %v1861_v15 }
 0xb48   : > { %v2114_v16 = vsel %vm1059_vm10, %v5085_v18, -inf }
 0xb62   : > { %2106 = vmax.xlane.f32.xlu2 %v2105_v33 }
 0xb6c   : > { %v2086_v36 = vpop.xlane.xlu2 %2085 }
 0xb6d   : > { %v2120_v30 = vsub.f32 %v2049_v19, %v2086_v36 }
 0xb6f   : > { %v2132_v63 = vmul.f32 1.442695, %v2120_v30 }
 0xb71   : > { %4025 = vpow2.f32 %v2132_v63 }
 0xb74   : > { %v2089_v52 = vpop.xlane.xlu0 %2088 }
 0xb75   : > { %v2121_v23 = vsub.f32 %v2052_v25, %v2089_v52 }
 0xb77   : > { %v5060_v58 = vpop.eup %4025  ;;  %v2134_v53 = vmul.f32 1.442695, %v2121_v23 }
 0xb78   : > { %v2156_v54 = vsel %vm1059_vm10, %v5060_v58, 0.0 }
 0xb79   : > { %4027 = vpow2.f32 %v2134_v53  ;;  %2157 = vadd.xlane.f32.xlu0 %v2156_v54 }
 0xb7c   : > { %v2092_v59 = vpop.xlane.xlu1 %2091 }
 0xb7d   : > { %v2122_v44 = vsub.f32 %v2055_v28, %v2092_v59  ;;  %v2081_v28 = vpop.f32.mrf.mxu2 }
 0xb7e   : > { %v5101_v31 = vadd.f32 %v2081_v28, %v1862_v45 }
 0xb7f   : > { %v5064_v62 = vpop.eup %4027  ;;  %v2136_v0 = vmul.f32 1.442695, %v2122_v44 }
 0xb80   : > { %v2159_v1 = vsel %vm1059_vm10, %v5064_v62, 0.0  ;;  %v2117_v43 = vsel %vm1059_vm10, %v5101_v31, -inf }
 0xb81   : > { %4029 = vpow2.f32 %v2136_v0  ;;  %2160 = vadd.xlane.f32.xlu0 %v2159_v1 }
 0xb84   : > { %v2095_v3 = vpop.xlane.xlu2 %2094 }
 0xb85   : > { %v2123_v61 = vsub.f32 %v2058_v57, %v2095_v3 }
 0xb87   : > { %v5073_v9 = vpop.eup %4029  ;;  %v2138_v12 = vmul.f32 1.442695, %v2123_v61 }
 0xb88   : > { %v2162_v13 = vsel %vm1059_vm10, %v5073_v9, 0.0 }
 0xb89   : > { %4031 = vpow2.f32 %v2138_v12  ;;  %2163 = vadd.xlane.f32.xlu2 %v2162_v13  ;;  %2109 = vmax.xlane.f32.xlu0 %v2108_v14 }
 0xb8c   : > { %v2098_v19 = vpop.xlane.xlu0 %2097 }
 0xb8d   : > { %v2124_v22 = vsub.f32 %v5026_v35, %v2098_v19 }
 0xb8f   : > { %v5090_v24 = vpop.eup %4031  ;;  %v2140_v25 = vmul.f32 1.442695, %v2124_v22 }
 0xb90   : > { %v2165_v27 = vsel %vm1059_vm10, %v5090_v24, 0.0 }
 0xb91   : > { %4033 = vpow2.f32 %v2140_v25  ;;  %2115 = vmax.xlane.f32.xlu2 %v2114_v16  ;;  %2166 = vadd.xlane.f32.xlu1 %v2165_v27 }
 0xb92   : > { %2112 = vmax.xlane.f32.xlu0 %v2111_v29 }
 0xb94   : > { %v2101_v55 = vpop.xlane.xlu2 %2100 }
 0xb95   : > { %v2125_v57 = vsub.f32 %v5033_v4, %v2101_v55 }
 0xb97   : > { %v5104_v32 = vpop.eup %4033  ;;  %v2142_v34 = vmul.f32 1.442695, %v2125_v57 }
 0xb98   : > { %v2168_v35 = vsel %vm1059_vm10, %v5104_v32, 0.0 }
 0xb99   : > { %4035 = vpow2.f32 %v2142_v34  ;;  %2118 = vmax.xlane.f32.xlu2 %v2117_v43 }
 0xb9a   : > { %2169 = vadd.xlane.f32.xlu0 %v2168_v35 }
 0xb9c   : > { %v2104_v37 = vpop.xlane.xlu1 %2103  ;;  %v3902_v41 = vpop.permute.xlu2 %3901 }
 0xb9d   : > { %v2126_v38 = vsub.f32 %v5040_v6, %v2104_v37  ;;  %v3903_v42 = vunpack.i.l.bf16 %v3902_v41  ;;  %v3904_v46 = vunpack.i.h.bf16 %v3902_v41 }
 0xb9f   : > { %v5111_v39 = vpop.eup %4035  ;;  %v2144_v40 = vmul.f32 1.442695, %v2126_v38  ;;  %v3897_v5 = vpop.permute.xlu0 %3896 }
 0xba0   : > { %v3898_v4 = vunpack.i.l.bf16 %v3897_v5  ;;  %v2171_v56 = vsel %vm1059_vm10, %v5111_v39, 0.0  ;;  %v3899_v7 = vunpack.i.h.bf16 %v3897_v5 }
 0xba1   : > { %4037 = vpow2.f32 %v2144_v40 }
 0xba2   : > { %2172 = vadd.xlane.f32.xlu0 %v2171_v56  ;;  %2298 = vmatpush.msrb.mxu3 %v3898_v4 }
 0xba4   : > { %2299 = vmatpush.msrb.mxu3 %v3899_v7 }
 0xba6   : > { %2300 = vmatpush.msrb.mxu3 %v3903_v42 }
 0xba7   : > { %v5115_v47 = vpop.eup %4037 }
 0xba8   : > { %2301 = vmatpush.msrb.mxu3 %v3904_v46  ;;  %v2174_v6 = vsel %vm1059_vm10, %v5115_v47, 0.0 }
 0xba9   : > { %2175 = vadd.xlane.f32.xlu2 %v2174_v6 }
 0xbb4   : > { %v3907_v49 = vpop.permute.xlu1 %3906 }
 0xbb5   : > { %v3908_v33 = vunpack.i.l.bf16 %v3907_v49  ;;  %v3909_v36 = vunpack.i.h.bf16 %v3907_v49 }
 0xbb7   : > { %2302 = vmatpush.msrb.mxu3 %v3908_v33 }
 0xbb9   : > { %2303 = vmatpush.msrb.mxu3 %v3909_v36 }
 0xbd5   : > { %v2107_v30 = vpop.xlane.xlu2 %2106 }
 0xbd6   : > { %v2127_v63 = vsub.f32 %v5056_v50, %v2107_v30 }
 0xbd8   : > { %v2146_v51 = vmul.f32 1.442695, %v2127_v63 }
 0xbda   : > { %4039 = vpow2.f32 %v2146_v51 }
 0xbe0   : > { %v5120_v52 = vpop.eup %4039 }
 0xbe1   : > { %v2177_v23 = vsel %vm1059_vm10, %v5120_v52, 0.0 }
 0xbe2   : > { %2178 = vadd.xlane.f32.xlu0 %v2177_v23 }
 0xbec   : > { %v2158_v53 = vpop.xlane.xlu0 %2157 }
 0xbed   : > { %4041 = vrcp.f32 %v2158_v53 }
 0xbf3   : > { %v4042_v54 = vpop.eup %4041 }
 0xbf4   : > { %v2204_v59 = vmul.f32 %v4042_v54, %v5060_v58  ;;  %v2161_v60 = vpop.xlane.xlu0 %2160 }
 0xbf5   : > { %4043 = vrcp.f32 %v2161_v60 }
 0xbf6   : > { %3760 = vmatmul.msk.f32.vlgmr.msrb.gmra.mxu3 %vm1059_vm10, %v2204_v59 }
 0xbfb   : > { %v4044_v44 = vpop.eup %4043 }
 0xbfc   : > { %v2164_v0 = vpop.xlane.xlu2 %2163  ;;  %v2110_v50 = vpop.xlane.xlu0 %2109  ;;  %v2205_v1 = vmul.f32 %v4044_v44, %v5064_v62 }
 0xbfd   : > { %4045 = vrcp.f32 %v2164_v0  ;;  %v2128_v2 = vsub.f32 %v5071_v48, %v2110_v50 }
 0xbfe   : > { %3761 = vmatmul.msk.f32.gmra.mxu3 %vm1059_vm10, %v2205_v1 }
 0xbff   : > { %v2148_v3 = vmul.f32 1.442695, %v2128_v2  ;;  %v2390_v2 = vld [vmem:[%s5767_s12 + $0x18] sm:$0xff] }
 0xc00   : > { %3856 = vmatpush.msra.mxu3 %v2390_v2  ;;  %2414 = vmatpush.msra.mxu0 %v2390_v2 }
 0xc01   : > { %4047 = vpow2.f32 %v2148_v3  ;;  %v2389_v3 = vld [vmem:[%s5767_s12 + $0x10] sm:$0xff] }
 0xc02   : > { %2415 = vmatpush.msra.mxu0 %v2389_v3  ;;  %3857 = vmatpush.msra.mxu3 %v2389_v3 }
 0xc03   : > { %v4046_v61 = vpop.eup %4045 }
 0xc04   : > { %v2167_v11 = vpop.xlane.xlu1 %2166  ;;  %v2116_v12 = vpop.xlane.xlu2 %2115  ;;  %v2206_v58 = vmul.f32 %v4046_v61, %v5073_v9  ;;  %v2388_v61 = vld [vmem:[%s5767_s12 + $0x8] sm:$0xff] }
 0xc05   : > { %4049 = vrcp.f32 %v2167_v11  ;;  %v2130_v13 = vsub.f32 %v5085_v18, %v2116_v12  ;;  %v2113_v14 = vpop.xlane.xlu0 %2112  ;;  %2416 = vmatpush.msra.mxu0 %v2388_v61  ;;  %3858 = vmatpush.msra.mxu3 %v2388_v61  ;;  %v2387_v11 = vld [vmem:[%s5767_s12] sm:$0xff] }
 0xc06   : > { %v2129_v15 = vsub.f32 %v5087_v20, %v2113_v14  ;;  %3762 = vmatmul.msk.f32.gmra.mxu3 %vm1059_vm10, %v2206_v58 }
 0xc07   : > { %v4048_v62 = vpop.eup %4047  ;;  %v2152_v17 = vmul.f32 1.442695, %v2130_v13  ;;  %2417 = vmatpush.msra.mxu0 %v2387_v11  ;;  %3859 = vmatpush.msra.mxu3 %v2387_v11 }
 0xc08   : > { %v2150_v48 = vmul.f32 1.442695, %v2129_v15  ;;  %v2180_v19 = vsel %vm1059_vm10, %v4048_v62, 0.0 }
 0xc09   : > { %4051 = vpow2.f32 %v2152_v17  ;;  %2181 = vadd.xlane.f32.xlu2 %v2180_v19 }
 0xc0a   : > { %4053 = vpow2.f32 %v2150_v48 }
 0xc0b   : > { %v4050_v22 = vpop.eup %4049 }
 0xc0c   : > { %v2119_v25 = vpop.xlane.xlu2 %2118  ;;  %v2207_v9 = vmul.f32 %v4050_v22, %v5090_v24 }
 0xc0d   : > { %v2131_v16 = vsub.f32 %v5101_v31, %v2119_v25  ;;  %v2170_v18 = vpop.xlane.xlu0 %2169 }
 0xc0e   : > { %4055 = vrcp.f32 %v2170_v18  ;;  %3763 = vmatmul.msk.f32.gmra.mxu3 %vm1059_vm10, %v2207_v9 }
 0xc0f   : > { %v4052_v20 = vpop.eup %4051  ;;  %v2154_v27 = vmul.f32 1.442695, %v2131_v16 }
 0xc10   : > { %v4054_v45 = vpop.eup %4053  ;;  %v2186_v28 = vsel %vm1059_vm10, %v4052_v20, 0.0 }
 0xc11   : > { %4057 = vpow2.f32 %v2154_v27  ;;  %2187 = vadd.xlane.f32.xlu2 %v2186_v28  ;;  %v2183_v29 = vsel %vm1059_vm10, %v4054_v45, 0.0 }
 0xc12   : > { %2184 = vadd.xlane.f32.xlu0 %v2183_v29  ;;  %v3949_v29 = vld [vmem:[%s5762_s7 + $0xa] ss:$0 sm:$0xff] }
 0xc14   : > { %v4056_v55 = vpop.eup %4055 }
 0xc15   : > { %v2173_v57 = vpop.xlane.xlu0 %2172  ;;  %v2208_v24 = vmul.f32 %v4056_v55, %v5104_v32 }
 0xc16   : > { %4059 = vrcp.f32 %v2173_v57 }
 0xc17   : > { %v4058_v31 = vpop.eup %4057  ;;  %3764 = vmatmul.msk.f32.gmra.mxu3 %vm1059_vm10, %v2208_v24 }
 0xc18   : > { %v2189_v34 = vsel %vm1059_vm10, %v4058_v31, 0.0 }
 0xc1a   : > { %2190 = vadd.xlane.f32.xlu0 %v2189_v34 }
 0xc1c   : > { %v4060_v43 = vpop.eup %4059  ;;  %v2176_v35 = vpop.xlane.xlu2 %2175 }
 0xc1d   : > { %4061 = vrcp.f32 %v2176_v35  ;;  %v2209_v37 = vmul.f32 %v4060_v43, %v5111_v39 }
 0xc1f   : > { %3765 = vmatmul.msk.f32.gmra.mxu3 %vm1059_vm10, %v2209_v37 }
 0xc23   : > { %v4062_v38 = vpop.eup %4061 }
 0xc24   : > { %v2210_v40 = vmul.f32 %v4062_v38, %v5115_v47 }
 0xc27   : > { %3766 = vmatmul.msk.f32.gmra.mxu3 %vm1059_vm10, %v2210_v40 }
 0xc55   : > { %v2179_v32 = vpop.xlane.xlu0 %2178 }
 0xc56   : > { %4063 = vrcp.f32 %v2179_v32 }
 0xc5c   : > { %v4064_v5 = vpop.eup %4063 }
 0xc5d   : > { %v2211_v4 = vmul.f32 %v4064_v5, %v5120_v52 }
 0xc5f   : > { %3767 = vmatmul.msk.f32.gmra.mxu3 %vm1059_vm10, %v2211_v4 }
 0xc79   : > { %v2305_v56 = vpop.f32.mrf.mxu3 }
 0xc7c   : > { %v2182_v41 = vpop.xlane.xlu2 %2181 }
 0xc7d   : > { %4065 = vrcp.f32 %v2182_v41 }
 0xc81   : > { %v5148_v7 = vpop.f32.mrf.mxu3 }
 0xc83   : > { %v4066_v39 = vpop.eup %4065 }
 0xc84   : > { %v2212_v42 = vmul.f32 %v4066_v39, %v4048_v62  ;;  %v2188_v47 = vpop.xlane.xlu2 %2187 }
 0xc85   : > { %v2185_v46 = vpop.xlane.xlu0 %2184 }
 0xc86   : > { %4067 = vrcp.f32 %v2185_v46  ;;  %3768 = vmatmul.msk.f32.gmra.mxu3 %vm1059_vm10, %v2212_v42 }
 0xc87   : > { %4069 = vrcp.f32 %v2188_v47 }
 0xc89   : > { %v5151_v6 = vpop.f32.mrf.mxu3 }
 0xc8c   : > { %v4068_v49 = vpop.eup %4067 }
 0xc8d   : > { %v2213_v33 = vmul.f32 %v4068_v49, %v4054_v45  ;;  %v2191_v36 = vpop.xlane.xlu0 %2190  ;;  %v4070_v63 = vpop.eup %4069 }
 0xc8e   : > { %4071 = vrcp.f32 %v2191_v36  ;;  %v2214_v51 = vmul.f32 %v4070_v63, %v4052_v20 }
 0xc8f   : > { %3769 = vmatmul.msk.f32.gmra.mxu3 %vm1059_vm10, %v2213_v33 }
 0xc91   : > { %v2314_v30 = vpop.f32.mrf.mxu3 }
 0xc92   : > { %2344 = vrot.lane.b32.xlu2 %v2314_v30, %s5774_s0  ;;  %v2510_v30 = vld [vmem:[%s5768_s13 + $0x18] sm:$0xff] }
 0xc93   : > { %2534 = vmatpush.msra.mxu1 %v2510_v30 }
 0xc94   : > { %v4072_v52 = vpop.eup %4071 }
 0xc95   : > { %v2215_v53 = vmul.f32 %v4072_v52, %v4058_v31 }
 0xc97   : > { %3770 = vmatmul.msk.f32.gmra.mxu3 %vm1059_vm10, %v2214_v51 }
 0xc9a   : > { %v2317_v23 = vpop.f32.mrf.mxu3 }
 0xc9b   : > { %2346 = vrot.lane.b32.xlu2 %v2317_v23, %s5774_s0  ;;  %v2509_v23 = vld [vmem:[%s5768_s13 + $0x10] sm:$0xff] }
 0xc9c   : > { %2535 = vmatpush.msra.mxu1 %v2509_v23 }
 0xc9f   : > { %3771 = vmatmul.msk.f32.gmra.mxu3 %vm1059_vm10, %v2215_v53  ;;  %v2508_v53 = vld [vmem:[%s5768_s13 + $0x8] sm:$0xff] }
 0xca0   : > { %2536 = vmatpush.msra.mxu1 %v2508_v53 }
 0xca2   : > { %v2320_v54 = vpop.f32.mrf.mxu3 }
 0xcaa   : > { %v2323_v59 = vpop.f32.mrf.mxu3 }
 0xcab   : > { %2356 = vrot.lane.b32.xlu1 %v2323_v59, %s5772_s17  ;;  %v2507_v59 = vld [vmem:[%s5768_s13] sm:$0xff] }
 0xcac   : > { %2537 = vmatpush.msra.mxu1 %v2507_v59 }
 0xce2   : > { %v2326_v60 = vpop.f32.mrf.mxu3 }
 0xce3   : > { %2358 = vrot.lane.b32.xlu1 %v2326_v60, %s5772_s17 }
 0xcec   : > { %v2345_v12 = vpop.permute.xlu2 %2344 }
 0xced   : > { %v2377_v14 = vsel %vm1970_vm5, %v2305_v56, %v2345_v12 }
 0xcf5   : > { %v2347_v13 = vpop.permute.xlu2 %2346 }
 0xcf6   : > { %v2378_v22 = vsel %vm1970_vm5, %v5148_v7, %v2347_v13 }
 0xd09   : > { %v2329_v44 = vpop.f32.mrf.mxu3 }
 0xd0a   : > { %2360 = vrot.lane.b32.xlu1 %v2329_v44, %s5772_s17 }
 0xd12   : > { %v2332_v0 = vpop.f32.mrf.mxu3 }
 0xd13   : > { %2368 = vrot.lane.b32.xlu0 %v2332_v0, %s5776_s18 }
 0xd1a   : > { %v2335_v50 = vpop.f32.mrf.mxu3 }
 0xd1b   : > { %2348 = vrot.lane.b32.xlu0 %v2320_v54, %s5774_s0  ;;  %2370 = vrot.lane.b32.xlu2 %v2335_v50, %s5776_s18  ;;  %s521_s0 = scalar_lea.vmem %s5771_s16, %s3643_s23 }
 0xd1d   : > { %v2357_v58 = vpop.permute.xlu1 %2356 }
 0xd1e   : > { %v2381_v15 = vsel %vm2380_vm6, %v2377_v14, %v2357_v58  ;;  %v3950_v58 = vld [vmem:[%s5762_s7 + $0xb] ss:$0 sm:$0xff] }
 0xd22   : > { %v2338_v1 = vpop.f32.mrf.mxu3 }
 0xd23   : > { %2372 = vrot.lane.b32.xlu0 %v2338_v1, %s5776_s18  ;;  %s5784_s18 = smov 96  }
 0xd55   : > { %v2359_v48 = vpop.permute.xlu1 %2358 }
 0xd56   : > { %v2382_v25 = vsel %vm2380_vm6, %v2378_v22, %v2359_v48  ;;  %v3951_v48 = vld [vmem:[%s5762_s7 + $0xc] ss:$0 sm:$0xff] }
 0xd75   : > { %v2371_v19 = vpop.permute.xlu2 %2370 }
 0xd76   : > { %v2385_v16 = vsel %vm1503_vm8, %v2382_v25, %v2371_v19 }
 0xd7c   : > { %v2361_v20 = vpop.permute.xlu1 %2360 }
 0xd85   : > { %v2369_v62 = vpop.permute.xlu0 %2368 }
 0xd86   : > { %v2384_v17 = vsel %vm1503_vm8, %v2381_v15, %v2369_v62 }
 0xd87   : > { %3772 = vmatmul.msk.f32.vlgmr.msra.gmra.mxu0 %vm617_vm2, %v2384_v17 }
 0xd8d   : > { %v2349_v9 = vpop.permute.xlu0 %2348 }
 0xd8e   : > { %v2379_v18 = vsel %vm1970_vm5, %v5151_v6, %v2349_v9 }
 0xd8f   : > { %3773 = vmatmul.msk.f32.gmra.mxu0 %vm617_vm2, %v2385_v16  ;;  %v2383_v27 = vsel %vm2380_vm6, %v2379_v18, %v2361_v20 }
 0xd95   : > { %v2373_v45 = vpop.permute.xlu0 %2372 }
 0xd96   : > { %v2386_v28 = vsel %vm1503_vm8, %v2383_v27, %v2373_v45 }
 0xd97   : > { %3774 = vmatmul.msk.f32.vlgmr.msra.gmra.mxu3 %vm617_vm2, %v2386_v28 }
 0xe04   : > { %v2419_v55 = vpop.f32.mrf.mxu0 }
 0xe05   : > { %v2420_v57 = vadd.f32 %v3949_v29, %v2419_v55 }
 0xe07   : > { %v2428_v24 = vadd.f32 %v2420_v57, %v4880_v10 }
 0xe09   : > { %v2431_v31 = vsel %vm617_vm2, %v2428_v24, 0.0 }
 0xe0a   : > { %2432 = vadd.xlane.f32.xlu2 %v2431_v31 }
 0xe0c   : > { %v2422_v34 = vpop.f32.mrf.mxu0 }
 0xe0d   : > { %v2423_v43 = vadd.f32 %v3949_v29, %v2422_v34 }
 0xe0f   : > { %v2429_v35 = vadd.f32 %v2423_v43, %v4884_v21 }
 0xe11   : > { %v2434_v37 = vsel %vm617_vm2, %v2429_v35, 0.0 }
 0xe12   : > { %2435 = vadd.xlane.f32.xlu1 %v2434_v37 }
 0xe1a   : > { %v2425_v38 = vpop.f32.mrf.mxu3 }
 0xe1b   : > { %v2426_v40 = vadd.f32 %v3949_v29, %v2425_v38 }
 0xe1d   : > { %v2430_v32 = vadd.f32 %v2426_v40, %v4889_v26  ;;  %v2582_v40 = vld [vmem:[%s5769_s14 + $0x38] sm:$0xff] }
 0xe1e   : > { %2602 = vmatpush.msrb.mxu0 %v2582_v40 }
 0xe1f   : > { %v2437_v5 = vsel %vm617_vm2, %v2430_v32, 0.0 }
 0xe20   : > { %2438 = vadd.xlane.f32.xlu0 %v2437_v5  ;;  %v2580_v5 = vld [vmem:[%s5769_s14 + $0x28] sm:$0xff] }
 0xe7d   : > { %v2433_v4 = vpop.xlane.xlu2 %2432 }
 0xe7e   : > { %v2440_v10 = vmul.f32 %v2433_v4, %v4668_v8  ;;  %v2579_v4 = vld [vmem:[%s5769_s14 + $0x20] sm:$0xff] }
 0xe80   : > { %v2443_v56 = vsub.f32 %v2428_v24, %v2440_v10  ;;  %v3952_v10 = vld [vmem:[%s5762_s7 + $0xd] ss:$0 sm:$0xff] }
 0xe82   : > { %v2446_v41 = vmul.f32 %v2443_v56, %v2443_v56 }
 0xe84   : > { %v2449_v7 = vsel %vm617_vm2, %v2446_v41, 0.0  ;;  %v2577_v41 = vld [vmem:[%s5769_s14 + $0x10] sm:$0xff] }
 0xe85   : > { %v2436_v39 = vpop.xlane.xlu1 %2435  ;;  %2450 = vadd.xlane.f32.xlu2 %v2449_v7 }
 0xe86   : > { %v2441_v21 = vmul.f32 %v2436_v39, %v4668_v8 }
 0xe88   : > { %v2444_v42 = vsub.f32 %v2429_v35, %v2441_v21  ;;  %v2576_v21 = vld [vmem:[%s5769_s14 + $0x8] sm:$0xff] }
 0xe8a   : > { %v2447_v46 = vmul.f32 %v2444_v42, %v2444_v42 }
 0xe8c   : > { %v2452_v47 = vsel %vm617_vm2, %v2447_v46, 0.0  ;;  %v2575_v46 = vld [vmem:[%s5769_s14] sm:$0xff] }
 0xe8d   : > { %2453 = vadd.xlane.f32.xlu1 %v2452_v47 }
 0xe93   : > { %v2439_v26 = vpop.xlane.xlu0 %2438 }
 0xe94   : > { %v2442_v6 = vmul.f32 %v2439_v26, %v4668_v8 }
 0xe96   : > { %v5205_v49 = vsub.f32 %v2430_v32, %v2442_v6  ;;  %v2581_v32 = vld [vmem:[%s5769_s14 + $0x30] sm:$0xff] }
 0xe97   : > { %2603 = vmatpush.msrb.mxu0 %v2581_v32 }
 0xe98   : > { %v2448_v33 = vmul.f32 %v5205_v49, %v5205_v49 }
 0xe99   : > { %2604 = vmatpush.msrb.mxu0 %v2580_v5 }
 0xe9a   : > { %v2455_v36 = vsel %vm617_vm2, %v2448_v33, 0.0 }
 0xe9b   : > { %2456 = vadd.xlane.f32.xlu0 %v2455_v36  ;;  %2605 = vmatpush.msrb.mxu0 %v2579_v4 }
 0xef8   : > { %v2451_v63 = vpop.xlane.xlu2 %2450 }
 0xef9   : > { %v2458_v51 = vmul.f32 %v2451_v63, %v4668_v8 }
 0xefb   : > { %v2461_v52 = vadd.f32 1e-05, %v2458_v51 }
 0xefd   : > { %4073 = vrsqrt.f32 %v2461_v52  ;;  %vm2470_vm9 = vweird.f32 %v2461_v52 }
 0xf00   : > { %v2454_v54 = vpop.xlane.xlu1 %2453 }
 0xf01   : > { %v2459_v60 = vmul.f32 %v2454_v54, %v4668_v8 }
 0xf03   : > { %v4074_v44 = vpop.eup %4073  ;;  %v2462_v0 = vadd.f32 1e-05, %v2459_v60 }
 0xf04   : > { %v2465_v50 = vmul.f32 %v4074_v44, %v2461_v52  ;;  %vm2471_vm7 = vweird.f32 %v4074_v44 }
 0xf05   : > { %4075 = vrsqrt.f32 %v2462_v0  ;;  %vm2472_vm12 = vmor %vm2470_vm9, %vm2471_vm7  ;;  %vm2480_vm14 = vweird.f32 %v2462_v0 }
 0xf06   : > { %v2466_v1 = vmul.f32 %v4074_v44, %v2465_v50 }
 0xf08   : > { %v2467_v2 = vmul.f32 0.5, %v2466_v1 }
 0xf0a   : > { %v2468_v3 = vsub.f32 1.5, %v2467_v2 }
 0xf0b   : > { %v4076_v61 = vpop.eup %4075 }
 0xf0c   : > { %v2469_v11 = vmul.f32 %v4074_v44, %v2468_v3  ;;  %v2475_v12 = vmul.f32 %v4076_v61, %v2462_v0  ;;  %vm2481_vm13 = vweird.f32 %v4076_v61 }
 0xf0d   : > { %vm2482_vm15 = vmor %vm2480_vm14, %vm2481_vm13 }
 0xf0e   : > { %v2473_v13 = vsel %vm2472_vm12, %v4074_v44, %v2469_v11  ;;  %v2476_v14 = vmul.f32 %v4076_v61, %v2475_v12  ;;  %v2457_v15 = vpop.xlane.xlu0 %2456 }
 0xf0f   : > { %v2494_v62 = vmul.f32 %v2473_v13, %v2443_v56  ;;  %v2460_v17 = vmul.f32 %v2457_v15, %v4668_v8  ;;  %v2578_v56 = vld [vmem:[%s5769_s14 + $0x18] sm:$0xff] }
 0xf10   : > { %v2477_v19 = vmul.f32 0.5, %v2476_v14  ;;  %2606 = vmatpush.msrb.mxu0 %v2578_v56 }
 0xf11   : > { %v2499_v22 = vmul.f32 %v3950_v58, %v2494_v62  ;;  %v2463_v25 = vadd.f32 1e-05, %v2460_v17 }
 0xf12   : > { %v2478_v9 = vsub.f32 1.5, %v2477_v19  ;;  %2607 = vmatpush.msrb.mxu0 %v2577_v41 }
 0xf13   : > { %4077 = vrsqrt.f32 %v2463_v25  ;;  %v5231_v16 = vadd.f32 %v3951_v48, %v2499_v22  ;;  %vm2490_vm1 = vweird.f32 %v2463_v25 }
 0xf14   : > { %v2479_v18 = vmul.f32 %v4076_v61, %v2478_v9  ;;  %2608 = vmatpush.msrb.mxu0 %v2576_v21 }
 0xf15   : > { %3775 = vmatmul.msk.f32.vlgmr.msra.gmra.mxu1 %vm617_vm2, %v5231_v16 }
 0xf16   : > { %v2483_v20 = vsel %vm2482_vm15, %v4076_v61, %v2479_v18  ;;  %2609 = vmatpush.msrb.mxu0 %v2575_v46  ;;  %v3783_v46 = vld [vmem:[%s5766_s11 + $0x30] sm:$0xff] }
 0xf17   : > { %v2495_v27 = vmul.f32 %v2483_v20, %v2444_v42 }
 0xf19   : > { %v4078_v45 = vpop.eup %4077  ;;  %v2500_v28 = vmul.f32 %v3950_v58, %v2495_v27 }
 0xf1a   : > { %v2485_v29 = vmul.f32 %v4078_v45, %v2463_v25  ;;  %vm2491_vm0 = vweird.f32 %v4078_v45 }
 0xf1b   : > { %v5235_v55 = vadd.f32 %v3951_v48, %v2500_v28  ;;  %vm2492_vm3 = vmor %vm2490_vm1, %vm2491_vm0 }
 0xf1c   : > { %v2486_v57 = vmul.f32 %v4078_v45, %v2485_v29 }
 0xf1d   : > { %3776 = vmatmul.msk.f32.gmra.mxu1 %vm617_vm2, %v5235_v55 }
 0xf1e   : > { %v2487_v24 = vmul.f32 0.5, %v2486_v57 }
 0xf20   : > { %v2488_v31 = vsub.f32 1.5, %v2487_v24 }
 0xf22   : > { %v2489_v34 = vmul.f32 %v4078_v45, %v2488_v31 }
 0xf24   : > { %v2493_v43 = vsel %vm2492_vm3, %v4078_v45, %v2489_v34 }
 0xf25   : > { %v2496_v35 = vmul.f32 %v2493_v43, %v5205_v49 }
 0xf27   : > { %v2501_v37 = vmul.f32 %v3950_v58, %v2496_v35 }
 0xf29   : > { %v5240_v38 = vadd.f32 %v3951_v48, %v2501_v37  ;;  %v3953_v48 = vld [vmem:[%s5762_s7 + $0xe] ss:$0 sm:$0xff] }
 0xf2b   : > { %3777 = vmatmul.msk.f32.gmra.mxu1 %vm617_vm2, %v5240_v38 }
 0xf92   : > { %v2539_v7 = vpop.f32.mrf.mxu1 }
 0xf93   : > { %v2540_v39 = vadd.f32 %v3952_v10, %v2539_v7  ;;  %v3784_v7 = vld [vmem:[%s5766_s11 + $0x38] sm:$0xff] }
 0xf94   : > { %2727 = vmatpush.msrb.mxu1 %v3784_v7 }
 0xf95   : > { %v2548_v42 = vmul.f32 %v2540_v39, %v2540_v39 }
 0xf96   : > { %2728 = vmatpush.msrb.mxu1 %v3783_v46 }
 0xf97   : > { %v2551_v47 = vmul.f32 %v2548_v42, %v2540_v39 }
 0xf99   : > { %v2554_v26 = vmul.f32 0.044715, %v2551_v47  ;;  %v3782_v47 = vld [vmem:[%s5766_s11 + $0x28] sm:$0xff] }
 0xf9a   : > { %v2542_v6 = vpop.f32.mrf.mxu1  ;;  %2729 = vmatpush.msrb.mxu1 %v3782_v47 }
 0xf9b   : > { %v2557_v49 = vadd.f32 %v2554_v26, %v2540_v39  ;;  %v2543_v33 = vadd.f32 %v3952_v10, %v2542_v6  ;;  %v3781_v6 = vld [vmem:[%s5766_s11 + $0x20] sm:$0xff] }
 0xf9c   : > { %2730 = vmatpush.msrb.mxu1 %v3781_v6 }
 0xf9d   : > { %v2560_v36 = vmul.f32 0.7978846, %v2557_v49  ;;  %v2549_v30 = vmul.f32 %v2543_v33, %v2543_v33 }
 0xf9f   : > { %4079 = vtanh.f32 %v2560_v36  ;;  %v2552_v63 = vmul.f32 %v2549_v30, %v2543_v33 }
 0xfa1   : > { %v2555_v51 = vmul.f32 0.044715, %v2552_v63 }
 0xfa3   : > { %v2558_v52 = vadd.f32 %v2555_v51, %v2543_v33 }
 0xfa5   : > { %v4080_v23 = vpop.eup %4079  ;;  %v2561_v53 = vmul.f32 0.7978846, %v2558_v52 }
 0xfa6   : > { %v2566_v54 = vadd.f32 1.0, %v4080_v23 }
 0xfa7   : > { %4081 = vtanh.f32 %v2561_v53 }
 0xfa8   : > { %v2569_v59 = vmul.f32 0.5, %v2566_v54  ;;  %v2545_v60 = vpop.f32.mrf.mxu1 }
 0xfa9   : > { %v2546_v44 = vadd.f32 %v3952_v10, %v2545_v60 }
 0xfaa   : > { %v2572_v0 = vmul.f32 %v2569_v59, %v2540_v39  ;;  %v3954_v59 = vld [vmem:[%s5762_s7 + $0xf] ss:$0 sm:$0xff] }
 0xfab   : > { %v2550_v50 = vmul.f32 %v2546_v44, %v2546_v44 }
 0xfac   : > { %3778 = vmatmul.msk.f32.vlgmr.msrb.gmra.mxu0 %vm1041_vm11, %v2572_v0 }
 0xfad   : > { %v4082_v1 = vpop.eup %4081  ;;  %v2553_v2 = vmul.f32 %v2550_v50, %v2546_v44 }
 0xfae   : > { %v2567_v3 = vadd.f32 1.0, %v4082_v1 }
 0xfaf   : > { %v2556_v61 = vmul.f32 0.044715, %v2553_v2  ;;  %v3955_v2 = vld [vmem:[%s5762_s7 + $0x10] ss:$0 sm:$0xff] }
 0xfb0   : > { %v2570_v11 = vmul.f32 0.5, %v2567_v3 }
 0xfb1   : > { %v2559_v12 = vadd.f32 %v2556_v61, %v2546_v44 }
 0xfb2   : > { %v2573_v58 = vmul.f32 %v2570_v11, %v2543_v33 }
 0xfb3   : > { %v2562_v13 = vmul.f32 0.7978846, %v2559_v12 }
 0xfb4   : > { %3779 = vmatmul.msk.f32.gmra.mxu0 %vm1041_vm11, %v2573_v58 }
 0xfb5   : > { %4083 = vtanh.f32 %v2562_v13 }
 0xfbb   : > { %v4084_v14 = vpop.eup %4083 }
 0xfbc   : > { %v2568_v15 = vadd.f32 1.0, %v4084_v14 }
 0xfbe   : > { %v2571_v62 = vmul.f32 0.5, %v2568_v15 }
 0xfc0   : > { %v2574_v17 = vmul.f32 %v2571_v62, %v2546_v44 }
 0xfc2   : > { %3780 = vmatmul.msk.f32.gmra.mxu0 %vm1041_vm11, %v2574_v17 }
0x1029   : > { %v2611_v19 = vpop.f32.mrf.mxu0 }
0x102a   : > { %v2612_v22 = vadd.f32 %v3953_v48, %v2611_v19 }
0x102c   : > { %v2620_v25 = vadd.f32 %v2612_v22, %v5231_v16 }
0x102e   : > { %v2623_v9 = vsel %vm617_vm2, %v2620_v25, 0.0 }
0x102f   : > { %2624 = vadd.xlane.f32.xlu2 %v2623_v9 }
0x1031   : > { %v2614_v18 = vpop.f32.mrf.mxu0 }
0x1032   : > { %v2615_v20 = vadd.f32 %v3953_v48, %v2614_v18 }
0x1034   : > { %v2621_v27 = vadd.f32 %v2615_v20, %v5235_v55 }
0x1036   : > { %v2626_v45 = vsel %vm617_vm2, %v2621_v27, 0.0 }
0x1037   : > { %2627 = vadd.xlane.f32.xlu1 %v2626_v45 }
0x103f   : > { %v2617_v28 = vpop.f32.mrf.mxu0 }
0x1040   : > { %v2618_v29 = vadd.f32 %v3953_v48, %v2617_v28 }
0x1042   : > { %v2622_v57 = vadd.f32 %v2618_v29, %v5240_v38  ;;  %v3956_v29 = vld [vmem:[%s5762_s7 + $0x11] ss:$0 sm:$0xff] }
0x1044   : > { %v2629_v24 = vsel %vm617_vm2, %v2622_v57, 0.0 }
0x1045   : > { %2630 = vadd.xlane.f32.xlu0 %v2629_v24 }
0x10a2   : > { %v2625_v31 = vpop.xlane.xlu2 %2624 }
0x10a3   : > { %v2632_v16 = vmul.f32 %v2625_v31, %v4668_v8 }
0x10a5   : > { %v2635_v34 = vsub.f32 %v2620_v25, %v2632_v16 }
0x10a7   : > { %v2638_v43 = vmul.f32 %v2635_v34, %v2635_v34 }
0x10a9   : > { %v2641_v35 = vsel %vm617_vm2, %v2638_v43, 0.0 }
0x10aa   : > { %v2628_v37 = vpop.xlane.xlu1 %2627  ;;  %2642 = vadd.xlane.f32.xlu2 %v2641_v35 }
0x10ab   : > { %v2633_v55 = vmul.f32 %v2628_v37, %v4668_v8 }
0x10ad   : > { %v2636_v40 = vsub.f32 %v2621_v27, %v2633_v55 }
0x10af   : > { %v2639_v32 = vmul.f32 %v2636_v40, %v2636_v40 }
0x10b1   : > { %v2644_v5 = vsel %vm617_vm2, %v2639_v32, 0.0 }
0x10b2   : > { %2645 = vadd.xlane.f32.xlu1 %v2644_v5 }
0x10b8   : > { %v2631_v38 = vpop.xlane.xlu0 %2630 }
0x10b9   : > { %v2634_v4 = vmul.f32 %v2631_v38, %v4668_v8 }
0x10bb   : > { %v5288_v10 = vsub.f32 %v2622_v57, %v2634_v4 }
0x10bd   : > { %v2640_v56 = vmul.f32 %v5288_v10, %v5288_v10 }
0x10bf   : > { %v2647_v41 = vsel %vm617_vm2, %v2640_v56, 0.0 }
0x10c0   : > { %2648 = vadd.xlane.f32.xlu0 %v2647_v41 }
0x111d   : > { %v2643_v39 = vpop.xlane.xlu2 %2642 }
0x111e   : > { %v2650_v21 = vmul.f32 %v2643_v39, %v4668_v8 }
0x1120   : > { %v2653_v42 = vadd.f32 1e-05, %v2650_v21 }
0x1122   : > { %4085 = vrsqrt.f32 %v2653_v42  ;;  %vm2662_vm7 = vweird.f32 %v2653_v42 }
0x1125   : > { %v2646_v26 = vpop.xlane.xlu1 %2645 }
0x1126   : > { %v2651_v49 = vmul.f32 %v2646_v26, %v4668_v8 }
0x1128   : > { %v4086_v33 = vpop.eup %4085  ;;  %v2654_v36 = vadd.f32 1e-05, %v2651_v49 }
0x1129   : > { %v2657_v30 = vmul.f32 %v4086_v33, %v2653_v42  ;;  %vm2663_vm4 = vweird.f32 %v4086_v33 }
0x112a   : > { %4087 = vrsqrt.f32 %v2654_v36  ;;  %vm2664_vm9 = vmor %vm2662_vm7, %vm2663_vm4  ;;  %vm2672_vm13 = vweird.f32 %v2654_v36 }
0x112b   : > { %v2658_v63 = vmul.f32 %v4086_v33, %v2657_v30 }
0x112d   : > { %v2659_v51 = vmul.f32 0.5, %v2658_v63 }
0x112f   : > { %v2660_v52 = vsub.f32 1.5, %v2659_v51 }
0x1130   : > { %v4088_v23 = vpop.eup %4087 }
0x1131   : > { %v2661_v53 = vmul.f32 %v4086_v33, %v2660_v52  ;;  %v2667_v54 = vmul.f32 %v4088_v23, %v2654_v36  ;;  %vm2673_vm12 = vweird.f32 %v4088_v23 }
0x1132   : > { %vm2674_vm14 = vmor %vm2672_vm13, %vm2673_vm12 }
0x1133   : > { %v2665_v60 = vsel %vm2664_vm9, %v4086_v33, %v2661_v53  ;;  %v2668_v44 = vmul.f32 %v4088_v23, %v2667_v54  ;;  %v2649_v0 = vpop.xlane.xlu0 %2648 }
0x1134   : > { %v2686_v50 = vmul.f32 %v2665_v60, %v2635_v34  ;;  %v2652_v1 = vmul.f32 %v2649_v0, %v4668_v8 }
0x1135   : > { %v2669_v3 = vmul.f32 0.5, %v2668_v44 }
0x1136   : > { %v2691_v61 = vmul.f32 %v3954_v59, %v2686_v50  ;;  %v2655_v11 = vadd.f32 1e-05, %v2652_v1 }
0x1137   : > { %v2670_v12 = vsub.f32 1.5, %v2669_v3 }
0x1138   : > { %4089 = vrsqrt.f32 %v2655_v11  ;;  %v5314_v58 = vadd.f32 %v3955_v2, %v2691_v61  ;;  %vm2682_vm0 = vweird.f32 %v2655_v11 }
0x1139   : > { %v2671_v13 = vmul.f32 %v4088_v23, %v2670_v12 }
0x113a   : > { %3785 = vmatmul.msk.f32.vlgmr.msrb.gmra.mxu1 %vm617_vm2, %v5314_v58 }
0x113b   : > { %v2675_v14 = vsel %vm2674_vm14, %v4088_v23, %v2671_v13 }
0x113c   : > { %v2687_v15 = vmul.f32 %v2675_v14, %v2636_v40 }
0x113e   : > { %v4090_v62 = vpop.eup %4089  ;;  %v2692_v17 = vmul.f32 %v3954_v59, %v2687_v15 }
0x113f   : > { %v2677_v48 = vmul.f32 %v4090_v62, %v2655_v11  ;;  %vm2683_vm15 = vweird.f32 %v4090_v62 }
0x1140   : > { %v5318_v19 = vadd.f32 %v3955_v2, %v2692_v17  ;;  %vm2684_vm1 = vmor %vm2682_vm0, %vm2683_vm15 }
0x1141   : > { %v2678_v22 = vmul.f32 %v4090_v62, %v2677_v48 }
0x1142   : > { %3786 = vmatmul.msk.f32.gmra.mxu1 %vm617_vm2, %v5318_v19 }
0x1143   : > { %v2679_v25 = vmul.f32 0.5, %v2678_v22  ;;  %v4157_v22 = vld [vmem:[%s5765_s10] sm:$0xff] }
0x1145   : > { %v2680_v9 = vsub.f32 1.5, %v2679_v25 }
0x1147   : > { %v2681_v18 = vmul.f32 %v4090_v62, %v2680_v9 }
0x1149   : > { %v2685_v20 = vsel %vm2684_vm1, %v4090_v62, %v2681_v18 }
0x114a   : > { %v2688_v27 = vmul.f32 %v2685_v20, %v5288_v10  ;;  %v4158_v20 = vld [vmem:[%s5765_s10 + $0x8] sm:$0xff] }
0x114c   : > { %v2693_v45 = vmul.f32 %v3954_v59, %v2688_v27 }
0x114e   : > { %v5323_v28 = vadd.f32 %v3955_v2, %v2693_v45 }
0x1150   : > { %3787 = vmatmul.msk.f32.gmra.mxu1 %vm617_vm2, %v5323_v28 }
0x11b7   : > { %v2732_v57 = vpop.f32.mrf.mxu1 }
0x11b8   : > { %v5330_v24 = vadd.f32 %v3956_v29, %v2732_v57  ;;  %v4159_v57 = vld [vmem:[%s5765_s10 + $0x10] sm:$0xff] }
0x11ba   : > { %2762 = vrot.lane.b32.xlu0 %v5330_v24, %s4182_s27  ;;  %v2771_v0 = vmul.f32 0.35355338, %v5330_v24 }
0x11bf   : > { %v2735_v31 = vpop.f32.mrf.mxu1 }
0x11c0   : > { %v5334_v16 = vadd.f32 %v3956_v29, %v2735_v31 }
0x11c2   : > { %2764 = vrot.lane.b32.xlu1 %v5334_v16, %s4182_s27  ;;  %2755 = vrot.lane.b32.xlu0 %v5334_v16, %s4183_s29  ;;  %v2772_v1 = vmul.f32 0.35355338, %v5334_v16 }
0x11ca   : > { %2753 = vrot.lane.b32.xlu1 %v5330_v24, %s4183_s29  ;;  %2746 = vrot.lane.b32.xlu0 %v5334_v16, %s4184_s28 }
0x11cd   : > { %v2738_v34 = vpop.f32.mrf.mxu1 }
0x11ce   : > { %v5344_v43 = vadd.f32 %v3956_v29, %v2738_v34 }
0x11d0   : > { %2766 = vrot.lane.b32.xlu2 %v5344_v43, %s4182_s27  ;;  %s5785_s27 = smov 64   ;;  %v2773_v2 = vmul.f32 0.35355338, %v5344_v43 }
0x11d2   : > { %2744 = vrot.lane.b32.xlu1 %v5330_v24, %s4184_s28 }
0x11d8   : > { %2757 = vrot.lane.b32.xlu2 %v5344_v43, %s4183_s29  ;;  %s5787_s29 = smov 16  }
0x11e0   : > { %2748 = vrot.lane.b32.xlu2 %v5344_v43, %s4184_s28 }
0x122a   : > { %v5354_v35 = vpop.permute.xlu2 %2766 }
0x122b   : > { %2805 = vrot.lane.b32.xlu2 %v5354_v35, %s5784_s18  ;;  %v2782_v17 = vmul.f32 0.35355338, %v5354_v35 }
0x122c   : > { %v5358_v37 = vpop.permute.xlu0 %2762 }
0x122d   : > { %2801 = vrot.lane.b32.xlu1 %v5358_v37, %s5784_s18  ;;  %v2780_v15 = vmul.f32 0.35355338, %v5358_v37 }
0x1232   : > { %v5362_v55 = vpop.permute.xlu2 %2757 }
0x1233   : > { %2799 = vrot.lane.b32.xlu2 %v5362_v55, %s5784_s18  ;;  %v3920_v41 = vpack.i.bf16 %v5362_v55, %v5358_v37  ;;  %v2779_v14 = vmul.f32 0.35355338, %v5362_v55  ;;  %v4160_v37 = vld [vmem:[%s5765_s10 + $0x18] sm:$0xff] }
0x1234   : > { %v5366_v40 = vpop.permute.xlu1 %2764  ;;  %v5370_v32 = vpop.permute.xlu0 %2755 }
0x1235   : > { %2803 = vrot.lane.b32.xlu0 %v5366_v40, %s5784_s18  ;;  %v3915_v7 = vpack.i.bf16 %v5366_v40, %v5354_v35  ;;  %v2778_v13 = vmul.f32 0.35355338, %v5370_v32  ;;  %v2781_v62 = vmul.f32 0.35355338, %v5366_v40 }
0x123a   : > { %v5372_v5 = vpop.permute.xlu2 %2748 }
0x123b   : > { %2793 = vrot.lane.b32.xlu2 %v5372_v5, %s5784_s18  ;;  %v2776_v11 = vmul.f32 0.35355338, %v5372_v5 }
0x123c   : > { %v5376_v38 = vpop.permute.xlu1 %2753  ;;  %v5384_v4 = vpop.permute.xlu0 %2746 }
0x123d   : > { %2795 = vrot.lane.b32.xlu1 %v5376_v38, %s5784_s18  ;;  %2797 = vrot.lane.b32.xlu0 %v5370_v32, %s5784_s18  ;;  %v3910_v56 = vpack.i.bf16 %v5376_v38, %v5370_v32  ;;  %v2775_v61 = vmul.f32 0.35355338, %v5384_v4  ;;  %v2777_v12 = vmul.f32 0.35355338, %v5376_v38  ;;  %v4161_v38 = vld [vmem:[%s5765_s10 + $0x20] sm:$0xff] }
0x1243   : > { %2787 = vrot.lane.b32.xlu2 %v5344_v43, %s5784_s18 }
0x1244   : > { %v5386_v10 = vpop.permute.xlu1 %2744 }
0x1245   : > { %2789 = vrot.lane.b32.xlu1 %v5386_v10, %s5784_s18  ;;  %2791 = vrot.lane.b32.xlu0 %v5384_v4, %s5784_s18  ;;  %v2774_v3 = vmul.f32 0.35355338, %v5386_v10 }
0x124b   : > { %3911 = vrot.lane.b32.xlu2 %v3910_v56, %s5785_s27 }
0x124d   : > { %2783 = vrot.lane.b32.xlu1 %v5330_v24, %s5784_s18  ;;  %2785 = vrot.lane.b32.xlu0 %v5334_v16, %s5784_s18  ;;  %s5786_s18 = smov 8  }
0x1255   : > { %3916 = vrot.lane.b32.xlu1 %v3915_v7, %s5785_s27  ;;  %3921 = vrot.lane.b32.xlu0 %v3920_v41, %s5785_s27 }
0x1285   : > { %v2806_v39 = vpop.permute.xlu2 %2805 }
0x1286   : > { %3788 = vmatpush.xpose.msk.msra.mxu0 %vm1970_vm5, %v2806_v39  ;;  %v4162_v39 = vld [vmem:[%s5765_s10 + $0x28] sm:$0xff] }
0x128d   : > { %v2800_v46 = vpop.permute.xlu2 %2799 }
0x1295   : > { %v2794_v33 = vpop.permute.xlu2 %2793 }
0x129d   : > { %v2788_v63 = vpop.permute.xlu2 %2787 }
0x129f   : > { %v2802_v21 = vpop.permute.xlu1 %2801 }
0x12a5   : > { %v3912_v59 = vpop.permute.xlu2 %3911 }
0x12a6   : > { %v3913_v44 = vunpack.i.l.bf16 %v3912_v59  ;;  %v3914_v50 = vunpack.i.h.bf16 %v3912_v59 }
0x12a7   : > { %v2804_v42 = vpop.permute.xlu0 %2803 }
0x12a8   : > { %3789 = vmatpush.xpose.msk.msra.mxu0 %vm1970_vm5, %v2804_v42  ;;  %v3925_v42 = vpack.i.bf16 %v5384_v4, %v5372_v5  ;;  %v3930_v5 = vpack.i.bf16 %v5344_v43, %v5386_v10  ;;  %v3935_v4 = vpack.i.bf16 %v5330_v24, %v5334_v16  ;;  %v4165_v43 = vld [vmem:[%s5765_s10 + $0x48] sm:$0xff] }
0x12ac   : > { %3790 = vmatpush.xpose.msk.msra.mxu0 %vm1970_vm5, %v2802_v21 }
0x12af   : > { %v2796_v47 = vpop.permute.xlu1 %2795  ;;  %v2798_v26 = vpop.permute.xlu0 %2797 }
0x12b0   : > { %3791 = vmatpush.xpose.msk.msra.mxu0 %vm1970_vm5, %v2800_v46 }
0x12b4   : > { %3792 = vmatpush.xpose.msk.msra.mxu0 %vm1970_vm5, %v2798_v26  ;;  %v4163_v26 = vld [vmem:[%s5765_s10 + $0x30] sm:$0xff] }
0x12b7   : > { %v2790_v6 = vpop.permute.xlu1 %2789  ;;  %v2792_v49 = vpop.permute.xlu0 %2791 }
0x12b8   : > { %3793 = vmatpush.xpose.msk.msra.mxu0 %vm1970_vm5, %v2796_v47 }
0x12bc   : > { %3794 = vmatpush.xpose.msk.msra.mxu0 %vm1970_vm5, %v2794_v33 }
0x12bf   : > { %v2784_v36 = vpop.permute.xlu1 %2783  ;;  %v2786_v30 = vpop.permute.xlu0 %2785 }
0x12c0   : > { %3795 = vmatpush.xpose.msk.msra.mxu0 %vm1970_vm5, %v2792_v49 }
0x12c4   : > { %3796 = vmatpush.xpose.msk.msra.mxu0 %vm1970_vm5, %v2790_v6 }
0x12c7   : > { %v3917_v51 = vpop.permute.xlu1 %3916  ;;  %v3922_v23 = vpop.permute.xlu0 %3921 }
0x12c8   : > { %v3918_v52 = vunpack.i.l.bf16 %v3917_v51  ;;  %3797 = vmatpush.xpose.msk.msra.mxu0 %vm1970_vm5, %v2788_v63  ;;  %v3919_v53 = vunpack.i.h.bf16 %v3917_v51  ;;  %v3923_v54 = vunpack.i.l.bf16 %v3922_v23  ;;  %v3924_v60 = vunpack.i.h.bf16 %v3922_v23 }
0x12ca   : > { %3128 = vmatpush.msra.mxu1 %v3918_v52 }
0x12cc   : > { %3798 = vmatpush.xpose.msk.msra.mxu0 %vm1970_vm5, %v2786_v30  ;;  %3129 = vmatpush.msra.mxu1 %v3919_v53  ;;  %v4164_v30 = vld [vmem:[%s5765_s10 + $0x38] sm:$0xff] }
0x12ce   : > { %3130 = vmatpush.msra.mxu1 %v3923_v54 }
0x12d0   : > { %3799 = vmatpush.xpose.msk.msra.mxu0 %vm1970_vm5, %v2784_v36  ;;  %3131 = vmatpush.msra.mxu1 %v3924_v60 }
0x12d2   : > { %3132 = vmatpush.msra.mxu1 %v3913_v44 }
0x12d3   : > { %3800 = vmatmul.msk.f32.vlgmr.msra.gmra.mxu0 %vm1970_vm5, %v2771_v0 }
0x12d4   : > { %3133 = vmatpush.msra.mxu1 %v3914_v50 }
0x12db   : > { %3801 = vmatmul.msk.f32.gmra.mxu0 %vm1970_vm5, %v2772_v1 }
0x12e3   : > { %3802 = vmatmul.msk.f32.gmra.mxu0 %vm1970_vm5, %v2773_v2 }
0x12eb   : > { %3803 = vmatmul.msk.f32.gmra.mxu0 %vm1970_vm5, %v2774_v3 }
0x12f3   : > { %3804 = vmatmul.msk.f32.gmra.mxu0 %vm1970_vm5, %v2775_v61 }
0x12fb   : > { %3805 = vmatmul.msk.f32.gmra.mxu0 %vm1970_vm5, %v2776_v11  ;;  %v4166_v11 = vld [vmem:[%s5765_s10 + $0x40] sm:$0xff] }
0x1303   : > { %3806 = vmatmul.msk.f32.gmra.mxu0 %vm1970_vm5, %v2777_v12 }
0x130b   : > { %3807 = vmatmul.msk.f32.gmra.mxu0 %vm1970_vm5, %v2778_v13 }
0x1313   : > { %3808 = vmatmul.msk.f32.gmra.mxu0 %vm1970_vm5, %v2779_v14 }
0x131b   : > { %3809 = vmatmul.msk.f32.gmra.mxu0 %vm1970_vm5, %v2780_v15 }
0x1323   : > { %3810 = vmatmul.msk.f32.gmra.mxu0 %vm1970_vm5, %v2781_v62 }
0x132b   : > { %3811 = vmatmul.msk.f32.gmra.mxu0 %vm1970_vm5, %v2782_v17 }
0x1350   : > { %v2884_v48 = vpop.f32.mrf.mxu0 }
0x1351   : > { %v2885_v25 = vadd.f32 %v4157_v22, %v2884_v48 }
0x1353   : > { %v2920_v9 = vsel %vm1059_vm10, %v2885_v25, -inf }
0x1354   : > { %2921 = vmax.xlane.f32.xlu2 %v2920_v9 }
0x1358   : > { %v2887_v18 = vpop.f32.mrf.mxu0 }
0x1359   : > { %v2888_v27 = vadd.f32 %v4158_v20, %v2887_v18 }
0x135b   : > { %v2923_v45 = vsel %vm1059_vm10, %v2888_v27, -inf }
0x135c   : > { %2924 = vmax.xlane.f32.xlu0 %v2923_v45 }
0x1360   : > { %v2890_v29 = vpop.f32.mrf.mxu0 }
0x1361   : > { %v2891_v31 = vadd.f32 %v4159_v57, %v2890_v29 }
0x1363   : > { %v2926_v34 = vsel %vm1059_vm10, %v2891_v31, -inf }
0x1364   : > { %2927 = vmax.xlane.f32.xlu1 %v2926_v34  ;;  %v4168_v34 = vld [vmem:[%s5765_s10 + $0x58] sm:$0xff] }
0x1368   : > { %v2893_v35 = vpop.f32.mrf.mxu0 }
0x1369   : > { %v2894_v55 = vadd.f32 %v4160_v37, %v2893_v35 }
0x136b   : > { %v2929_v40 = vsel %vm1059_vm10, %v2894_v55, -inf }
0x136c   : > { %2930 = vmax.xlane.f32.xlu2 %v2929_v40 }
0x1370   : > { %v2896_v32 = vpop.f32.mrf.mxu0 }
0x1371   : > { %v5460_v56 = vadd.f32 %v4161_v38, %v2896_v32 }
0x1373   : > { %v2932_v41 = vsel %vm1059_vm10, %v5460_v56, -inf }
0x1374   : > { %2933 = vmax.xlane.f32.xlu0 %v2932_v41 }
0x1378   : > { %v2899_v7 = vpop.f32.mrf.mxu0 }
0x1379   : > { %v5467_v21 = vadd.f32 %v4162_v39, %v2899_v7 }
0x137b   : > { %v2935_v46 = vsel %vm1059_vm10, %v5467_v21, -inf }
0x137c   : > { %2936 = vmax.xlane.f32.xlu2 %v2935_v46 }
0x137d   : > { %3926 = vrot.lane.b32.xlu1 %v3925_v42, %s5785_s27 }
0x1380   : > { %v2902_v47 = vpop.f32.mrf.mxu0 }
0x1381   : > { %v5477_v6 = vadd.f32 %v4163_v26, %v2902_v47 }
0x1383   : > { %v2938_v49 = vsel %vm1059_vm10, %v5477_v6, -inf }
0x1384   : > { %2939 = vmax.xlane.f32.xlu0 %v2938_v49 }
0x1388   : > { %v2905_v33 = vpop.f32.mrf.mxu0 }
0x1389   : > { %v5490_v63 = vadd.f32 %v4164_v30, %v2905_v33 }
0x138b   : > { %v2941_v52 = vsel %vm1059_vm10, %v5490_v63, -inf }
0x1390   : > { %v2908_v36 = vpop.f32.mrf.mxu0 }
0x1391   : > { %v5512_v12 = vadd.f32 %v4166_v11, %v2908_v36 }
0x1393   : > { %v2944_v22 = vsel %vm1059_vm10, %v5512_v12, -inf }
0x1394   : > { %3931 = vrot.lane.b32.xlu2 %v3930_v5, %s5785_s27 }
0x1398   : > { %3936 = vrot.lane.b32.xlu0 %v3935_v4, %s5785_s27  ;;  %v2911_v51 = vpop.f32.mrf.mxu0 }
0x1399   : > { %v5497_v10 = vadd.f32 %v4165_v43, %v2911_v51 }
0x139b   : > { %v2947_v24 = vsel %vm1059_vm10, %v5497_v10, -inf }
0x13a0   : > { %v2914_v62 = vpop.f32.mrf.mxu0 }
0x13bd   : > { %2942 = vmax.xlane.f32.xlu2 %v2941_v52 }
0x13c2   : > { %2948 = vmax.xlane.f32.xlu0 %v2947_v24 }
0x13c7   : > { %v2922_v16 = vpop.xlane.xlu2 %2921 }
0x13c8   : > { %v2956_v23 = vsub.f32 %v2885_v25, %v2922_v16  ;;  %v4167_v25 = vld [vmem:[%s5765_s10 + $0x50] sm:$0xff] }
0x13c9   : > { %v5523_v9 = vadd.f32 %v4167_v25, %v2914_v62 }
0x13ca   : > { %v2968_v53 = vmul.f32 1.442695, %v2956_v23 }
0x13cb   : > { %v2950_v29 = vsel %vm1059_vm10, %v5523_v9, -inf }
0x13cc   : > { %4091 = vpow2.f32 %v2968_v53 }
0x13cf   : > { %v2925_v54 = vpop.xlane.xlu0 %2924 }
0x13d0   : > { %v2957_v59 = vsub.f32 %v2888_v27, %v2925_v54 }
0x13d2   : > { %v5501_v60 = vpop.eup %4091  ;;  %v2970_v44 = vmul.f32 1.442695, %v2957_v59 }
0x13d3   : > { %v2992_v0 = vsel %vm1059_vm10, %v5501_v60, 0.0 }
0x13d4   : > { %4093 = vpow2.f32 %v2970_v44  ;;  %2993 = vadd.xlane.f32.xlu1 %v2992_v0 }
0x13d7   : > { %v2928_v50 = vpop.xlane.xlu1 %2927 }
0x13d8   : > { %v2958_v1 = vsub.f32 %v2891_v31, %v2928_v50  ;;  %v2917_v31 = vpop.f32.mrf.mxu0 }
0x13d9   : > { %v5535_v35 = vadd.f32 %v4168_v34, %v2917_v31 }
0x13da   : > { %v5505_v2 = vpop.eup %4093  ;;  %v2972_v3 = vmul.f32 1.442695, %v2958_v1 }
0x13db   : > { %v2995_v61 = vsel %vm1059_vm10, %v5505_v2, 0.0  ;;  %v2953_v7 = vsel %vm1059_vm10, %v5535_v35, -inf }
0x13dc   : > { %4095 = vpow2.f32 %v2972_v3  ;;  %2996 = vadd.xlane.f32.xlu1 %v2995_v61 }
0x13df   : > { %v2931_v13 = vpop.xlane.xlu2 %2930 }
0x13e0   : > { %v2959_v14 = vsub.f32 %v2894_v55, %v2931_v13 }
0x13e2   : > { %v5514_v15 = vpop.eup %4095  ;;  %v2974_v17 = vmul.f32 1.442695, %v2959_v14 }
0x13e3   : > { %v2998_v48 = vsel %vm1059_vm10, %v5514_v15, 0.0 }
0x13e4   : > { %4097 = vpow2.f32 %v2974_v17  ;;  %2999 = vadd.xlane.f32.xlu2 %v2998_v48  ;;  %2945 = vmax.xlane.f32.xlu1 %v2944_v22 }
0x13e7   : > { %v2934_v18 = vpop.xlane.xlu0 %2933 }
0x13e8   : > { %v2960_v20 = vsub.f32 %v5460_v56, %v2934_v18 }
0x13ea   : > { %v5526_v27 = vpop.eup %4097  ;;  %v2976_v45 = vmul.f32 1.442695, %v2960_v20 }
0x13eb   : > { %v3001_v57 = vsel %vm1059_vm10, %v5526_v27, 0.0 }
0x13ec   : > { %4099 = vpow2.f32 %v2976_v45  ;;  %2951 = vmax.xlane.f32.xlu2 %v2950_v29  ;;  %3002 = vadd.xlane.f32.xlu1 %v3001_v57 }
0x13ef   : > { %v3927_v37 = vpop.permute.xlu1 %3926  ;;  %v2937_v55 = vpop.xlane.xlu2 %2936 }
0x13f0   : > { %v3928_v40 = vunpack.i.l.bf16 %v3927_v37  ;;  %v2961_v32 = vsub.f32 %v5467_v21, %v2937_v55  ;;  %v3929_v41 = vunpack.i.h.bf16 %v3927_v37 }
0x13f2   : > { %v5538_v38 = vpop.eup %4099  ;;  %v2978_v56 = vmul.f32 1.442695, %v2961_v32  ;;  %3134 = vmatpush.msra.mxu1 %v3928_v40 }
0x13f3   : > { %v3004_v39 = vsel %vm1059_vm10, %v5538_v38, 0.0 }
0x13f4   : > { %4101 = vpow2.f32 %v2978_v56  ;;  %2954 = vmax.xlane.f32.xlu2 %v2953_v7  ;;  %3005 = vadd.xlane.f32.xlu1 %v3004_v39 }
0x13f5   : > { %3135 = vmatpush.msra.mxu1 %v3929_v41 }
0x13f7   : > { %v3932_v42 = vpop.permute.xlu2 %3931  ;;  %v2940_v46 = vpop.xlane.xlu0 %2939 }
0x13f8   : > { %v3933_v47 = vunpack.i.l.bf16 %v3932_v42  ;;  %v2962_v21 = vsub.f32 %v5477_v6, %v2940_v46  ;;  %v3934_v49 = vunpack.i.h.bf16 %v3932_v42 }
0x13fa   : > { %v5545_v26 = vpop.eup %4101  ;;  %v2980_v5 = vmul.f32 1.442695, %v2962_v21  ;;  %3136 = vmatpush.msra.mxu1 %v3933_v47 }
0x13fb   : > { %v3007_v4 = vsel %vm1059_vm10, %v5545_v26, 0.0 }
0x13fc   : > { %4103 = vpow2.f32 %v2980_v5  ;;  %3008 = vadd.xlane.f32.xlu1 %v3007_v4  ;;  %3137 = vmatpush.msra.mxu1 %v3934_v49 }
0x1402   : > { %v5549_v33 = vpop.eup %4103 }
0x1403   : > { %v3010_v36 = vsel %vm1059_vm10, %v5549_v33, 0.0 }
0x1404   : > { %3011 = vadd.xlane.f32.xlu2 %v3010_v36 }
0x140a   : > { %v3937_v30 = vpop.permute.xlu0 %3936 }
0x140b   : > { %v3938_v51 = vunpack.i.l.bf16 %v3937_v30  ;;  %v3939_v6 = vunpack.i.h.bf16 %v3937_v30 }
0x140d   : > { %3138 = vmatpush.msra.mxu1 %v3938_v51 }
0x140f   : > { %3139 = vmatpush.msra.mxu1 %v3939_v6 }
0x1430   : > { %v2943_v52 = vpop.xlane.xlu2 %2942 }
0x1431   : > { %v2963_v43 = vsub.f32 %v5490_v63, %v2943_v52 }
0x1433   : > { %v2982_v24 = vmul.f32 1.442695, %v2963_v43 }
0x1435   : > { %4105 = vpow2.f32 %v2982_v24  ;;  %v2949_v16 = vpop.xlane.xlu0 %2948 }
0x1436   : > { %v2965_v23 = vsub.f32 %v5497_v10, %v2949_v16 }
0x1438   : > { %v2986_v53 = vmul.f32 1.442695, %v2965_v23 }
0x143a   : > { %4107 = vpow2.f32 %v2986_v53 }
0x143b   : > { %v5555_v54 = vpop.eup %4105 }
0x143c   : > { %v3013_v59 = vsel %vm1059_vm10, %v5555_v54, 0.0 }
0x143d   : > { %3014 = vadd.xlane.f32.xlu1 %v3013_v59 }
0x1440   : > { %v5559_v44 = vpop.eup %4107 }
0x1441   : > { %v3019_v0 = vsel %vm1059_vm10, %v5559_v44, 0.0 }
0x1445   : > { %3020 = vadd.xlane.f32.xlu1 %v3019_v0  ;;  %v3827_v0 = vld [vmem:[%s5767_s12 + $0x38] sm:$0xff] }
0x1446   : > { %3250 = vmatpush.msrb.mxu3 %v3827_v0 }
0x1447   : > { %v2994_v63 = vpop.xlane.xlu1 %2993 }
0x1448   : > { %4109 = vrcp.f32 %v2994_v63  ;;  %v3826_v63 = vld [vmem:[%s5767_s12 + $0x30] sm:$0xff] }
0x1449   : > { %3251 = vmatpush.msrb.mxu3 %v3826_v63 }
0x144e   : > { %v4110_v50 = vpop.eup %4109 }
0x144f   : > { %v3040_v1 = vmul.f32 %v4110_v50, %v5501_v60  ;;  %v2997_v10 = vpop.xlane.xlu1 %2996  ;;  %v3825_v50 = vld [vmem:[%s5767_s12 + $0x28] sm:$0xff] }
0x1450   : > { %4111 = vrcp.f32 %v2997_v10  ;;  %3252 = vmatpush.msrb.mxu3 %v3825_v50 }
0x1451   : > { %3812 = vmatmul.msk.f32.vlgmr.msra.gmra.mxu1 %vm1059_vm10, %v3040_v1 }
0x1456   : > { %v4112_v3 = vpop.eup %4111 }
0x1457   : > { %v3000_v61 = vpop.xlane.xlu2 %2999  ;;  %v2946_v11 = vpop.xlane.xlu1 %2945  ;;  %v3041_v13 = vmul.f32 %v4112_v3, %v5505_v2 }
0x1458   : > { %4113 = vrcp.f32 %v3000_v61  ;;  %v2964_v14 = vsub.f32 %v5512_v12, %v2946_v11  ;;  %v3824_v11 = vld [vmem:[%s5767_s12 + $0x20] sm:$0xff] }
0x1459   : > { %3813 = vmatmul.msk.f32.gmra.mxu1 %vm1059_vm10, %v3041_v13  ;;  %3253 = vmatpush.msrb.mxu3 %v3824_v11 }
0x145a   : > { %v2984_v62 = vmul.f32 1.442695, %v2964_v14 }
0x145c   : > { %4115 = vpow2.f32 %v2984_v62 }
0x145e   : > { %v4114_v17 = vpop.eup %4113 }
0x145f   : > { %v2952_v48 = vpop.xlane.xlu2 %2951  ;;  %v3003_v22 = vpop.xlane.xlu1 %3002  ;;  %v3042_v60 = vmul.f32 %v4114_v17, %v5514_v15 }
0x1460   : > { %v2966_v25 = vsub.f32 %v5523_v9, %v2952_v48  ;;  %4117 = vrcp.f32 %v3003_v22 }
0x1461   : > { %3814 = vmatmul.msk.f32.gmra.mxu1 %vm1059_vm10, %v3042_v60 }
0x1462   : > { %v4116_v18 = vpop.eup %4115  ;;  %v2988_v20 = vmul.f32 1.442695, %v2966_v25 }
0x1463   : > { %v3016_v2 = vsel %vm1059_vm10, %v4116_v18, 0.0 }
0x1464   : > { %4119 = vpow2.f32 %v2988_v20  ;;  %3017 = vadd.xlane.f32.xlu2 %v3016_v2 }
0x1466   : > { %v4118_v12 = vpop.eup %4117 }
0x1467   : > { %v2955_v45 = vpop.xlane.xlu2 %2954  ;;  %v3006_v29 = vpop.xlane.xlu1 %3005  ;;  %v3043_v57 = vmul.f32 %v4118_v12, %v5526_v27 }
0x1468   : > { %v2967_v31 = vsub.f32 %v5535_v35, %v2955_v45  ;;  %4121 = vrcp.f32 %v3006_v29 }
0x1469   : > { %3815 = vmatmul.msk.f32.gmra.mxu1 %vm1059_vm10, %v3043_v57 }
0x146a   : > { %v4120_v15 = vpop.eup %4119  ;;  %v2990_v9 = vmul.f32 1.442695, %v2967_v31 }
0x146b   : > { %v3022_v34 = vsel %vm1059_vm10, %v4120_v15, 0.0 }
0x146c   : > { %4123 = vpow2.f32 %v2990_v9  ;;  %3023 = vadd.xlane.f32.xlu2 %v3022_v34  ;;  %v3957_v34 = vld [vmem:[%s5762_s7 + $0x12] ss:$0 sm:$0xff] }
0x146e   : > { %v4122_v37 = vpop.eup %4121 }
0x146f   : > { %v3009_v55 = vpop.xlane.xlu1 %3008  ;;  %v3044_v40 = vmul.f32 %v4122_v37, %v5538_v38 }
0x1470   : > { %4125 = vrcp.f32 %v3009_v55 }
0x1471   : > { %3816 = vmatmul.msk.f32.gmra.mxu1 %vm1059_vm10, %v3044_v40 }
0x1472   : > { %v4124_v32 = vpop.eup %4123 }
0x1473   : > { %v3025_v27 = vsel %vm1059_vm10, %v4124_v32, 0.0 }
0x1474   : > { %3026 = vadd.xlane.f32.xlu0 %v3025_v27 }
0x1476   : > { %v4126_v35 = vpop.eup %4125 }
0x1477   : > { %v3012_v56 = vpop.xlane.xlu2 %3011  ;;  %v3045_v41 = vmul.f32 %v4126_v35, %v5545_v26 }
0x1478   : > { %4127 = vrcp.f32 %v3012_v56 }
0x1479   : > { %3817 = vmatmul.msk.f32.gmra.mxu1 %vm1059_vm10, %v3045_v41 }
0x147e   : > { %v4128_v7 = vpop.eup %4127 }
0x147f   : > { %v3046_v39 = vmul.f32 %v4128_v7, %v5549_v33 }
0x1481   : > { %3818 = vmatmul.msk.f32.gmra.mxu1 %vm1059_vm10, %v3046_v39 }
0x14b0   : > { %v3015_v38 = vpop.xlane.xlu1 %3014 }
0x14b1   : > { %4129 = vrcp.f32 %v3015_v38 }
0x14b7   : > { %v4130_v42 = vpop.eup %4129 }
0x14b8   : > { %v3047_v46 = vmul.f32 %v4130_v42, %v5555_v54  ;;  %v3021_v26 = vpop.xlane.xlu1 %3020 }
0x14ba   : > { %3819 = vmatmul.msk.f32.gmra.mxu1 %vm1059_vm10, %v3047_v46  ;;  %v3833_v46 = vld [vmem:[%s5768_s13 + $0x30] sm:$0xff] }
0x14ce   : > { %v3141_v47 = vpop.f32.mrf.mxu1 }
0x14d6   : > { %v3144_v21 = vpop.f32.mrf.mxu1 }
0x14d7   : > { %v3018_v49 = vpop.xlane.xlu2 %3017 }
0x14d8   : > { %4131 = vrcp.f32 %v3018_v49 }
0x14d9   : > { %4133 = vrcp.f32 %v3021_v26 }
0x14de   : > { %v4132_v5 = vpop.eup %4131  ;;  %v3147_v4 = vpop.f32.mrf.mxu1 }
0x14df   : > { %v3048_v36 = vmul.f32 %v4132_v5, %v4116_v18  ;;  %v3024_v33 = vpop.xlane.xlu2 %3023  ;;  %v4134_v30 = vpop.eup %4133 }
0x14e0   : > { %4135 = vrcp.f32 %v3024_v33  ;;  %v3049_v6 = vmul.f32 %v4134_v30, %v5559_v44 }
0x14e1   : > { %3820 = vmatmul.msk.f32.gmra.mxu1 %vm1059_vm10, %v3048_v36 }
0x14e6   : > { %v3150_v51 = vpop.f32.mrf.mxu1  ;;  %v4136_v43 = vpop.eup %4135 }
0x14e7   : > { %3180 = vrot.lane.b32.xlu1 %v3150_v51, %s5786_s18  ;;  %v3027_v52 = vpop.xlane.xlu0 %3026  ;;  %v3050_v16 = vmul.f32 %v4136_v43, %v4120_v15 }
0x14e8   : > { %4137 = vrcp.f32 %v3027_v52 }
0x14e9   : > { %3821 = vmatmul.msk.f32.gmra.mxu1 %vm1059_vm10, %v3049_v6 }
0x14ee   : > { %v3153_v24 = vpop.f32.mrf.mxu1  ;;  %v4138_v23 = vpop.eup %4137 }
0x14ef   : > { %v3051_v54 = vmul.f32 %v4138_v23, %v4124_v32 }
0x14f1   : > { %3822 = vmatmul.msk.f32.gmra.mxu1 %vm1059_vm10, %v3050_v16 }
0x14f6   : > { %v3156_v53 = vpop.f32.mrf.mxu1 }
0x14f9   : > { %3823 = vmatmul.msk.f32.gmra.mxu1 %vm1059_vm10, %v3051_v54  ;;  %v3831_v54 = vld [vmem:[%s5768_s13 + $0x20] sm:$0xff] }
0x14fe   : > { %v3159_v59 = vpop.f32.mrf.mxu1 }
0x14ff   : > { %3192 = vrot.lane.b32.xlu2 %v3159_v59, %s5787_s29 }
0x1507   : > { %3182 = vrot.lane.b32.xlu2 %v3153_v24, %s5786_s18 }
0x150f   : > { %3184 = vrot.lane.b32.xlu2 %v3156_v53, %s5786_s18  ;;  %v3832_v53 = vld [vmem:[%s5768_s13 + $0x28] sm:$0xff] }
0x1537   : > { %v3162_v44 = vpop.f32.mrf.mxu1 }
0x1559   : > { %v3193_v13 = vpop.permute.xlu2 %3192  ;;  %v3181_v14 = vpop.permute.xlu1 %3180 }
0x155a   : > { %v3213_v62 = vsel %vm1970_vm5, %v3141_v47, %v3181_v14 }
0x155b   : > { %v3216_v17 = vsel %vm2380_vm6, %v3213_v62, %v3193_v13 }
0x155e   : > { %v3165_v1 = vpop.f32.mrf.mxu1 }
0x1561   : > { %v3183_v60 = vpop.permute.xlu2 %3182 }
0x1562   : > { %v3214_v25 = vsel %vm1970_vm5, %v3144_v21, %v3183_v60  ;;  %v3959_v60 = vld [vmem:[%s5762_s7 + $0x14] ss:$0 sm:$0xff] }
0x1566   : > { %v3168_v10 = vpop.f32.mrf.mxu1 }
0x1567   : > { %3204 = vrot.lane.b32.xlu0 %v3168_v10, %s5788_s24 }
0x1569   : > { %v3185_v45 = vpop.permute.xlu2 %3184 }
0x156a   : > { %v3215_v29 = vsel %vm1970_vm5, %v3147_v4, %v3185_v45 }
0x156e   : > { %v3171_v3 = vpop.f32.mrf.mxu1 }
0x156f   : > { %3194 = vrot.lane.b32.xlu0 %v3162_v44, %s5787_s29  ;;  %3206 = vrot.lane.b32.xlu1 %v3171_v3, %s5788_s24 }
0x1576   : > { %v3174_v61 = vpop.f32.mrf.mxu1 }
0x1577   : > { %3196 = vrot.lane.b32.xlu0 %v3165_v1, %s5787_s29  ;;  %3208 = vrot.lane.b32.xlu1 %v3174_v61, %s5788_s24 }
0x15d9   : > { %v3205_v48 = vpop.permute.xlu0 %3204 }
0x15da   : > { %v3219_v22 = vsel %vm1503_vm8, %v3216_v17, %v3205_v48  ;;  %v3958_v17 = vld [vmem:[%s5762_s7 + $0x13] ss:$0 sm:$0xff] }
0x15db   : > { %3828 = vmatmul.msk.f32.vlgmr.msrb.gmra.mxu3 %vm617_vm2, %v3219_v22 }
0x15e1   : > { %v3195_v18 = vpop.permute.xlu0 %3194  ;;  %v3207_v20 = vpop.permute.xlu1 %3206 }
0x15e2   : > { %v3217_v2 = vsel %vm2380_vm6, %v3214_v25, %v3195_v18 }
0x15e3   : > { %v3220_v12 = vsel %vm1503_vm8, %v3217_v2, %v3207_v20 }
0x15e4   : > { %3829 = vmatmul.msk.f32.gmra.mxu3 %vm617_vm2, %v3220_v12 }
0x15e9   : > { %v3197_v57 = vpop.permute.xlu0 %3196  ;;  %v3209_v31 = vpop.permute.xlu1 %3208 }
0x15ea   : > { %v3218_v15 = vsel %vm2380_vm6, %v3215_v29, %v3197_v57 }
0x15eb   : > { %v3221_v9 = vsel %vm1503_vm8, %v3218_v15, %v3209_v31 }
0x15ec   : > { %3830 = vmatmul.msk.f32.gmra.mxu3 %vm617_vm2, %v3221_v9 }
0x165e   : > { %v3255_v37 = vpop.f32.mrf.mxu3 }
0x165f   : > { %v3256_v55 = vadd.f32 %v3957_v34, %v3255_v37 }
0x1661   : > { %v3264_v40 = vadd.f32 %v3256_v55, %v5314_v58  ;;  %v3834_v58 = vld [vmem:[%s5768_s13 + $0x38] sm:$0xff] }
0x1662   : > { %3371 = vmatpush.msrb.mxu2 %v3834_v58  ;;  %v3960_v58 = vld [vmem:[%s5762_s7 + $0x15] ss:$0 sm:$0xff] }
0x1663   : > { %v3267_v32 = vsel %vm617_vm2, %v3264_v40, 0.0 }
0x1664   : > { %3268 = vadd.xlane.f32.xlu2 %v3267_v32  ;;  %3372 = vmatpush.msrb.mxu2 %v3833_v46  ;;  %v3842_v46 = vld [vmem:[%s5769_s14 + $0x60] sm:$0xff] }
0x1666   : > { %3373 = vmatpush.msrb.mxu2 %v3832_v53 }
0x1667   : > { %v3258_v27 = vpop.f32.mrf.mxu3 }
0x1668   : > { %v3259_v35 = vadd.f32 %v3957_v34, %v3258_v27  ;;  %3374 = vmatpush.msrb.mxu2 %v3831_v54 }
0x166a   : > { %v3265_v56 = vadd.f32 %v3259_v35, %v5318_v19 }
0x166c   : > { %v3270_v41 = vsel %vm617_vm2, %v3265_v56, 0.0 }
0x166d   : > { %3271 = vadd.xlane.f32.xlu0 %v3270_v41 }
0x166f   : > { %v3261_v7 = vpop.f32.mrf.mxu3 }
0x1670   : > { %v3262_v39 = vadd.f32 %v3957_v34, %v3261_v7 }
0x1672   : > { %v3266_v38 = vadd.f32 %v3262_v39, %v5323_v28  ;;  %v3845_v39 = vld [vmem:[%s5769_s14 + $0x78] sm:$0xff] }
0x1673   : > { %3440 = vmatpush.msra.mxu3 %v3845_v39 }
0x1674   : > { %v3273_v42 = vsel %vm617_vm2, %v3266_v38, 0.0 }
0x1675   : > { %3274 = vadd.xlane.f32.xlu1 %v3273_v42  ;;  %v3843_v42 = vld [vmem:[%s5769_s14 + $0x68] sm:$0xff] }
0x16d7   : > { %v3269_v19 = vpop.xlane.xlu2 %3268 }
0x16d8   : > { %v3276_v47 = vmul.f32 %v3269_v19, %v4668_v8  ;;  %v3841_v19 = vld [vmem:[%s5769_s14 + $0x58] sm:$0xff] }
0x16da   : > { %v3279_v21 = vsub.f32 %v3264_v40, %v3276_v47  ;;  %v3840_v47 = vld [vmem:[%s5769_s14 + $0x50] sm:$0xff] }
0x16dc   : > { %v3282_v49 = vmul.f32 %v3279_v21, %v3279_v21 }
0x16de   : > { %v3285_v28 = vsel %vm617_vm2, %v3282_v49, 0.0 }
0x16df   : > { %3286 = vadd.xlane.f32.xlu2 %v3285_v28  ;;  %v3839_v28 = vld [vmem:[%s5769_s14 + $0x48] sm:$0xff] }
0x16e0   : > { %v3272_v26 = vpop.xlane.xlu0 %3271 }
0x16e1   : > { %v3277_v5 = vmul.f32 %v3272_v26, %v4668_v8 }
0x16e3   : > { %v3280_v4 = vsub.f32 %v3265_v56, %v3277_v5  ;;  %v3838_v5 = vld [vmem:[%s5769_s14 + $0x40] sm:$0xff] }
0x16e5   : > { %v3283_v36 = vmul.f32 %v3280_v4, %v3280_v4 }
0x16e7   : > { %v3288_v33 = vsel %vm617_vm2, %v3283_v36, 0.0 }
0x16e8   : > { %3289 = vadd.xlane.f32.xlu0 %v3288_v33  ;;  %v3275_v30 = vpop.xlane.xlu1 %3274 }
0x16e9   : > { %v3278_v51 = vmul.f32 %v3275_v30, %v4668_v8 }
0x16eb   : > { %v3281_v6 = vsub.f32 %v3266_v38, %v3278_v51  ;;  %v3844_v38 = vld [vmem:[%s5769_s14 + $0x70] sm:$0xff] }
0x16ec   : > { %3441 = vmatpush.msra.mxu3 %v3844_v38 }
0x16ed   : > { %v3284_v52 = vmul.f32 %v3281_v6, %v3281_v6 }
0x16ee   : > { %3442 = vmatpush.msra.mxu3 %v3843_v42 }
0x16ef   : > { %v3291_v43 = vsel %vm617_vm2, %v3284_v52, 0.0 }
0x16f0   : > { %3292 = vadd.xlane.f32.xlu1 %v3291_v43  ;;  %3443 = vmatpush.msra.mxu3 %v3842_v46 }
0x16f2   : > { %3444 = vmatpush.msra.mxu3 %v3841_v19 }
0x16f4   : > { %3445 = vmatpush.msra.mxu3 %v3840_v47 }
0x16f6   : > { %3446 = vmatpush.msra.mxu3 %v3839_v28  ;;  %v3540_v28 = vld [vmem:[%s5770_s15 + $0x18] sm:$0xff] }
0x16f7   : > { %3564 = vmatpush.msra.mxu2 %v3540_v28 }
0x16f8   : > { %3447 = vmatpush.msra.mxu3 %v3838_v5  ;;  %v3539_v5 = vld [vmem:[%s5770_s15 + $0x10] sm:$0xff] }
0x16f9   : > { %3565 = vmatpush.msra.mxu2 %v3539_v5 }
0x1752   : > { %v3287_v24 = vpop.xlane.xlu2 %3286 }
0x1753   : > { %v3294_v16 = vmul.f32 %v3287_v24, %v4668_v8 }
0x1755   : > { %v3297_v23 = vadd.f32 1e-05, %v3294_v16 }
0x1757   : > { %4139 = vrsqrt.f32 %v3297_v23  ;;  %vm3306_vm8 = vweird.f32 %v3297_v23 }
0x175b   : > { %v3290_v59 = vpop.xlane.xlu0 %3289 }
0x175c   : > { %v3295_v44 = vmul.f32 %v3290_v59, %v4668_v8 }
0x175d   : > { %v4140_v0 = vpop.eup %4139 }
0x175e   : > { %v3301_v63 = vmul.f32 %v4140_v0, %v3297_v23  ;;  %v3298_v50 = vadd.f32 1e-05, %v3295_v44  ;;  %vm3307_vm10 = vweird.f32 %v4140_v0 }
0x175f   : > { %vm3308_vm5 = vmor %vm3306_vm8, %vm3307_vm10 }
0x1760   : > { %v3302_v1 = vmul.f32 %v4140_v0, %v3301_v63  ;;  %4141 = vrsqrt.f32 %v3298_v50  ;;  %vm3316_vm3 = vweird.f32 %v3298_v50 }
0x1762   : > { %v3303_v10 = vmul.f32 0.5, %v3302_v1 }
0x1763   : > { %v3293_v3 = vpop.xlane.xlu1 %3292 }
0x1764   : > { %v3304_v61 = vsub.f32 1.5, %v3303_v10  ;;  %v3296_v11 = vmul.f32 %v3293_v3, %v4668_v8 }
0x1766   : > { %v4142_v13 = vpop.eup %4141  ;;  %v3305_v14 = vmul.f32 %v4140_v0, %v3304_v61  ;;  %v3299_v62 = vadd.f32 1e-05, %v3296_v11 }
0x1767   : > { %v3311_v48 = vmul.f32 %v4142_v13, %v3298_v50  ;;  %vm3317_vm6 = vweird.f32 %v4142_v13 }
0x1768   : > { %v3309_v22 = vsel %vm3308_vm5, %v4140_v0, %v3305_v14  ;;  %4143 = vrsqrt.f32 %v3299_v62  ;;  %vm3318_vm4 = vmor %vm3316_vm3, %vm3317_vm6  ;;  %vm3326_vm9 = vweird.f32 %v3299_v62 }
0x1769   : > { %v3330_v25 = vmul.f32 %v3309_v22, %v3279_v21  ;;  %v3312_v18 = vmul.f32 %v4142_v13, %v3311_v48 }
0x176b   : > { %v3335_v20 = vmul.f32 %v3958_v17, %v3330_v25  ;;  %v3313_v2 = vmul.f32 0.5, %v3312_v18  ;;  %v3961_v25 = vld [vmem:[%s5762_s7 + $0x16] ss:$0 sm:$0xff] }
0x176d   : > { %v5659_v12 = vadd.f32 %v3959_v60, %v3335_v20  ;;  %v3314_v45 = vsub.f32 1.5, %v3313_v2 }
0x176e   : > { %v4144_v29 = vpop.eup %4143 }
0x176f   : > { %v3315_v57 = vmul.f32 %v4142_v13, %v3314_v45  ;;  %v3321_v31 = vmul.f32 %v4144_v29, %v3299_v62  ;;  %3835 = vmatmul.msk.f32.vlgmr.msrb.gmra.mxu2 %vm617_vm2, %v5659_v12  ;;  %vm3327_vm7 = vweird.f32 %v4144_v29 }
0x1770   : > { %vm3328_vm12 = vmor %vm3326_vm9, %vm3327_vm7 }
0x1771   : > { %v3319_v15 = vsel %vm3318_vm4, %v4142_v13, %v3315_v57  ;;  %v3322_v9 = vmul.f32 %v4144_v29, %v3321_v31 }
0x1772   : > { %v3331_v34 = vmul.f32 %v3319_v15, %v3280_v4 }
0x1773   : > { %v3323_v37 = vmul.f32 0.5, %v3322_v9 }
0x1774   : > { %v3336_v55 = vmul.f32 %v3958_v17, %v3331_v34 }
0x1775   : > { %v3324_v40 = vsub.f32 1.5, %v3323_v37 }
0x1776   : > { %v5663_v32 = vadd.f32 %v3959_v60, %v3336_v55 }
0x1777   : > { %v3325_v27 = vmul.f32 %v4144_v29, %v3324_v40 }
0x1778   : > { %3836 = vmatmul.msk.f32.gmra.mxu2 %vm617_vm2, %v5663_v32 }
0x1779   : > { %v3329_v35 = vsel %vm3328_vm12, %v4144_v29, %v3325_v27 }
0x177a   : > { %v3332_v56 = vmul.f32 %v3329_v35, %v3281_v6 }
0x177c   : > { %v3337_v41 = vmul.f32 %v3958_v17, %v3332_v56 }
0x177e   : > { %v5667_v7 = vadd.f32 %v3959_v60, %v3337_v41 }
0x1780   : > { %3837 = vmatmul.msk.f32.gmra.mxu2 %vm617_vm2, %v5667_v7 }
0x17f2   : > { %v3376_v21 = vpop.f32.mrf.mxu2 }
0x17f3   : > { %v3377_v49 = vadd.f32 %v3960_v58, %v3376_v21 }
0x17f5   : > { %v3385_v26 = vmul.f32 %v3377_v49, %v3377_v49 }
0x17f7   : > { %v3388_v4 = vmul.f32 %v3385_v26, %v3377_v49 }
0x17f9   : > { %v3391_v36 = vmul.f32 0.044715, %v3388_v4  ;;  %v3538_v4 = vld [vmem:[%s5770_s15 + $0x8] sm:$0xff] }
0x17fa   : > { %3566 = vmatpush.msra.mxu2 %v3538_v4 }
0x17fb   : > { %v3394_v33 = vadd.f32 %v3391_v36, %v3377_v49  ;;  %v3379_v30 = vpop.f32.mrf.mxu2  ;;  %v3537_v36 = vld [vmem:[%s5770_s15] sm:$0xff] }
0x17fc   : > { %v3380_v51 = vadd.f32 %v3960_v58, %v3379_v30  ;;  %3567 = vmatpush.msra.mxu2 %v3537_v36 }
0x17fd   : > { %v3397_v6 = vmul.f32 0.7978846, %v3394_v33 }
0x17fe   : > { %v3386_v52 = vmul.f32 %v3380_v51, %v3380_v51 }
0x17ff   : > { %4145 = vtanh.f32 %v3397_v6 }
0x1800   : > { %v3389_v43 = vmul.f32 %v3386_v52, %v3380_v51 }
0x1802   : > { %v3392_v24 = vmul.f32 0.044715, %v3389_v43 }
0x1803   : > { %v3382_v16 = vpop.f32.mrf.mxu2 }
0x1804   : > { %v3395_v23 = vadd.f32 %v3392_v24, %v3380_v51  ;;  %v3383_v53 = vadd.f32 %v3960_v58, %v3382_v16 }
0x1805   : > { %v4146_v54 = vpop.eup %4145 }
0x1806   : > { %v3403_v59 = vadd.f32 1.0, %v4146_v54  ;;  %v3398_v44 = vmul.f32 0.7978846, %v3395_v23  ;;  %v3387_v0 = vmul.f32 %v3383_v53, %v3383_v53 }
0x1808   : > { %v3406_v63 = vmul.f32 0.5, %v3403_v59  ;;  %4147 = vtanh.f32 %v3398_v44  ;;  %v3390_v50 = vmul.f32 %v3387_v0, %v3383_v53  ;;  %v3962_v0 = vld [vmem:[%s5762_s7 + $0x17] ss:$0 sm:$0xff] }
0x180a   : > { %v3409_v1 = vmul.f32 %v3406_v63, %v3377_v49  ;;  %v3393_v10 = vmul.f32 0.044715, %v3390_v50 }
0x180c   : > { %v3396_v3 = vadd.f32 %v3393_v10, %v3383_v53  ;;  %3846 = vmatmul.msk.f32.vlgmr.msra.gmra.mxu3 %vm1041_vm11, %v3409_v1  ;;  %v3963_v1 = vld [vmem:[%s5762_s7 + $0x18] ss:$0 sm:$0xff] }
0x180e   : > { %v4148_v61 = vpop.eup %4147  ;;  %v3399_v11 = vmul.f32 0.7978846, %v3396_v3 }
0x180f   : > { %v3404_v13 = vadd.f32 1.0, %v4148_v61 }
0x1810   : > { %4149 = vtanh.f32 %v3399_v11 }
0x1811   : > { %v3407_v14 = vmul.f32 0.5, %v3404_v13 }
0x1813   : > { %v3410_v62 = vmul.f32 %v3407_v14, %v3380_v51 }
0x1815   : > { %3847 = vmatmul.msk.f32.gmra.mxu3 %vm1041_vm11, %v3410_v62 }
0x1816   : > { %v4150_v17 = vpop.eup %4149 }
0x1817   : > { %v3405_v48 = vadd.f32 1.0, %v4150_v17 }
0x1819   : > { %v3408_v22 = vmul.f32 0.5, %v3405_v48 }
0x181b   : > { %v3411_v60 = vmul.f32 %v3408_v22, %v3383_v53 }
0x181d   : > { %3848 = vmatmul.msk.f32.gmra.mxu3 %vm1041_vm11, %v3411_v60 }
0x188f   : > { %v3449_v18 = vpop.f32.mrf.mxu3 }
0x1890   : > { %v3450_v20 = vadd.f32 %v3961_v25, %v3449_v18 }
0x1892   : > { %v3458_v2 = vadd.f32 %v3450_v20, %v5659_v12 }
0x1894   : > { %v3461_v45 = vsel %vm617_vm2, %v3458_v2, 0.0 }
0x1895   : > { %3462 = vadd.xlane.f32.xlu2 %v3461_v45 }
0x1898   : > { %v3452_v29 = vpop.f32.mrf.mxu3 }
0x1899   : > { %v3453_v57 = vadd.f32 %v3961_v25, %v3452_v29 }
0x189b   : > { %v3459_v31 = vadd.f32 %v3453_v57, %v5663_v32 }
0x189d   : > { %v3464_v15 = vsel %vm617_vm2, %v3459_v31, 0.0 }
0x189e   : > { %3465 = vadd.xlane.f32.xlu0 %v3464_v15 }
0x18a0   : > { %v3455_v9 = vpop.f32.mrf.mxu3 }
0x18a1   : > { %v3456_v34 = vadd.f32 %v3961_v25, %v3455_v9  ;;  %v3964_v9 = vld [vmem:[%s5762_s7 + $0x8] ss:$0 sm:$0xff] }
0x18a3   : > { %v3460_v37 = vadd.f32 %v3456_v34, %v5667_v7 }
0x18a5   : > { %v3467_v55 = vsel %vm617_vm2, %v3460_v37, 0.0 }
0x18a6   : > { %3468 = vadd.xlane.f32.xlu1 %v3467_v55 }
0x1908   : > { %v3463_v40 = vpop.xlane.xlu2 %3462 }
0x1909   : > { %v3470_v12 = vmul.f32 %v3463_v40, %v4668_v8 }
0x190b   : > { %v3473_v27 = vsub.f32 %v3458_v2, %v3470_v12 }
0x190d   : > { %v3476_v35 = vmul.f32 %v3473_v27, %v3473_v27 }
0x190f   : > { %v3479_v56 = vsel %vm617_vm2, %v3476_v35, 0.0 }
0x1910   : > { %3480 = vadd.xlane.f32.xlu2 %v3479_v56 }
0x1911   : > { %v3466_v41 = vpop.xlane.xlu0 %3465 }
0x1912   : > { %v3471_v32 = vmul.f32 %v3466_v41, %v4668_v8 }
0x1914   : > { %v3474_v39 = vsub.f32 %v3459_v31, %v3471_v32 }
0x1916   : > { %v3477_v38 = vmul.f32 %v3474_v39, %v3474_v39 }
0x1918   : > { %v3482_v42 = vsel %vm617_vm2, %v3477_v38, 0.0 }
0x1919   : > { %3483 = vadd.xlane.f32.xlu0 %v3482_v42  ;;  %v3469_v7 = vpop.xlane.xlu1 %3468 }
0x191a   : > { %v3472_v58 = vmul.f32 %v3469_v7, %v4668_v8 }
0x191c   : > { %v5715_v46 = vsub.f32 %v3460_v37, %v3472_v58 }
0x191e   : > { %v3478_v19 = vmul.f32 %v5715_v46, %v5715_v46 }
0x1920   : > { %v3485_v47 = vsel %vm617_vm2, %v3478_v19, 0.0 }
0x1921   : > { %3486 = vadd.xlane.f32.xlu1 %v3485_v47 }
0x1983   : > { %v3481_v21 = vpop.xlane.xlu2 %3480 }
0x1984   : > { %v3488_v49 = vmul.f32 %v3481_v21, %v4668_v8 }
0x1986   : > { %v3491_v26 = vadd.f32 1e-05, %v3488_v49 }
0x1988   : > { %4151 = vrsqrt.f32 %v3491_v26  ;;  %vm3500_vm13 = vweird.f32 %v3491_v26 }
0x198c   : > { %v3484_v33 = vpop.xlane.xlu0 %3483 }
0x198d   : > { %v3489_v30 = vmul.f32 %v3484_v33, %v4668_v8 }
0x198e   : > { %v4152_v51 = vpop.eup %4151 }
0x198f   : > { %v3495_v6 = vmul.f32 %v4152_v51, %v3491_v26  ;;  %v3492_v52 = vadd.f32 1e-05, %v3489_v30  ;;  %vm3501_vm11 = vweird.f32 %v4152_v51 }
0x1990   : > { %vm3502_vm14 = vmor %vm3500_vm13, %vm3501_vm11 }
0x1991   : > { %v3496_v43 = vmul.f32 %v4152_v51, %v3495_v6  ;;  %4153 = vrsqrt.f32 %v3492_v52  ;;  %vm3510_vm0 = vweird.f32 %v3492_v52 }
0x1993   : > { %v3497_v24 = vmul.f32 0.5, %v3496_v43 }
0x1994   : > { %v3487_v16 = vpop.xlane.xlu1 %3486 }
0x1995   : > { %v3498_v23 = vsub.f32 1.5, %v3497_v24  ;;  %v3490_v53 = vmul.f32 %v3487_v16, %v4668_v8 }
0x1997   : > { %v4154_v54 = vpop.eup %4153  ;;  %v3499_v59 = vmul.f32 %v4152_v51, %v3498_v23  ;;  %v3493_v44 = vadd.f32 1e-05, %v3490_v53 }
0x1998   : > { %v3505_v63 = vmul.f32 %v4154_v54, %v3492_v52  ;;  %vm3511_vm15 = vweird.f32 %v4154_v54 }
0x1999   : > { %v3503_v50 = vsel %vm3502_vm14, %v4152_v51, %v3499_v59  ;;  %4155 = vrsqrt.f32 %v3493_v44  ;;  %vm3512_vm1 = vmor %vm3510_vm0, %vm3511_vm15  ;;  %vm3520_vm8 = vweird.f32 %v3493_v44 }
0x199a   : > { %v3524_v10 = vmul.f32 %v3503_v50, %v3473_v27  ;;  %v3506_v3 = vmul.f32 %v4154_v54, %v3505_v63 }
0x199c   : > { %v3529_v61 = vmul.f32 %v3962_v0, %v3524_v10  ;;  %v3507_v8 = vmul.f32 0.5, %v3506_v3 }
0x199e   : > { %v3534_v11 = vadd.f32 %v3963_v1, %v3529_v61  ;;  %v3508_v13 = vsub.f32 1.5, %v3507_v8 }
0x199f   : > { %v4156_v14 = vpop.eup %4155 }
0x19a0   : > { %v3509_v62 = vmul.f32 %v4154_v54, %v3508_v13  ;;  %v3515_v17 = vmul.f32 %v4156_v14, %v3493_v44  ;;  %3849 = vmatmul.msk.f32.vlgmr.msra.gmra.mxu2 %vm617_vm2, %v3534_v11  ;;  %vm3521_vm10 = vweird.f32 %v4156_v14 }
0x19a1   : > { %vm3522_vm5 = vmor %vm3520_vm8, %vm3521_vm10 }
0x19a2   : > { %v3513_v48 = vsel %vm3512_vm1, %v4154_v54, %v3509_v62  ;;  %v3516_v22 = vmul.f32 %v4156_v14, %v3515_v17 }
0x19a3   : > { %v3525_v60 = vmul.f32 %v3513_v48, %v3474_v39 }
0x19a4   : > { %v3517_v25 = vmul.f32 0.5, %v3516_v22 }
0x19a5   : > { %v3530_v18 = vmul.f32 %v3962_v0, %v3525_v60 }
0x19a6   : > { %v3518_v20 = vsub.f32 1.5, %v3517_v25 }
0x19a7   : > { %v3535_v2 = vadd.f32 %v3963_v1, %v3530_v18 }
0x19a8   : > { %v3519_v45 = vmul.f32 %v4156_v14, %v3518_v20 }
0x19a9   : > { %3850 = vmatmul.msk.f32.gmra.mxu2 %vm617_vm2, %v3535_v2 }
0x19aa   : > { %v3523_v29 = vsel %vm3522_vm5, %v4156_v14, %v3519_v45 }
0x19ab   : > { %v3526_v57 = vmul.f32 %v3523_v29, %v5715_v46 }
0x19ad   : > { %v3531_v31 = vmul.f32 %v3962_v0, %v3526_v57 }
0x19af   : > { %v3536_v15 = vadd.f32 %v3963_v1, %v3531_v31 }
0x19b1   : > { %3851 = vmatmul.msk.f32.gmra.mxu2 %vm617_vm2, %v3536_v15 }
0x1a23   : > { %v3569_v34 = vpop.f32.mrf.mxu2 }
0x1a24   : > { %v3570_v37 = vadd.f32 %v3964_v9, %v3569_v34 }
0x1a26   : > { %3578 = vst [vmem:[%s521_s0] sm:$0xff] %v3570_v37 }
0x1a2c   : > { %v3572_v55 = vpop.f32.mrf.mxu2 }
0x1a2d   : > { %v3573_v40 = vadd.f32 %v3964_v9, %v3572_v55 }
0x1a2f   : > { %3579 = vst [vmem:[%s521_s0 + $0x8] sm:$0xff] %v3573_v40 }
0x1a34   : > { %v3575_v12 = vpop.f32.mrf.mxu2 }
0x1a35   : > { %v3576_v27 = vadd.f32 %v3964_v9, %v3575_v12 }
0x1a37   : > { %3580 = vst [vmem:[%s521_s0 + $0x10] sm:$0xff] %v3576_v27 }
0x1a38 PF: > { %s26_s21 = sadd.s32 1, %s4175_s21  }
0x1a39   : > { %p23_p5 = scmp.ge.s32.totalorder %s26_s21, 4  }
0x1a3b   :  { %25 = sbr.rel (!%p23_p5) target bundleno = 2 (0x2), region = 125 }

</bundles_post_ra>
